<compile_context>
chip_gen: v6e
topology: v6e:2x2x1
jax: 0.10.0
libtpu: 0.0.40
codegen_flags: <defaults>
</compile_context>

<pallas_src>
import functools
import math

import jax
import jax.numpy as jnp
from jax import lax
from jax.experimental import pallas as pl
from jax.experimental.pallas import tpu as pltpu


# --------------------------------------------------------------------------- #
# generation-aware sizing helpers
# --------------------------------------------------------------------------- #
def _tpu_vmem_capacity_bytes():
    try:
        info = pltpu.get_tpu_info()
        cap = getattr(info, "vmem_capacity_bytes", None)
        if cap:
            return int(cap)
    except Exception:
        pass
    return 128 * 1024 * 1024            # v5e / v6e default


def _vmem_limit_bytes():
    cap = _tpu_vmem_capacity_bytes()
    # leave >= 16 MiB of headroom for compiler-internal scratch
    return int(max(32 * 1024 * 1024, min(cap - 16 * 1024 * 1024, 96 * 1024 * 1024)))


def _choose_seq_tile(L):
    # v7x (64 MiB VMEM) -> 512, v5e/v6e (128 MiB) -> 1024
    max_tile = 512 if _tpu_vmem_capacity_bytes() <= 64 * 1024 * 1024 else 1024
    if L <= max_tile:
        return L
    t = (max_tile // 128) * 128          # E^T/F^T blocks put tq on the lane dim
    while t >= 128:
        if L % t == 0:
            return t
        t -= 128
    # TODO(synk): pad the sequence to a multiple of 128 instead of falling back
    # to a full-L block (a full-L block can exceed the VMEM budget for huge L).
    return L


def _layer_norm(h, gamma, beta, eps=1e-5):
    mu = jnp.mean(h, axis=-1, keepdims=True)
    var = jnp.mean((h - mu) ** 2, axis=-1, keepdims=True)
    return (h - mu) * lax.rsqrt(var + eps) * gamma + beta


# --------------------------- pass 1: kE / vF --------------------------------
def kv_proj_kernel(x_ref, g1_ref, be1_ref, Et_ref, Ft_ref,
                   kw_ref, vw_ref, kbias_ref, vbias_ref,
                   kE_ref, vF_ref, hE_acc, hF_acc):
    s = pl.program_id(1)

    @pl.when(s == 0)
    def _():
        hE_acc[...] = jnp.zeros_like(hE_acc)
        hF_acc[...] = jnp.zeros_like(hF_acc)

    h = _layer_norm(x_ref[...], g1_ref[...], be1_ref[...]).astype(jnp.bfloat16)

    # (k, tq) @ (tq, D) -> (k, D), accumulated in f32 over the sequence tiles.
    hE_acc[...] += jnp.dot(Et_ref[...], h, preferred_element_type=jnp.float32)
    hF_acc[...] += jnp.dot(Ft_ref[...], h, preferred_element_type=jnp.float32)

    @pl.when(s == pl.num_programs(1) - 1)
    def _():
        # E^T (LN(x) Wk + 1 kb) == (E^T LN(x)) Wk + colsum(E) kb
        # (bias folded analytically into kbias/vbias at the wrapper).
        kE_ref[...] = (jnp.dot(hE_acc[...].astype(jnp.bfloat16), kw_ref[...],
                               preferred_element_type=jnp.float32)
                       + kbias_ref[...]).astype(kE_ref.dtype)
        vF_ref[...] = (jnp.dot(hF_acc[...].astype(jnp.bfloat16), vw_ref[...],
                               preferred_element_type=jnp.float32)
                       + vbias_ref[...]).astype(vF_ref.dtype)


# --------------------------- pass 2: transformer block ----------------------
def block_kernel(x_ref, kE_ref, vF_ref,
                 g1_ref, be1_ref, qw_ref, qb_ref, ow_ref, ob_ref,
                 g2_ref, be2_ref, w1_ref, b1_ref, w2_ref, b2_ref,
                 o_ref, *, n_heads, scale, head_batched):
    bf16 = jnp.bfloat16
    x = x_ref[...]                                    # (tq, D) f32
    tq, D = x.shape
    dh = D // n_heads

    # ---- attention branch ---------------------------------------------------
    h = _layer_norm(x, g1_ref[...], be1_ref[...])
    q = jnp.dot(h.astype(bf16), qw_ref[...],
                preferred_element_type=jnp.float32) + qb_ref[...]     # (tq, D)
    q = q * scale                                     # scale hoisted, applied once

    if head_batched:
        # heads as the dot_general batch dim: two big dots, no per-head slices
        # and no H-way concat relayout.
        qh = jnp.transpose(q.reshape(tq, n_heads, dh), (1, 0, 2)).astype(bf16)
        sc = jnp.einsum("hqd,hkd->hqk", qh, kE_ref[...],
                        preferred_element_type=jnp.float32)           # (H, tq, k)
        m = jnp.max(sc, axis=-1, keepdims=True)
        p = jnp.exp(sc - m)
        p = p * pl.reciprocal(jnp.sum(p, axis=-1, keepdims=True), approx=True)
        ctx = jnp.einsum("hqk,hkd->hqd", p.astype(bf16), vF_ref[...],
                         preferred_element_type=jnp.float32)          # (H, tq, dh)
        va = jnp.transpose(ctx, (1, 0, 2)).reshape(tq, D)
    else:
        # fallback head loop: kE/vF are head-major, so each head is a plain
        # leading-axis ref read rather than a sub-128-lane slice.
        heads = []
        for hh in range(n_heads):
            qh = q[:, hh * dh:(hh + 1) * dh].astype(bf16)             # (tq, dh)
            sc = lax.dot_general(qh, kE_ref[hh], (((1,), (1,)), ((), ())),
                                 preferred_element_type=jnp.float32)  # (tq, k)
            m = jnp.max(sc, axis=-1, keepdims=True)
            p = jnp.exp(sc - m)
            p = p * pl.reciprocal(jnp.sum(p, axis=-1, keepdims=True), approx=True)
            heads.append(jnp.dot(p.astype(bf16), vF_ref[hh],
                                 preferred_element_type=jnp.float32))
        va = jnp.concatenate(heads, axis=-1)                          # (tq, D)

    attn = jnp.dot(va.astype(bf16), ow_ref[...],
                   preferred_element_type=jnp.float32) + ob_ref[...]
    x1 = x + attn

    # ---- MLP branch ---------------------------------------------------------
    # TODO(synk): chunk the MLP hidden dim (extra grid axis / emit_pipeline over
    # w1 columns + w2 rows) for very large mlp_dim so the weights plus the
    # (tq, mlp) intermediate fit v7x's 64 MiB VMEM.
    h2 = _layer_norm(x1, g2_ref[...], be2_ref[...])
    f1 = jnp.dot(h2.astype(bf16), w1_ref[...],
                 preferred_element_type=jnp.float32) + b1_ref[...]
    # exact GELU (PyTorch nn.GELU default): 0.5 * x * (1 + erf(x / sqrt(2)))
    f1 = 0.5 * f1 * (1.0 + lax.erf(f1 * (1.0 / math.sqrt(2.0))))
    f2 = jnp.dot(f1.astype(bf16), w2_ref[...],
                 preferred_element_type=jnp.float32) + b2_ref[...]

    o_ref[...] = (x1 + f2).astype(o_ref.dtype)


# --------------------------- wrapper -----------------------------------------
def _transformer_block(x, params, *, n_heads, seq_tile, head_batched,
                       single_buffer_weights):
    (g1, be1, qw, qb, kw, kb, vw, vb, E, F, ow, ob,
     g2, be2, w1, b1, w2, b2) = params
    B, L, D = x.shape
    kk = E.shape[1]
    assert E.shape[0] == L and F.shape[0] == L, "E/F first dim must equal seq_len"
    assert D % n_heads == 0
    dh = D // n_heads
    scale = dh ** (-0.5)
    tq = _choose_seq_tile(L) if seq_tile is None else seq_tile
    assert L % tq == 0

    bf16 = jnp.bfloat16
    vmem_limit = _vmem_limit_bytes()

    # bf16 MXU operands at the pallas_call boundary -> half the weight DMA/VMEM.
    # TODO(synk): optional fp8 (e4m3) weights on v7x for another 2x, and bf16
    # x/output on v5e where the block is HBM-bandwidth bound.
    qw_b, kw_b, vw_b, ow_b = (w.astype(bf16) for w in (qw, kw, vw, ow))
    w1_b, w2_b = w1.astype(bf16), w2.astype(bf16)
    # E/F pre-transposed (k, L) so the per-tile dot is a plain (k,tq)x(tq,D).
    Et_b, Ft_b = E.T.astype(bf16), F.T.astype(bf16)
    # K/V bias folded analytically:  E^T (1 kb) = colsum(E) kb.
    kbias = jnp.sum(E, axis=0)[:, None] * kb          # (k, D) f32
    vbias = jnp.sum(F, axis=0)[:, None] * vb          # (k, D) f32

    buffered1 = pl.Buffered(1) if single_buffer_weights else None

    def const_spec(p):
        nd = p.ndim
        if buffered1 is not None:
            return pl.BlockSpec(p.shape, lambda *_: (0,) * nd,
                                pipeline_mode=buffered1)
        return pl.BlockSpec(p.shape, lambda *_: (0,) * nd)

    # ---- pass 1: Linformer K/V summaries, (B, k, D) in bf16 -----------------
    kE, vF = pl.pallas_call(
        kv_proj_kernel,
        out_shape=(jax.ShapeDtypeStruct((B, kk, D), bf16),
                   jax.ShapeDtypeStruct((B, kk, D), bf16)),
        grid_spec=pltpu.PrefetchScalarGridSpec(
            num_scalar_prefetch=0,
            grid=(B, L // tq),
            in_specs=[
                pl.BlockSpec((None, tq, D), lambda b, s: (b, s, 0)),   # x
                const_spec(g1), const_spec(be1),
                pl.BlockSpec((kk, tq), lambda b, s: (0, s)),           # E^T
                pl.BlockSpec((kk, tq), lambda b, s: (0, s)),           # F^T
                const_spec(kw_b), const_spec(vw_b),
                const_spec(kbias), const_spec(vbias),
            ],
            out_specs=(pl.BlockSpec((None, kk, D), lambda b, s: (b, 0, 0)),
                       pl.BlockSpec((None, kk, D), lambda b, s: (b, 0, 0))),
            scratch_shapes=[pltpu.VMEM((kk, D), jnp.float32),
                            pltpu.VMEM((kk, D), jnp.float32)]),
        compiler_params=pltpu.CompilerParams(
            dimension_semantics=("parallel", "arbitrary"),
            vmem_limit_bytes=vmem_limit),
    )(x, g1, be1, Et_b, Ft_b, kw_b, vw_b, kbias, vbias)

    # head-major (B, H, k, dh) rearrangement once per batch (tiny, plain XLA).
    kE = kE.reshape(B, kk, n_heads, dh).transpose(0, 2, 1, 3)
    vF = vF.reshape(B, kk, n_heads, dh).transpose(0, 2, 1, 3)

    # ---- pass 2: per-(batch, query-tile) transformer block ------------------
    kernel = functools.partial(block_kernel, n_heads=n_heads, scale=scale,
                               head_batched=head_batched)
    out = pl.pallas_call(
        kernel,
        out_shape=jax.ShapeDtypeStruct((B, L, D), x.dtype),
        grid_spec=pltpu.PrefetchScalarGridSpec(
            num_scalar_prefetch=0,
            grid=(B, L // tq),
            in_specs=[
                pl.BlockSpec((None, tq, D), lambda b, s: (b, s, 0)),               # x
                pl.BlockSpec((None, n_heads, kk, dh), lambda b, s: (b, 0, 0, 0)),  # kE
                pl.BlockSpec((None, n_heads, kk, dh), lambda b, s: (b, 0, 0, 0)),  # vF
                const_spec(g1), const_spec(be1), const_spec(qw_b), const_spec(qb),
                const_spec(ow_b), const_spec(ob), const_spec(g2), const_spec(be2),
                const_spec(w1_b), const_spec(b1), const_spec(w2_b), const_spec(b2),
            ],
            out_specs=pl.BlockSpec((None, tq, D), lambda b, s: (b, s, 0))),
        compiler_params=pltpu.CompilerParams(
            dimension_semantics=("parallel", "parallel"),
            vmem_limit_bytes=vmem_limit),
    )(x, kE, vF, g1, be1, qw_b, qb, ow_b, ob, g2, be2, w1_b, b1, w2_b, b2)
    return out


def transformer_block(x, params, *, n_heads, seq_tile=None):
    """Try the most aggressive configuration first (head-batched dots +
    single-buffered constant weights); fall back to progressively more
    conservative ones so the block runs cleanly on any TPU generation."""
    configs = ((True, True), (False, True), (True, False), (False, False))
    last_err = None
    for head_batched, single_buf in configs:
        try:
            out = _transformer_block(x, params, n_heads=n_heads, seq_tile=seq_tile,
                                     head_batched=head_batched,
                                     single_buffer_weights=single_buf)
            return jax.block_until_ready(out)
        except Exception as e:       # lowering/compile fallback only
            last_err = e
    raise last_err


# ----------------------------- pure-JAX reference ---------------------------
def reference_block(x, params, *, n_heads):
    (g1, be1, qw, qb, kw, kb, vw, vb, E, F, ow, ob,
     g2, be2, w1, b1, w2, b2) = params
    B, L, D = x.shape
    dh = D // n_heads
    scale = dh ** (-0.5)

    def ln(h, g, b):
        mu = jnp.mean(h, -1, keepdims=True)
        var = jnp.mean((h - mu) ** 2, -1, keepdims=True)
        return (h - mu) / jnp.sqrt(var + 1e-5) * g + b

    h = ln(x, g1, be1)
    q = h @ qw + qb
    k = h @ kw + kb
    v = h @ vw + vb
    q = q.reshape(B, L, n_heads, dh).transpose(0, 2, 1, 3)          # (B,H,L,dh)
    k = k.reshape(B, L, n_heads, dh).transpose(0, 2, 3, 1)          # (B,H,dh,L)
    v = v.reshape(B, L, n_heads, dh).transpose(0, 2, 3, 1)          # (B,H,dh,L)
    k = k @ E[:L, :]                                                # (B,H,dh,k)
    v = (v @ F[:L, :]).transpose(0, 1, 3, 2)                        # (B,H,k,dh)
    qk = (q @ k) * scale
    attn = jax.nn.softmax(qk, axis=-1)
    va = (attn @ v).transpose(0, 2, 1, 3).reshape(B, L, D)
    x1 = x + (va @ ow + ob)
    h2 = ln(x1, g2, be2)
    ff = jax.nn.gelu(h2 @ w1 + b1, approximate=False) @ w2 + b2
    return x1 + ff


if __name__ == "__main__":
    # small shapes consistent with the module
    B, L, D, heads, mlp_dim, kk = 2, 8, 32, 4, 64, 4

    key = jax.random.PRNGKey(0)
    ks = jax.random.split(key, 16)

    def lin(kw_, kb_, d_in, d_out, s=0.05):
        return (jax.random.normal(kw_, (d_in, d_out), jnp.float32) * s,
                jax.random.normal(kb_, (1, d_out), jnp.float32) * s)

    g1 = jnp.ones((1, D), jnp.float32)
    be1 = jnp.zeros((1, D), jnp.float32)
    qw, qb = lin(ks[0], ks[1], D, D)
    kw, kb = lin(ks[2], ks[3], D, D)
    vw, vb = lin(ks[4], ks[5], D, D)
    E = jax.random.normal(ks[6], (L, kk), jnp.float32)
    F = jax.random.normal(ks[7], (L, kk), jnp.float32)
    ow, ob = lin(ks[8], ks[9], D, D)
    g2 = jnp.ones((1, D), jnp.float32)
    be2 = jnp.zeros((1, D), jnp.float32)
    w1, b1 = lin(ks[10], ks[11], D, mlp_dim)
    w2, b2 = lin(ks[12], ks[13], mlp_dim, D)

    params = (g1, be1, qw, qb, kw, kb, vw, vb, E, F, ow, ob,
              g2, be2, w1, b1, w2, b2)

    x = jax.random.normal(ks[14], (B, L, D), jnp.float32)

    out = transformer_block(x, params, n_heads=heads)
    out = jax.block_until_ready(out)

    ref = reference_block(x, params, n_heads=heads)
    assert out.shape == (B, L, D)
    max_err = float(jnp.max(jnp.abs(out - ref)))
    # tolerance accounts for bf16 MXU operands, bf16 kE/vF storage and the
    # approx reciprocal in the softmax (reference is full f32)
    assert jnp.allclose(out, ref, rtol=3e-2, atol=3e-2), f"max abs err {max_err}"

    print("KERNEL_OK")
</pallas_src>

<mosaic_0001>
module attributes {stable_mosaic.version = 11 : i64} {
  func.func @kv_proj_kernel(%arg0: i32, %arg1: i32, %arg2: memref<1x8x32xf32, #tpu.memory_space<vmem>>, %arg3: memref<1x32xf32, #tpu.memory_space<vmem>>, %arg4: memref<1x32xf32, #tpu.memory_space<vmem>>, %arg5: memref<4x8xbf16, #tpu.memory_space<vmem>>, %arg6: memref<4x8xbf16, #tpu.memory_space<vmem>>, %arg7: memref<32x32xbf16, #tpu.memory_space<vmem>>, %arg8: memref<32x32xbf16, #tpu.memory_space<vmem>>, %arg9: memref<4x32xf32, #tpu.memory_space<vmem>>, %arg10: memref<4x32xf32, #tpu.memory_space<vmem>>, %arg11: memref<1x4x32xbf16, #tpu.memory_space<vmem>>, %arg12: memref<1x4x32xbf16, #tpu.memory_space<vmem>>, %arg13: memref<4x32xf32, #tpu.memory_space<vmem>>, %arg14: memref<4x32xf32, #tpu.memory_space<vmem>>) attributes {dimension_semantics = [#tpu.dimension_semantics<parallel>, #tpu.dimension_semantics<arbitrary>], iteration_bounds = array<i64: 2, 1>, scalar_prefetch = 0 : i64, scratch_operands = 2 : i64, tpu.core_type = #tpu.core_type<tc>, window_params = [{transform_indices = @transform_0, window_bounds = array<i64: 1, 8, 32>}, {pipeline_mode = #tpu.pipeline_mode<synchronous>, transform_indices = @transform_1, window_bounds = array<i64: 1, 32>}, {pipeline_mode = #tpu.pipeline_mode<synchronous>, transform_indices = @transform_2, window_bounds = array<i64: 1, 32>}, {transform_indices = @transform_3, window_bounds = array<i64: 4, 8>}, {transform_indices = @transform_4, window_bounds = array<i64: 4, 8>}, {pipeline_mode = #tpu.pipeline_mode<synchronous>, transform_indices = @transform_5, window_bounds = array<i64: 32, 32>}, {pipeline_mode = #tpu.pipeline_mode<synchronous>, transform_indices = @transform_6, window_bounds = array<i64: 32, 32>}, {pipeline_mode = #tpu.pipeline_mode<synchronous>, transform_indices = @transform_7, window_bounds = array<i64: 4, 32>}, {pipeline_mode = #tpu.pipeline_mode<synchronous>, transform_indices = @transform_8, window_bounds = array<i64: 4, 32>}, {transform_indices = @transform_9, window_bounds = array<i64: 1, 4, 32>}, {transform_indices = @transform_10, window_bounds = array<i64: 1, 4, 32>}]} {
    %c0_i32 = arith.constant 0 : i32
    %0 = arith.cmpi eq, %arg1, %c0_i32 : i32
    %1 = arith.extui %0 : i1 to i32
    %c0_i32_0 = arith.constant 0 : i32
    %2 = arith.cmpi ne, %1, %c0_i32_0 : i32
    scf.if %2 {
      %cst_27 = arith.constant 0.000000e+00 : f32
      %43 = vector.broadcast %cst_27 : f32 to vector<4x32xf32>
      %c0_28 = arith.constant 0 : index
      %c0_29 = arith.constant 0 : index
      %44 = vector.load %arg13[%c0_28, %c0_29] : memref<4x32xf32, #tpu.memory_space<vmem>>, vector<4x32xf32>
      tpu.vector_store %arg13[%c0_28, %c0_29], %43 {strides = array<i32>} : memref<4x32xf32, #tpu.memory_space<vmem>>, vector<4x32xf32>,
      %cst_30 = arith.constant 0.000000e+00 : f32
      %45 = vector.broadcast %cst_30 : f32 to vector<4x32xf32>
      %c0_31 = arith.constant 0 : index
      %c0_32 = arith.constant 0 : index
      %46 = vector.load %arg14[%c0_31, %c0_32] : memref<4x32xf32, #tpu.memory_space<vmem>>, vector<4x32xf32>
      tpu.vector_store %arg14[%c0_31, %c0_32], %45 {strides = array<i32>} : memref<4x32xf32, #tpu.memory_space<vmem>>, vector<4x32xf32>,
    } else {
    }
    %c0 = arith.constant 0 : index
    %c0_1 = arith.constant 0 : index
    %c0_2 = arith.constant 0 : index
    %3 = vector.load %arg2[%c0, %c0_1, %c0_2] : memref<1x8x32xf32, #tpu.memory_space<vmem>>, vector<1x8x32xf32>
    %4 = vector.shape_cast %3 : vector<1x8x32xf32> to vector<8x32xf32>
    %c0_3 = arith.constant 0 : index
    %c0_4 = arith.constant 0 : index
    %5 = vector.load %arg3[%c0_3, %c0_4] : memref<1x32xf32, #tpu.memory_space<vmem>>, vector<1x32xf32>
    %c0_5 = arith.constant 0 : index
    %c0_6 = arith.constant 0 : index
    %6 = vector.load %arg4[%c0_5, %c0_6] : memref<1x32xf32, #tpu.memory_space<vmem>>, vector<1x32xf32>
    %cst = arith.constant dense<0.000000e+00> : vector<8xf32>
    %7 = vector.multi_reduction <add>, %4, %cst [1] : vector<8x32xf32> to vector<8xf32>
    %8 = vector.shape_cast %7 : vector<8xf32> to vector<8x1xf32>
    %cst_7 = arith.constant 3.200000e+01 : f32
    %9 = vector.broadcast %cst_7 : f32 to vector<8x1xf32>
    %10 = arith.divf %8, %9 : vector<8x1xf32>
    %11 = vector.broadcast %10 : vector<8x1xf32> to vector<8x32xf32>
    %12 = arith.subf %4, %11 : vector<8x32xf32>
    %13 = arith.mulf %12, %12 : vector<8x32xf32>
    %cst_8 = arith.constant dense<0.000000e+00> : vector<8xf32>
    %14 = vector.multi_reduction <add>, %13, %cst_8 [1] : vector<8x32xf32> to vector<8xf32>
    %15 = vector.shape_cast %14 : vector<8xf32> to vector<8x1xf32>
    %cst_9 = arith.constant 3.200000e+01 : f32
    %16 = vector.broadcast %cst_9 : f32 to vector<8x1xf32>
    %17 = arith.divf %15, %16 : vector<8x1xf32>
    %18 = vector.broadcast %10 : vector<8x1xf32> to vector<8x32xf32>
    %19 = arith.subf %4, %18 : vector<8x32xf32>
    %cst_10 = arith.constant 9.99999974E-6 : f32
    %20 = vector.broadcast %cst_10 : f32 to vector<8x1xf32>
    %21 = arith.addf %17, %20 : vector<8x1xf32>
    %22 = math.rsqrt %21 : vector<8x1xf32>
    %23 = vector.broadcast %22 : vector<8x1xf32> to vector<8x32xf32>
    %24 = arith.mulf %19, %23 : vector<8x32xf32>
    %25 = vector.broadcast %5 : vector<1x32xf32> to vector<8x32xf32>
    %26 = arith.mulf %24, %25 : vector<8x32xf32>
    %27 = vector.broadcast %6 : vector<1x32xf32> to vector<8x32xf32>
    %28 = arith.addf %26, %27 : vector<8x32xf32>
    %29 = arith.truncf %28 : vector<8x32xf32> to vector<8x32xbf16>
    %c0_11 = arith.constant 0 : index
    %c0_12 = arith.constant 0 : index
    %30 = vector.load %arg13[%c0_11, %c0_12] : memref<4x32xf32, #tpu.memory_space<vmem>>, vector<4x32xf32>
    %c0_13 = arith.constant 0 : index
    %c0_14 = arith.constant 0 : index
    %31 = vector.load %arg5[%c0_13, %c0_14] : memref<4x8xbf16, #tpu.memory_space<vmem>>, vector<4x8xbf16>
    %cst_15 = arith.constant dense<0.000000e+00> : vector<4x32xf32>
    %32 = tpu.matmul %31, %29, %cst_15 {dimension_numbers = #tpu.dot_dimension_numbers<[1], [0], [0], [1], [0, 0, 1, 1], [], []>} : vector<4x8xbf16>, vector<8x32xbf16>, vector<4x32xf32> -> vector<4x32xf32>
    %33 = arith.addf %30, %32 : vector<4x32xf32>
    %c0_16 = arith.constant 0 : index
    %c0_17 = arith.constant 0 : index
    %34 = vector.load %arg13[%c0_16, %c0_17] : memref<4x32xf32, #tpu.memory_space<vmem>>, vector<4x32xf32>
    tpu.vector_store %arg13[%c0_16, %c0_17], %33 {strides = array<i32>} : memref<4x32xf32, #tpu.memory_space<vmem>>, vector<4x32xf32>,
    %c0_18 = arith.constant 0 : index
    %c0_19 = arith.constant 0 : index
    %35 = vector.load %arg14[%c0_18, %c0_19] : memref<4x32xf32, #tpu.memory_space<vmem>>, vector<4x32xf32>
    %c0_20 = arith.constant 0 : index
    %c0_21 = arith.constant 0 : index
    %36 = vector.load %arg6[%c0_20, %c0_21] : memref<4x8xbf16, #tpu.memory_space<vmem>>, vector<4x8xbf16>
    %cst_22 = arith.constant dense<0.000000e+00> : vector<4x32xf32>
    %37 = tpu.matmul %36, %29, %cst_22 {dimension_numbers = #tpu.dot_dimension_numbers<[1], [0], [0], [1], [0, 0, 1, 1], [], []>} : vector<4x8xbf16>, vector<8x32xbf16>, vector<4x32xf32> -> vector<4x32xf32>
    %38 = arith.addf %35, %37 : vector<4x32xf32>
    %c0_23 = arith.constant 0 : index
    %c0_24 = arith.constant 0 : index
    %39 = vector.load %arg14[%c0_23, %c0_24] : memref<4x32xf32, #tpu.memory_space<vmem>>, vector<4x32xf32>
    tpu.vector_store %arg14[%c0_23, %c0_24], %38 {strides = array<i32>} : memref<4x32xf32, #tpu.memory_space<vmem>>, vector<4x32xf32>,
    %c0_i32_25 = arith.constant 0 : i32
    %40 = arith.cmpi eq, %arg1, %c0_i32_25 : i32
    %41 = arith.extui %40 : i1 to i32
    %c0_i32_26 = arith.constant 0 : i32
    %42 = arith.cmpi ne, %41, %c0_i32_26 : i32
    scf.if %42 {
      %c0_27 = arith.constant 0 : index
      %c0_28 = arith.constant 0 : index
      %43 = vector.load %arg13[%c0_27, %c0_28] : memref<4x32xf32, #tpu.memory_space<vmem>>, vector<4x32xf32>
      %44 = arith.truncf %43 : vector<4x32xf32> to vector<4x32xbf16>
      %c0_29 = arith.constant 0 : index
      %c0_30 = arith.constant 0 : index
      %45 = vector.load %arg7[%c0_29, %c0_30] : memref<32x32xbf16, #tpu.memory_space<vmem>>, vector<32x32xbf16>
      %cst_31 = arith.constant dense<0.000000e+00> : vector<4x32xf32>
      %46 = tpu.matmul %44, %45, %cst_31 {dimension_numbers = #tpu.dot_dimension_numbers<[1], [0], [0], [1], [0, 0, 1, 1], [], []>} : vector<4x32xbf16>, vector<32x32xbf16>, vector<4x32xf32> -> vector<4x32xf32>
      %c0_32 = arith.constant 0 : index
      %c0_33 = arith.constant 0 : index
      %47 = vector.load %arg9[%c0_32, %c0_33] : memref<4x32xf32, #tpu.memory_space<vmem>>, vector<4x32xf32>
      %48 = arith.addf %46, %47 : vector<4x32xf32>
      %49 = arith.truncf %48 : vector<4x32xf32> to vector<4x32xbf16>
      %c0_34 = arith.constant 0 : index
      %c0_35 = arith.constant 0 : index
      %c0_36 = arith.constant 0 : index
      %50 = vector.load %arg11[%c0_34, %c0_35, %c0_36] : memref<1x4x32xbf16, #tpu.memory_space<vmem>>, vector<1x4x32xbf16>
      %51 = vector.shape_cast %50 : vector<1x4x32xbf16> to vector<4x32xbf16>
      %52 = vector.shape_cast %49 : vector<4x32xbf16> to vector<1x4x32xbf16>
      tpu.vector_store %arg11[%c0_34, %c0_35, %c0_36], %52 {strides = array<i32>} : memref<1x4x32xbf16, #tpu.memory_space<vmem>>, vector<1x4x32xbf16>,
      %c0_37 = arith.constant 0 : index
      %c0_38 = arith.constant 0 : index
      %53 = vector.load %arg14[%c0_37, %c0_38] : memref<4x32xf32, #tpu.memory_space<vmem>>, vector<4x32xf32>
      %54 = arith.truncf %53 : vector<4x32xf32> to vector<4x32xbf16>
      %c0_39 = arith.constant 0 : index
      %c0_40 = arith.constant 0 : index
      %55 = vector.load %arg8[%c0_39, %c0_40] : memref<32x32xbf16, #tpu.memory_space<vmem>>, vector<32x32xbf16>
      %cst_41 = arith.constant dense<0.000000e+00> : vector<4x32xf32>
      %56 = tpu.matmul %54, %55, %cst_41 {dimension_numbers = #tpu.dot_dimension_numbers<[1], [0], [0], [1], [0, 0, 1, 1], [], []>} : vector<4x32xbf16>, vector<32x32xbf16>, vector<4x32xf32> -> vector<4x32xf32>
      %c0_42 = arith.constant 0 : index
      %c0_43 = arith.constant 0 : index
      %57 = vector.load %arg10[%c0_42, %c0_43] : memref<4x32xf32, #tpu.memory_space<vmem>>, vector<4x32xf32>
      %58 = arith.addf %56, %57 : vector<4x32xf32>
      %59 = arith.truncf %58 : vector<4x32xf32> to vector<4x32xbf16>
      %c0_44 = arith.constant 0 : index
      %c0_45 = arith.constant 0 : index
      %c0_46 = arith.constant 0 : index
      %60 = vector.load %arg12[%c0_44, %c0_45, %c0_46] : memref<1x4x32xbf16, #tpu.memory_space<vmem>>, vector<1x4x32xbf16>
      %61 = vector.shape_cast %60 : vector<1x4x32xbf16> to vector<4x32xbf16>
      %62 = vector.shape_cast %59 : vector<4x32xbf16> to vector<1x4x32xbf16>
      tpu.vector_store %arg12[%c0_44, %c0_45, %c0_46], %62 {strides = array<i32>} : memref<1x4x32xbf16, #tpu.memory_space<vmem>>, vector<1x4x32xbf16>,
    } else {
    }
    return
  }
  func.func @transform_0(%arg0: i32, %arg1: i32) -> (i32, i32, i32) {
    %c0_i32 = arith.constant 0 : i32
    %c0_i32_0 = arith.constant 0 : i32
    return %arg0, %arg1, %c0_i32 : i32, i32, i32
  }
  func.func @transform_1(%arg0: i32, %arg1: i32) -> (i32, i32) {
    %c0_i32 = arith.constant 0 : i32
    %c0_i32_0 = arith.constant 0 : i32
    %c0_i32_1 = arith.constant 0 : i32
    return %c0_i32, %c0_i32_0 : i32, i32
  }
  func.func @transform_2(%arg0: i32, %arg1: i32) -> (i32, i32) {
    %c0_i32 = arith.constant 0 : i32
    %c0_i32_0 = arith.constant 0 : i32
    %c0_i32_1 = arith.constant 0 : i32
    return %c0_i32, %c0_i32_0 : i32, i32
  }
  func.func @transform_3(%arg0: i32, %arg1: i32) -> (i32, i32) {
    %c0_i32 = arith.constant 0 : i32
    %c0_i32_0 = arith.constant 0 : i32
    return %c0_i32, %arg1 : i32, i32
  }
  func.func @transform_4(%arg0: i32, %arg1: i32) -> (i32, i32) {
    %c0_i32 = arith.constant 0 : i32
    %c0_i32_0 = arith.constant 0 : i32
    return %c0_i32, %arg1 : i32, i32
  }
  func.func @transform_5(%arg0: i32, %arg1: i32) -> (i32, i32) {
    %c0_i32 = arith.constant 0 : i32
    %c0_i32_0 = arith.constant 0 : i32
    %c0_i32_1 = arith.constant 0 : i32
    return %c0_i32, %c0_i32_0 : i32, i32
  }
  func.func @transform_6(%arg0: i32, %arg1: i32) -> (i32, i32) {
    %c0_i32 = arith.constant 0 : i32
    %c0_i32_0 = arith.constant 0 : i32
    %c0_i32_1 = arith.constant 0 : i32
    return %c0_i32, %c0_i32_0 : i32, i32
  }
  func.func @transform_7(%arg0: i32, %arg1: i32) -> (i32, i32) {
    %c0_i32 = arith.constant 0 : i32
    %c0_i32_0 = arith.constant 0 : i32
    %c0_i32_1 = arith.constant 0 : i32
    return %c0_i32, %c0_i32_0 : i32, i32
  }
  func.func @transform_8(%arg0: i32, %arg1: i32) -> (i32, i32) {
    %c0_i32 = arith.constant 0 : i32
    %c0_i32_0 = arith.constant 0 : i32
    %c0_i32_1 = arith.constant 0 : i32
    return %c0_i32, %c0_i32_0 : i32, i32
  }
  func.func @transform_9(%arg0: i32, %arg1: i32) -> (i32, i32, i32) {
    %c0_i32 = arith.constant 0 : i32
    %c0_i32_0 = arith.constant 0 : i32
    %c0_i32_1 = arith.constant 0 : i32
    return %arg0, %c0_i32, %c0_i32_0 : i32, i32, i32
  }
  func.func @transform_10(%arg0: i32, %arg1: i32) -> (i32, i32, i32) {
    %c0_i32 = arith.constant 0 : i32
    %c0_i32_0 = arith.constant 0 : i32
    %c0_i32_1 = arith.constant 0 : i32
    return %arg0, %c0_i32, %c0_i32_0 : i32, i32, i32
  }
}

module attributes {stable_mosaic.version = 11 : i64} {
  func.func @kv_proj_kernel(%arg0: i32, %arg1: i32, %arg2: memref<1x8x32xf32, #tpu.memory_space<vmem>>, %arg3: memref<1x32xf32, #tpu.memory_space<vmem>>, %arg4: memref<1x32xf32, #tpu.memory_space<vmem>>, %arg5: memref<4x8xbf16, #tpu.memory_space<vmem>>, %arg6: memref<4x8xbf16, #tpu.memory_space<vmem>>, %arg7: memref<32x32xbf16, #tpu.memory_space<vmem>>, %arg8: memref<32x32xbf16, #tpu.memory_space<vmem>>, %arg9: memref<4x32xf32, #tpu.memory_space<vmem>>, %arg10: memref<4x32xf32, #tpu.memory_space<vmem>>, %arg11: memref<1x4x32xbf16, #tpu.memory_space<vmem>>, %arg12: memref<1x4x32xbf16, #tpu.memory_space<vmem>>, %arg13: memref<4x32xf32, #tpu.memory_space<vmem>>, %arg14: memref<4x32xf32, #tpu.memory_space<vmem>>) attributes {dimension_semantics = [#tpu.dimension_semantics<parallel>, #tpu.dimension_semantics<arbitrary>], iteration_bounds = array<i64: 2, 1>, scalar_prefetch = 0 : i64, scratch_operands = 2 : i64, tpu.core_type = #tpu.core_type<tc>, window_params = [{transform_indices = @transform_0, window_bounds = array<i64: 1, 8, 32>}, {pipeline_mode = #tpu.pipeline_mode<synchronous>, transform_indices = @transform_1, window_bounds = array<i64: 1, 32>}, {pipeline_mode = #tpu.pipeline_mode<synchronous>, transform_indices = @transform_2, window_bounds = array<i64: 1, 32>}, {transform_indices = @transform_3, window_bounds = array<i64: 4, 8>}, {transform_indices = @transform_4, window_bounds = array<i64: 4, 8>}, {pipeline_mode = #tpu.pipeline_mode<synchronous>, transform_indices = @transform_5, window_bounds = array<i64: 32, 32>}, {pipeline_mode = #tpu.pipeline_mode<synchronous>, transform_indices = @transform_6, window_bounds = array<i64: 32, 32>}, {pipeline_mode = #tpu.pipeline_mode<synchronous>, transform_indices = @transform_7, window_bounds = array<i64: 4, 32>}, {pipeline_mode = #tpu.pipeline_mode<synchronous>, transform_indices = @transform_8, window_bounds = array<i64: 4, 32>}, {transform_indices = @transform_9, window_bounds = array<i64: 1, 4, 32>}, {transform_indices = @transform_10, window_bounds = array<i64: 1, 4, 32>}]} {
    %c0_i32 = arith.constant 0 : i32
    %0 = arith.cmpi eq, %arg1, %c0_i32 : i32
    %1 = arith.extui %0 : i1 to i32
    %c0_i32_0 = arith.constant 0 : i32
    %2 = arith.cmpi ne, %1, %c0_i32_0 : i32
    scf.if %2 {
      %cst_27 = arith.constant 0.000000e+00 : f32
      %43 = vector.broadcast %cst_27 : f32 to vector<4x32xf32>
      %c0_28 = arith.constant 0 : index
      %c0_29 = arith.constant 0 : index
      %44 = vector.load %arg13[%c0_28, %c0_29] : memref<4x32xf32, #tpu.memory_space<vmem>>, vector<4x32xf32>
      tpu.vector_store %arg13[%c0_28, %c0_29], %43 {strides = array<i32>} : memref<4x32xf32, #tpu.memory_space<vmem>>, vector<4x32xf32>,
      %cst_30 = arith.constant 0.000000e+00 : f32
      %45 = vector.broadcast %cst_30 : f32 to vector<4x32xf32>
      %c0_31 = arith.constant 0 : index
      %c0_32 = arith.constant 0 : index
      %46 = vector.load %arg14[%c0_31, %c0_32] : memref<4x32xf32, #tpu.memory_space<vmem>>, vector<4x32xf32>
      tpu.vector_store %arg14[%c0_31, %c0_32], %45 {strides = array<i32>} : memref<4x32xf32, #tpu.memory_space<vmem>>, vector<4x32xf32>,
    } else {
    }
    %c0 = arith.constant 0 : index
    %c0_1 = arith.constant 0 : index
    %c0_2 = arith.constant 0 : index
    %3 = vector.load %arg2[%c0, %c0_1, %c0_2] : memref<1x8x32xf32, #tpu.memory_space<vmem>>, vector<1x8x32xf32>
    %4 = vector.shape_cast %3 : vector<1x8x32xf32> to vector<8x32xf32>
    %c0_3 = arith.constant 0 : index
    %c0_4 = arith.constant 0 : index
    %5 = vector.load %arg3[%c0_3, %c0_4] : memref<1x32xf32, #tpu.memory_space<vmem>>, vector<1x32xf32>
    %c0_5 = arith.constant 0 : index
    %c0_6 = arith.constant 0 : index
    %6 = vector.load %arg4[%c0_5, %c0_6] : memref<1x32xf32, #tpu.memory_space<vmem>>, vector<1x32xf32>
    %cst = arith.constant dense<0.000000e+00> : vector<8xf32>
    %7 = vector.multi_reduction <add>, %4, %cst [1] : vector<8x32xf32> to vector<8xf32>
    %8 = vector.shape_cast %7 : vector<8xf32> to vector<8x1xf32>
    %cst_7 = arith.constant 3.200000e+01 : f32
    %9 = vector.broadcast %cst_7 : f32 to vector<8x1xf32>
    %10 = arith.divf %8, %9 : vector<8x1xf32>
    %11 = vector.broadcast %10 : vector<8x1xf32> to vector<8x32xf32>
    %12 = arith.subf %4, %11 : vector<8x32xf32>
    %13 = arith.mulf %12, %12 : vector<8x32xf32>
    %cst_8 = arith.constant dense<0.000000e+00> : vector<8xf32>
    %14 = vector.multi_reduction <add>, %13, %cst_8 [1] : vector<8x32xf32> to vector<8xf32>
    %15 = vector.shape_cast %14 : vector<8xf32> to vector<8x1xf32>
    %cst_9 = arith.constant 3.200000e+01 : f32
    %16 = vector.broadcast %cst_9 : f32 to vector<8x1xf32>
    %17 = arith.divf %15, %16 : vector<8x1xf32>
    %18 = vector.broadcast %10 : vector<8x1xf32> to vector<8x32xf32>
    %19 = arith.subf %4, %18 : vector<8x32xf32>
    %cst_10 = arith.constant 9.99999974E-6 : f32
    %20 = vector.broadcast %cst_10 : f32 to vector<8x1xf32>
    %21 = arith.addf %17, %20 : vector<8x1xf32>
    %22 = math.rsqrt %21 : vector<8x1xf32>
    %23 = vector.broadcast %22 : vector<8x1xf32> to vector<8x32xf32>
    %24 = arith.mulf %19, %23 : vector<8x32xf32>
    %25 = vector.broadcast %5 : vector<1x32xf32> to vector<8x32xf32>
    %26 = arith.mulf %24, %25 : vector<8x32xf32>
    %27 = vector.broadcast %6 : vector<1x32xf32> to vector<8x32xf32>
    %28 = arith.addf %26, %27 : vector<8x32xf32>
    %29 = arith.truncf %28 : vector<8x32xf32> to vector<8x32xbf16>
    %c0_11 = arith.constant 0 : index
    %c0_12 = arith.constant 0 : index
    %30 = vector.load %arg13[%c0_11, %c0_12] : memref<4x32xf32, #tpu.memory_space<vmem>>, vector<4x32xf32>
    %c0_13 = arith.constant 0 : index
    %c0_14 = arith.constant 0 : index
    %31 = vector.load %arg5[%c0_13, %c0_14] : memref<4x8xbf16, #tpu.memory_space<vmem>>, vector<4x8xbf16>
    %cst_15 = arith.constant dense<0.000000e+00> : vector<4x32xf32>
    %32 = tpu.matmul %31, %29, %cst_15 {dimension_numbers = #tpu.dot_dimension_numbers<[1], [0], [0], [1], [0, 0, 1, 1], [], []>} : vector<4x8xbf16>, vector<8x32xbf16>, vector<4x32xf32> -> vector<4x32xf32>
    %33 = arith.addf %30, %32 : vector<4x32xf32>
    %c0_16 = arith.constant 0 : index
    %c0_17 = arith.constant 0 : index
    %34 = vector.load %arg13[%c0_16, %c0_17] : memref<4x32xf32, #tpu.memory_space<vmem>>, vector<4x32xf32>
    tpu.vector_store %arg13[%c0_16, %c0_17], %33 {strides = array<i32>} : memref<4x32xf32, #tpu.memory_space<vmem>>, vector<4x32xf32>,
    %c0_18 = arith.constant 0 : index
    %c0_19 = arith.constant 0 : index
    %35 = vector.load %arg14[%c0_18, %c0_19] : memref<4x32xf32, #tpu.memory_space<vmem>>, vector<4x32xf32>
    %c0_20 = arith.constant 0 : index
    %c0_21 = arith.constant 0 : index
    %36 = vector.load %arg6[%c0_20, %c0_21] : memref<4x8xbf16, #tpu.memory_space<vmem>>, vector<4x8xbf16>
    %cst_22 = arith.constant dense<0.000000e+00> : vector<4x32xf32>
    %37 = tpu.matmul %36, %29, %cst_22 {dimension_numbers = #tpu.dot_dimension_numbers<[1], [0], [0], [1], [0, 0, 1, 1], [], []>} : vector<4x8xbf16>, vector<8x32xbf16>, vector<4x32xf32> -> vector<4x32xf32>
    %38 = arith.addf %35, %37 : vector<4x32xf32>
    %c0_23 = arith.constant 0 : index
    %c0_24 = arith.constant 0 : index
    %39 = vector.load %arg14[%c0_23, %c0_24] : memref<4x32xf32, #tpu.memory_space<vmem>>, vector<4x32xf32>
    tpu.vector_store %arg14[%c0_23, %c0_24], %38 {strides = array<i32>} : memref<4x32xf32, #tpu.memory_space<vmem>>, vector<4x32xf32>,
    %c0_i32_25 = arith.constant 0 : i32
    %40 = arith.cmpi eq, %arg1, %c0_i32_25 : i32
    %41 = arith.extui %40 : i1 to i32
    %c0_i32_26 = arith.constant 0 : i32
    %42 = arith.cmpi ne, %41, %c0_i32_26 : i32
    scf.if %42 {
      %c0_27 = arith.constant 0 : index
      %c0_28 = arith.constant 0 : index
      %43 = vector.load %arg13[%c0_27, %c0_28] : memref<4x32xf32, #tpu.memory_space<vmem>>, vector<4x32xf32>
      %44 = arith.truncf %43 : vector<4x32xf32> to vector<4x32xbf16>
      %c0_29 = arith.constant 0 : index
      %c0_30 = arith.constant 0 : index
      %45 = vector.load %arg7[%c0_29, %c0_30] : memref<32x32xbf16, #tpu.memory_space<vmem>>, vector<32x32xbf16>
      %cst_31 = arith.constant dense<0.000000e+00> : vector<4x32xf32>
      %46 = tpu.matmul %44, %45, %cst_31 {dimension_numbers = #tpu.dot_dimension_numbers<[1], [0], [0], [1], [0, 0, 1, 1], [], []>} : vector<4x32xbf16>, vector<32x32xbf16>, vector<4x32xf32> -> vector<4x32xf32>
      %c0_32 = arith.constant 0 : index
      %c0_33 = arith.constant 0 : index
      %47 = vector.load %arg9[%c0_32, %c0_33] : memref<4x32xf32, #tpu.memory_space<vmem>>, vector<4x32xf32>
      %48 = arith.addf %46, %47 : vector<4x32xf32>
      %49 = arith.truncf %48 : vector<4x32xf32> to vector<4x32xbf16>
      %c0_34 = arith.constant 0 : index
      %c0_35 = arith.constant 0 : index
      %c0_36 = arith.constant 0 : index
      %50 = vector.load %arg11[%c0_34, %c0_35, %c0_36] : memref<1x4x32xbf16, #tpu.memory_space<vmem>>, vector<1x4x32xbf16>
      %51 = vector.shape_cast %50 : vector<1x4x32xbf16> to vector<4x32xbf16>
      %52 = vector.shape_cast %49 : vector<4x32xbf16> to vector<1x4x32xbf16>
      tpu.vector_store %arg11[%c0_34, %c0_35, %c0_36], %52 {strides = array<i32>} : memref<1x4x32xbf16, #tpu.memory_space<vmem>>, vector<1x4x32xbf16>,
      %c0_37 = arith.constant 0 : index
      %c0_38 = arith.constant 0 : index
      %53 = vector.load %arg14[%c0_37, %c0_38] : memref<4x32xf32, #tpu.memory_space<vmem>>, vector<4x32xf32>
      %54 = arith.truncf %53 : vector<4x32xf32> to vector<4x32xbf16>
      %c0_39 = arith.constant 0 : index
      %c0_40 = arith.constant 0 : index
      %55 = vector.load %arg8[%c0_39, %c0_40] : memref<32x32xbf16, #tpu.memory_space<vmem>>, vector<32x32xbf16>
      %cst_41 = arith.constant dense<0.000000e+00> : vector<4x32xf32>
      %56 = tpu.matmul %54, %55, %cst_41 {dimension_numbers = #tpu.dot_dimension_numbers<[1], [0], [0], [1], [0, 0, 1, 1], [], []>} : vector<4x32xbf16>, vector<32x32xbf16>, vector<4x32xf32> -> vector<4x32xf32>
      %c0_42 = arith.constant 0 : index
      %c0_43 = arith.constant 0 : index
      %57 = vector.load %arg10[%c0_42, %c0_43] : memref<4x32xf32, #tpu.memory_space<vmem>>, vector<4x32xf32>
      %58 = arith.addf %56, %57 : vector<4x32xf32>
      %59 = arith.truncf %58 : vector<4x32xf32> to vector<4x32xbf16>
      %c0_44 = arith.constant 0 : index
      %c0_45 = arith.constant 0 : index
      %c0_46 = arith.constant 0 : index
      %60 = vector.load %arg12[%c0_44, %c0_45, %c0_46] : memref<1x4x32xbf16, #tpu.memory_space<vmem>>, vector<1x4x32xbf16>
      %61 = vector.shape_cast %60 : vector<1x4x32xbf16> to vector<4x32xbf16>
      %62 = vector.shape_cast %59 : vector<4x32xbf16> to vector<1x4x32xbf16>
      tpu.vector_store %arg12[%c0_44, %c0_45, %c0_46], %62 {strides = array<i32>} : memref<1x4x32xbf16, #tpu.memory_space<vmem>>, vector<1x4x32xbf16>,
    } else {
    }
    return
  }
  func.func @transform_0(%arg0: i32, %arg1: i32) -> (i32, i32, i32) {
    %c0_i32 = arith.constant 0 : i32
    %c0_i32_0 = arith.constant 0 : i32
    return %arg0, %arg1, %c0_i32 : i32, i32, i32
  }
  func.func @transform_1(%arg0: i32, %arg1: i32) -> (i32, i32) {
    %c0_i32 = arith.constant 0 : i32
    %c0_i32_0 = arith.constant 0 : i32
    %c0_i32_1 = arith.constant 0 : i32
    return %c0_i32, %c0_i32_0 : i32, i32
  }
  func.func @transform_2(%arg0: i32, %arg1: i32) -> (i32, i32) {
    %c0_i32 = arith.constant 0 : i32
    %c0_i32_0 = arith.constant 0 : i32
    %c0_i32_1 = arith.constant 0 : i32
    return %c0_i32, %c0_i32_0 : i32, i32
  }
  func.func @transform_3(%arg0: i32, %arg1: i32) -> (i32, i32) {
    %c0_i32 = arith.constant 0 : i32
    %c0_i32_0 = arith.constant 0 : i32
    return %c0_i32, %arg1 : i32, i32
  }
  func.func @transform_4(%arg0: i32, %arg1: i32) -> (i32, i32) {
    %c0_i32 = arith.constant 0 : i32
    %c0_i32_0 = arith.constant 0 : i32
    return %c0_i32, %arg1 : i32, i32
  }
  func.func @transform_5(%arg0: i32, %arg1: i32) -> (i32, i32) {
    %c0_i32 = arith.constant 0 : i32
    %c0_i32_0 = arith.constant 0 : i32
    %c0_i32_1 = arith.constant 0 : i32
    return %c0_i32, %c0_i32_0 : i32, i32
  }
  func.func @transform_6(%arg0: i32, %arg1: i32) -> (i32, i32) {
    %c0_i32 = arith.constant 0 : i32
    %c0_i32_0 = arith.constant 0 : i32
    %c0_i32_1 = arith.constant 0 : i32
    return %c0_i32, %c0_i32_0 : i32, i32
  }
  func.func @transform_7(%arg0: i32, %arg1: i32) -> (i32, i32) {
    %c0_i32 = arith.constant 0 : i32
    %c0_i32_0 = arith.constant 0 : i32
    %c0_i32_1 = arith.constant 0 : i32
    return %c0_i32, %c0_i32_0 : i32, i32
  }
  func.func @transform_8(%arg0: i32, %arg1: i32) -> (i32, i32) {
    %c0_i32 = arith.constant 0 : i32
    %c0_i32_0 = arith.constant 0 : i32
    %c0_i32_1 = arith.constant 0 : i32
    return %c0_i32, %c0_i32_0 : i32, i32
  }
  func.func @transform_9(%arg0: i32, %arg1: i32) -> (i32, i32, i32) {
    %c0_i32 = arith.constant 0 : i32
    %c0_i32_0 = arith.constant 0 : i32
    %c0_i32_1 = arith.constant 0 : i32
    return %arg0, %c0_i32, %c0_i32_0 : i32, i32, i32
  }
  func.func @transform_10(%arg0: i32, %arg1: i32) -> (i32, i32, i32) {
    %c0_i32 = arith.constant 0 : i32
    %c0_i32_0 = arith.constant 0 : i32
    %c0_i32_1 = arith.constant 0 : i32
    return %arg0, %c0_i32, %c0_i32_0 : i32, i32, i32
  }
}

module attributes {stable_mosaic.version = 11 : i64} {
  func.func @kv_proj_kernel(%arg0: i32, %arg1: i32, %arg2: memref<1x8x32xf32, #tpu.memory_space<vmem>>, %arg3: memref<1x32xf32, #tpu.memory_space<vmem>>, %arg4: memref<1x32xf32, #tpu.memory_space<vmem>>, %arg5: memref<4x8xbf16, #tpu.memory_space<vmem>>, %arg6: memref<4x8xbf16, #tpu.memory_space<vmem>>, %arg7: memref<32x32xbf16, #tpu.memory_space<vmem>>, %arg8: memref<32x32xbf16, #tpu.memory_space<vmem>>, %arg9: memref<4x32xf32, #tpu.memory_space<vmem>>, %arg10: memref<4x32xf32, #tpu.memory_space<vmem>>, %arg11: memref<1x4x32xbf16, #tpu.memory_space<vmem>>, %arg12: memref<1x4x32xbf16, #tpu.memory_space<vmem>>, %arg13: memref<4x32xf32, #tpu.memory_space<vmem>>, %arg14: memref<4x32xf32, #tpu.memory_space<vmem>>) attributes {dimension_semantics = [#tpu.dimension_semantics<parallel>, #tpu.dimension_semantics<arbitrary>], iteration_bounds = array<i64: 2, 1>, scalar_prefetch = 0 : i64, scratch_operands = 2 : i64, tpu.core_type = #tpu.core_type<tc>, window_params = [{transform_indices = @transform_0, window_bounds = array<i64: 1, 8, 32>}, {pipeline_mode = #tpu.pipeline_mode<synchronous>, transform_indices = @transform_1, window_bounds = array<i64: 1, 32>}, {pipeline_mode = #tpu.pipeline_mode<synchronous>, transform_indices = @transform_2, window_bounds = array<i64: 1, 32>}, {transform_indices = @transform_3, window_bounds = array<i64: 4, 8>}, {transform_indices = @transform_4, window_bounds = array<i64: 4, 8>}, {pipeline_mode = #tpu.pipeline_mode<synchronous>, transform_indices = @transform_5, window_bounds = array<i64: 32, 32>}, {pipeline_mode = #tpu.pipeline_mode<synchronous>, transform_indices = @transform_6, window_bounds = array<i64: 32, 32>}, {pipeline_mode = #tpu.pipeline_mode<synchronous>, transform_indices = @transform_7, window_bounds = array<i64: 4, 32>}, {pipeline_mode = #tpu.pipeline_mode<synchronous>, transform_indices = @transform_8, window_bounds = array<i64: 4, 32>}, {transform_indices = @transform_9, window_bounds = array<i64: 1, 4, 32>}, {transform_indices = @transform_10, window_bounds = array<i64: 1, 4, 32>}]} {
    %c0_i32 = arith.constant 0 : i32
    %0 = arith.cmpi eq, %arg1, %c0_i32 : i32
    %1 = arith.extui %0 : i1 to i32
    %c0_i32_0 = arith.constant 0 : i32
    %2 = arith.cmpi ne, %1, %c0_i32_0 : i32
    scf.if %2 {
      %cst_27 = arith.constant 0.000000e+00 : f32
      %43 = vector.broadcast %cst_27 : f32 to vector<4x32xf32>
      %c0_28 = arith.constant 0 : index
      %c0_29 = arith.constant 0 : index
      %44 = vector.load %arg13[%c0_28, %c0_29] : memref<4x32xf32, #tpu.memory_space<vmem>>, vector<4x32xf32>
      tpu.vector_store %arg13[%c0_28, %c0_29], %43 {strides = array<i32>} : memref<4x32xf32, #tpu.memory_space<vmem>>, vector<4x32xf32>,
      %cst_30 = arith.constant 0.000000e+00 : f32
      %45 = vector.broadcast %cst_30 : f32 to vector<4x32xf32>
      %c0_31 = arith.constant 0 : index
      %c0_32 = arith.constant 0 : index
      %46 = vector.load %arg14[%c0_31, %c0_32] : memref<4x32xf32, #tpu.memory_space<vmem>>, vector<4x32xf32>
      tpu.vector_store %arg14[%c0_31, %c0_32], %45 {strides = array<i32>} : memref<4x32xf32, #tpu.memory_space<vmem>>, vector<4x32xf32>,
    } else {
    }
    %c0 = arith.constant 0 : index
    %c0_1 = arith.constant 0 : index
    %c0_2 = arith.constant 0 : index
    %3 = vector.load %arg2[%c0, %c0_1, %c0_2] : memref<1x8x32xf32, #tpu.memory_space<vmem>>, vector<1x8x32xf32>
    %4 = vector.shape_cast %3 : vector<1x8x32xf32> to vector<8x32xf32>
    %c0_3 = arith.constant 0 : index
    %c0_4 = arith.constant 0 : index
    %5 = vector.load %arg3[%c0_3, %c0_4] : memref<1x32xf32, #tpu.memory_space<vmem>>, vector<1x32xf32>
    %c0_5 = arith.constant 0 : index
    %c0_6 = arith.constant 0 : index
    %6 = vector.load %arg4[%c0_5, %c0_6] : memref<1x32xf32, #tpu.memory_space<vmem>>, vector<1x32xf32>
    %cst = arith.constant dense<0.000000e+00> : vector<8xf32>
    %7 = vector.multi_reduction <add>, %4, %cst [1] : vector<8x32xf32> to vector<8xf32>
    %8 = vector.shape_cast %7 : vector<8xf32> to vector<8x1xf32>
    %cst_7 = arith.constant 3.200000e+01 : f32
    %9 = vector.broadcast %cst_7 : f32 to vector<8x1xf32>
    %10 = arith.divf %8, %9 : vector<8x1xf32>
    %11 = vector.broadcast %10 : vector<8x1xf32> to vector<8x32xf32>
    %12 = arith.subf %4, %11 : vector<8x32xf32>
    %13 = arith.mulf %12, %12 : vector<8x32xf32>
    %cst_8 = arith.constant dense<0.000000e+00> : vector<8xf32>
    %14 = vector.multi_reduction <add>, %13, %cst_8 [1] : vector<8x32xf32> to vector<8xf32>
    %15 = vector.shape_cast %14 : vector<8xf32> to vector<8x1xf32>
    %cst_9 = arith.constant 3.200000e+01 : f32
    %16 = vector.broadcast %cst_9 : f32 to vector<8x1xf32>
    %17 = arith.divf %15, %16 : vector<8x1xf32>
    %18 = vector.broadcast %10 : vector<8x1xf32> to vector<8x32xf32>
    %19 = arith.subf %4, %18 : vector<8x32xf32>
    %cst_10 = arith.constant 9.99999974E-6 : f32
    %20 = vector.broadcast %cst_10 : f32 to vector<8x1xf32>
    %21 = arith.addf %17, %20 : vector<8x1xf32>
    %22 = math.rsqrt %21 : vector<8x1xf32>
    %23 = vector.broadcast %22 : vector<8x1xf32> to vector<8x32xf32>
    %24 = arith.mulf %19, %23 : vector<8x32xf32>
    %25 = vector.broadcast %5 : vector<1x32xf32> to vector<8x32xf32>
    %26 = arith.mulf %24, %25 : vector<8x32xf32>
    %27 = vector.broadcast %6 : vector<1x32xf32> to vector<8x32xf32>
    %28 = arith.addf %26, %27 : vector<8x32xf32>
    %29 = arith.truncf %28 : vector<8x32xf32> to vector<8x32xbf16>
    %c0_11 = arith.constant 0 : index
    %c0_12 = arith.constant 0 : index
    %30 = vector.load %arg13[%c0_11, %c0_12] : memref<4x32xf32, #tpu.memory_space<vmem>>, vector<4x32xf32>
    %c0_13 = arith.constant 0 : index
    %c0_14 = arith.constant 0 : index
    %31 = vector.load %arg5[%c0_13, %c0_14] : memref<4x8xbf16, #tpu.memory_space<vmem>>, vector<4x8xbf16>
    %cst_15 = arith.constant dense<0.000000e+00> : vector<4x32xf32>
    %32 = tpu.matmul %31, %29, %cst_15 {dimension_numbers = #tpu.dot_dimension_numbers<[1], [0], [0], [1], [0, 0, 1, 1], [], []>} : vector<4x8xbf16>, vector<8x32xbf16>, vector<4x32xf32> -> vector<4x32xf32>
    %33 = arith.addf %30, %32 : vector<4x32xf32>
    %c0_16 = arith.constant 0 : index
    %c0_17 = arith.constant 0 : index
    %34 = vector.load %arg13[%c0_16, %c0_17] : memref<4x32xf32, #tpu.memory_space<vmem>>, vector<4x32xf32>
    tpu.vector_store %arg13[%c0_16, %c0_17], %33 {strides = array<i32>} : memref<4x32xf32, #tpu.memory_space<vmem>>, vector<4x32xf32>,
    %c0_18 = arith.constant 0 : index
    %c0_19 = arith.constant 0 : index
    %35 = vector.load %arg14[%c0_18, %c0_19] : memref<4x32xf32, #tpu.memory_space<vmem>>, vector<4x32xf32>
    %c0_20 = arith.constant 0 : index
    %c0_21 = arith.constant 0 : index
    %36 = vector.load %arg6[%c0_20, %c0_21] : memref<4x8xbf16, #tpu.memory_space<vmem>>, vector<4x8xbf16>
    %cst_22 = arith.constant dense<0.000000e+00> : vector<4x32xf32>
    %37 = tpu.matmul %36, %29, %cst_22 {dimension_numbers = #tpu.dot_dimension_numbers<[1], [0], [0], [1], [0, 0, 1, 1], [], []>} : vector<4x8xbf16>, vector<8x32xbf16>, vector<4x32xf32> -> vector<4x32xf32>
    %38 = arith.addf %35, %37 : vector<4x32xf32>
    %c0_23 = arith.constant 0 : index
    %c0_24 = arith.constant 0 : index
    %39 = vector.load %arg14[%c0_23, %c0_24] : memref<4x32xf32, #tpu.memory_space<vmem>>, vector<4x32xf32>
    tpu.vector_store %arg14[%c0_23, %c0_24], %38 {strides = array<i32>} : memref<4x32xf32, #tpu.memory_space<vmem>>, vector<4x32xf32>,
    %c0_i32_25 = arith.constant 0 : i32
    %40 = arith.cmpi eq, %arg1, %c0_i32_25 : i32
    %41 = arith.extui %40 : i1 to i32
    %c0_i32_26 = arith.constant 0 : i32
    %42 = arith.cmpi ne, %41, %c0_i32_26 : i32
    scf.if %42 {
      %c0_27 = arith.constant 0 : index
      %c0_28 = arith.constant 0 : index
      %43 = vector.load %arg13[%c0_27, %c0_28] : memref<4x32xf32, #tpu.memory_space<vmem>>, vector<4x32xf32>
      %44 = arith.truncf %43 : vector<4x32xf32> to vector<4x32xbf16>
      %c0_29 = arith.constant 0 : index
      %c0_30 = arith.constant 0 : index
      %45 = vector.load %arg7[%c0_29, %c0_30] : memref<32x32xbf16, #tpu.memory_space<vmem>>, vector<32x32xbf16>
      %cst_31 = arith.constant dense<0.000000e+00> : vector<4x32xf32>
      %46 = tpu.matmul %44, %45, %cst_31 {dimension_numbers = #tpu.dot_dimension_numbers<[1], [0], [0], [1], [0, 0, 1, 1], [], []>} : vector<4x32xbf16>, vector<32x32xbf16>, vector<4x32xf32> -> vector<4x32xf32>
      %c0_32 = arith.constant 0 : index
      %c0_33 = arith.constant 0 : index
      %47 = vector.load %arg9[%c0_32, %c0_33] : memref<4x32xf32, #tpu.memory_space<vmem>>, vector<4x32xf32>
      %48 = arith.addf %46, %47 : vector<4x32xf32>
      %49 = arith.truncf %48 : vector<4x32xf32> to vector<4x32xbf16>
      %c0_34 = arith.constant 0 : index
      %c0_35 = arith.constant 0 : index
      %c0_36 = arith.constant 0 : index
      %50 = vector.load %arg11[%c0_34, %c0_35, %c0_36] : memref<1x4x32xbf16, #tpu.memory_space<vmem>>, vector<1x4x32xbf16>
      %51 = vector.shape_cast %50 : vector<1x4x32xbf16> to vector<4x32xbf16>
      %52 = vector.shape_cast %49 : vector<4x32xbf16> to vector<1x4x32xbf16>
      tpu.vector_store %arg11[%c0_34, %c0_35, %c0_36], %52 {strides = array<i32>} : memref<1x4x32xbf16, #tpu.memory_space<vmem>>, vector<1x4x32xbf16>,
      %c0_37 = arith.constant 0 : index
      %c0_38 = arith.constant 0 : index
      %53 = vector.load %arg14[%c0_37, %c0_38] : memref<4x32xf32, #tpu.memory_space<vmem>>, vector<4x32xf32>
      %54 = arith.truncf %53 : vector<4x32xf32> to vector<4x32xbf16>
      %c0_39 = arith.constant 0 : index
      %c0_40 = arith.constant 0 : index
      %55 = vector.load %arg8[%c0_39, %c0_40] : memref<32x32xbf16, #tpu.memory_space<vmem>>, vector<32x32xbf16>
      %cst_41 = arith.constant dense<0.000000e+00> : vector<4x32xf32>
      %56 = tpu.matmul %54, %55, %cst_41 {dimension_numbers = #tpu.dot_dimension_numbers<[1], [0], [0], [1], [0, 0, 1, 1], [], []>} : vector<4x32xbf16>, vector<32x32xbf16>, vector<4x32xf32> -> vector<4x32xf32>
      %c0_42 = arith.constant 0 : index
      %c0_43 = arith.constant 0 : index
      %57 = vector.load %arg10[%c0_42, %c0_43] : memref<4x32xf32, #tpu.memory_space<vmem>>, vector<4x32xf32>
      %58 = arith.addf %56, %57 : vector<4x32xf32>
      %59 = arith.truncf %58 : vector<4x32xf32> to vector<4x32xbf16>
      %c0_44 = arith.constant 0 : index
      %c0_45 = arith.constant 0 : index
      %c0_46 = arith.constant 0 : index
      %60 = vector.load %arg12[%c0_44, %c0_45, %c0_46] : memref<1x4x32xbf16, #tpu.memory_space<vmem>>, vector<1x4x32xbf16>
      %61 = vector.shape_cast %60 : vector<1x4x32xbf16> to vector<4x32xbf16>
      %62 = vector.shape_cast %59 : vector<4x32xbf16> to vector<1x4x32xbf16>
      tpu.vector_store %arg12[%c0_44, %c0_45, %c0_46], %62 {strides = array<i32>} : memref<1x4x32xbf16, #tpu.memory_space<vmem>>, vector<1x4x32xbf16>,
    } else {
    }
    return
  }
  func.func @transform_0(%arg0: i32, %arg1: i32) -> (i32, i32, i32) {
    %c0_i32 = arith.constant 0 : i32
    %c0_i32_0 = arith.constant 0 : i32
    return %arg0, %arg1, %c0_i32 : i32, i32, i32
  }
  func.func @transform_1(%arg0: i32, %arg1: i32) -> (i32, i32) {
    %c0_i32 = arith.constant 0 : i32
    %c0_i32_0 = arith.constant 0 : i32
    %c0_i32_1 = arith.constant 0 : i32
    return %c0_i32, %c0_i32_0 : i32, i32
  }
  func.func @transform_2(%arg0: i32, %arg1: i32) -> (i32, i32) {
    %c0_i32 = arith.constant 0 : i32
    %c0_i32_0 = arith.constant 0 : i32
    %c0_i32_1 = arith.constant 0 : i32
    return %c0_i32, %c0_i32_0 : i32, i32
  }
  func.func @transform_3(%arg0: i32, %arg1: i32) -> (i32, i32) {
    %c0_i32 = arith.constant 0 : i32
    %c0_i32_0 = arith.constant 0 : i32
    return %c0_i32, %arg1 : i32, i32
  }
  func.func @transform_4(%arg0: i32, %arg1: i32) -> (i32, i32) {
    %c0_i32 = arith.constant 0 : i32
    %c0_i32_0 = arith.constant 0 : i32
    return %c0_i32, %arg1 : i32, i32
  }
  func.func @transform_5(%arg0: i32, %arg1: i32) -> (i32, i32) {
    %c0_i32 = arith.constant 0 : i32
    %c0_i32_0 = arith.constant 0 : i32
    %c0_i32_1 = arith.constant 0 : i32
    return %c0_i32, %c0_i32_0 : i32, i32
  }
  func.func @transform_6(%arg0: i32, %arg1: i32) -> (i32, i32) {
    %c0_i32 = arith.constant 0 : i32
    %c0_i32_0 = arith.constant 0 : i32
    %c0_i32_1 = arith.constant 0 : i32
    return %c0_i32, %c0_i32_0 : i32, i32
  }
  func.func @transform_7(%arg0: i32, %arg1: i32) -> (i32, i32) {
    %c0_i32 = arith.constant 0 : i32
    %c0_i32_0 = arith.constant 0 : i32
    %c0_i32_1 = arith.constant 0 : i32
    return %c0_i32, %c0_i32_0 : i32, i32
  }
  func.func @transform_8(%arg0: i32, %arg1: i32) -> (i32, i32) {
    %c0_i32 = arith.constant 0 : i32
    %c0_i32_0 = arith.constant 0 : i32
    %c0_i32_1 = arith.constant 0 : i32
    return %c0_i32, %c0_i32_0 : i32, i32
  }
  func.func @transform_9(%arg0: i32, %arg1: i32) -> (i32, i32, i32) {
    %c0_i32 = arith.constant 0 : i32
    %c0_i32_0 = arith.constant 0 : i32
    %c0_i32_1 = arith.constant 0 : i32
    return %arg0, %c0_i32, %c0_i32_0 : i32, i32, i32
  }
  func.func @transform_10(%arg0: i32, %arg1: i32) -> (i32, i32, i32) {
    %c0_i32 = arith.constant 0 : i32
    %c0_i32_0 = arith.constant 0 : i32
    %c0_i32_1 = arith.constant 0 : i32
    return %arg0, %c0_i32, %c0_i32_0 : i32, i32, i32
  }
}

module attributes {stable_mosaic.version = 11 : i64} {
  func.func @kv_proj_kernel(%arg0: i32, %arg1: i32, %arg2: memref<1x8x32xf32, #tpu.memory_space<vmem>>, %arg3: memref<1x32xf32, #tpu.memory_space<vmem>>, %arg4: memref<1x32xf32, #tpu.memory_space<vmem>>, %arg5: memref<4x8xbf16, #tpu.memory_space<vmem>>, %arg6: memref<4x8xbf16, #tpu.memory_space<vmem>>, %arg7: memref<32x32xbf16, #tpu.memory_space<vmem>>, %arg8: memref<32x32xbf16, #tpu.memory_space<vmem>>, %arg9: memref<4x32xf32, #tpu.memory_space<vmem>>, %arg10: memref<4x32xf32, #tpu.memory_space<vmem>>, %arg11: memref<1x4x32xbf16, #tpu.memory_space<vmem>>, %arg12: memref<1x4x32xbf16, #tpu.memory_space<vmem>>, %arg13: memref<4x32xf32, #tpu.memory_space<vmem>>, %arg14: memref<4x32xf32, #tpu.memory_space<vmem>>) attributes {dimension_semantics = [#tpu.dimension_semantics<parallel>, #tpu.dimension_semantics<arbitrary>], iteration_bounds = array<i64: 2, 1>, scalar_prefetch = 0 : i64, scratch_operands = 2 : i64, tpu.core_type = #tpu.core_type<tc>, window_params = [{transform_indices = @transform_0, window_bounds = array<i64: 1, 8, 32>}, {pipeline_mode = #tpu.pipeline_mode<synchronous>, transform_indices = @transform_1, window_bounds = array<i64: 1, 32>}, {pipeline_mode = #tpu.pipeline_mode<synchronous>, transform_indices = @transform_2, window_bounds = array<i64: 1, 32>}, {transform_indices = @transform_3, window_bounds = array<i64: 4, 8>}, {transform_indices = @transform_4, window_bounds = array<i64: 4, 8>}, {pipeline_mode = #tpu.pipeline_mode<synchronous>, transform_indices = @transform_5, window_bounds = array<i64: 32, 32>}, {pipeline_mode = #tpu.pipeline_mode<synchronous>, transform_indices = @transform_6, window_bounds = array<i64: 32, 32>}, {pipeline_mode = #tpu.pipeline_mode<synchronous>, transform_indices = @transform_7, window_bounds = array<i64: 4, 32>}, {pipeline_mode = #tpu.pipeline_mode<synchronous>, transform_indices = @transform_8, window_bounds = array<i64: 4, 32>}, {transform_indices = @transform_9, window_bounds = array<i64: 1, 4, 32>}, {transform_indices = @transform_10, window_bounds = array<i64: 1, 4, 32>}]} {
    %c0_i32 = arith.constant 0 : i32
    %0 = arith.cmpi eq, %arg1, %c0_i32 : i32
    %1 = arith.extui %0 : i1 to i32
    %c0_i32_0 = arith.constant 0 : i32
    %2 = arith.cmpi ne, %1, %c0_i32_0 : i32
    scf.if %2 {
      %cst_27 = arith.constant 0.000000e+00 : f32
      %43 = vector.broadcast %cst_27 : f32 to vector<4x32xf32>
      %c0_28 = arith.constant 0 : index
      %c0_29 = arith.constant 0 : index
      %44 = vector.load %arg13[%c0_28, %c0_29] : memref<4x32xf32, #tpu.memory_space<vmem>>, vector<4x32xf32>
      tpu.vector_store %arg13[%c0_28, %c0_29], %43 {strides = array<i32>} : memref<4x32xf32, #tpu.memory_space<vmem>>, vector<4x32xf32>,
      %cst_30 = arith.constant 0.000000e+00 : f32
      %45 = vector.broadcast %cst_30 : f32 to vector<4x32xf32>
      %c0_31 = arith.constant 0 : index
      %c0_32 = arith.constant 0 : index
      %46 = vector.load %arg14[%c0_31, %c0_32] : memref<4x32xf32, #tpu.memory_space<vmem>>, vector<4x32xf32>
      tpu.vector_store %arg14[%c0_31, %c0_32], %45 {strides = array<i32>} : memref<4x32xf32, #tpu.memory_space<vmem>>, vector<4x32xf32>,
    } else {
    }
    %c0 = arith.constant 0 : index
    %c0_1 = arith.constant 0 : index
    %c0_2 = arith.constant 0 : index
    %3 = vector.load %arg2[%c0, %c0_1, %c0_2] : memref<1x8x32xf32, #tpu.memory_space<vmem>>, vector<1x8x32xf32>
    %4 = vector.shape_cast %3 : vector<1x8x32xf32> to vector<8x32xf32>
    %c0_3 = arith.constant 0 : index
    %c0_4 = arith.constant 0 : index
    %5 = vector.load %arg3[%c0_3, %c0_4] : memref<1x32xf32, #tpu.memory_space<vmem>>, vector<1x32xf32>
    %c0_5 = arith.constant 0 : index
    %c0_6 = arith.constant 0 : index
    %6 = vector.load %arg4[%c0_5, %c0_6] : memref<1x32xf32, #tpu.memory_space<vmem>>, vector<1x32xf32>
    %cst = arith.constant dense<0.000000e+00> : vector<8xf32>
    %7 = vector.multi_reduction <add>, %4, %cst [1] : vector<8x32xf32> to vector<8xf32>
    %8 = vector.shape_cast %7 : vector<8xf32> to vector<8x1xf32>
    %cst_7 = arith.constant 3.200000e+01 : f32
    %9 = vector.broadcast %cst_7 : f32 to vector<8x1xf32>
    %10 = arith.divf %8, %9 : vector<8x1xf32>
    %11 = vector.broadcast %10 : vector<8x1xf32> to vector<8x32xf32>
    %12 = arith.subf %4, %11 : vector<8x32xf32>
    %13 = arith.mulf %12, %12 : vector<8x32xf32>
    %cst_8 = arith.constant dense<0.000000e+00> : vector<8xf32>
    %14 = vector.multi_reduction <add>, %13, %cst_8 [1] : vector<8x32xf32> to vector<8xf32>
    %15 = vector.shape_cast %14 : vector<8xf32> to vector<8x1xf32>
    %cst_9 = arith.constant 3.200000e+01 : f32
    %16 = vector.broadcast %cst_9 : f32 to vector<8x1xf32>
    %17 = arith.divf %15, %16 : vector<8x1xf32>
    %18 = vector.broadcast %10 : vector<8x1xf32> to vector<8x32xf32>
    %19 = arith.subf %4, %18 : vector<8x32xf32>
    %cst_10 = arith.constant 9.99999974E-6 : f32
    %20 = vector.broadcast %cst_10 : f32 to vector<8x1xf32>
    %21 = arith.addf %17, %20 : vector<8x1xf32>
    %22 = math.rsqrt %21 : vector<8x1xf32>
    %23 = vector.broadcast %22 : vector<8x1xf32> to vector<8x32xf32>
    %24 = arith.mulf %19, %23 : vector<8x32xf32>
    %25 = vector.broadcast %5 : vector<1x32xf32> to vector<8x32xf32>
    %26 = arith.mulf %24, %25 : vector<8x32xf32>
    %27 = vector.broadcast %6 : vector<1x32xf32> to vector<8x32xf32>
    %28 = arith.addf %26, %27 : vector<8x32xf32>
    %29 = arith.truncf %28 : vector<8x32xf32> to vector<8x32xbf16>
    %c0_11 = arith.constant 0 : index
    %c0_12 = arith.constant 0 : index
    %30 = vector.load %arg13[%c0_11, %c0_12] : memref<4x32xf32, #tpu.memory_space<vmem>>, vector<4x32xf32>
    %c0_13 = arith.constant 0 : index
    %c0_14 = arith.constant 0 : index
    %31 = vector.load %arg5[%c0_13, %c0_14] : memref<4x8xbf16, #tpu.memory_space<vmem>>, vector<4x8xbf16>
    %cst_15 = arith.constant dense<0.000000e+00> : vector<4x32xf32>
    %32 = tpu.matmul %31, %29, %cst_15 {dimension_numbers = #tpu.dot_dimension_numbers<[1], [0], [0], [1], [0, 0, 1, 1], [], []>} : vector<4x8xbf16>, vector<8x32xbf16>, vector<4x32xf32> -> vector<4x32xf32>
    %33 = arith.addf %30, %32 : vector<4x32xf32>
    %c0_16 = arith.constant 0 : index
    %c0_17 = arith.constant 0 : index
    %34 = vector.load %arg13[%c0_16, %c0_17] : memref<4x32xf32, #tpu.memory_space<vmem>>, vector<4x32xf32>
    tpu.vector_store %arg13[%c0_16, %c0_17], %33 {strides = array<i32>} : memref<4x32xf32, #tpu.memory_space<vmem>>, vector<4x32xf32>,
    %c0_18 = arith.constant 0 : index
    %c0_19 = arith.constant 0 : index
    %35 = vector.load %arg14[%c0_18, %c0_19] : memref<4x32xf32, #tpu.memory_space<vmem>>, vector<4x32xf32>
    %c0_20 = arith.constant 0 : index
    %c0_21 = arith.constant 0 : index
    %36 = vector.load %arg6[%c0_20, %c0_21] : memref<4x8xbf16, #tpu.memory_space<vmem>>, vector<4x8xbf16>
    %cst_22 = arith.constant dense<0.000000e+00> : vector<4x32xf32>
    %37 = tpu.matmul %36, %29, %cst_22 {dimension_numbers = #tpu.dot_dimension_numbers<[1], [0], [0], [1], [0, 0, 1, 1], [], []>} : vector<4x8xbf16>, vector<8x32xbf16>, vector<4x32xf32> -> vector<4x32xf32>
    %38 = arith.addf %35, %37 : vector<4x32xf32>
    %c0_23 = arith.constant 0 : index
    %c0_24 = arith.constant 0 : index
    %39 = vector.load %arg14[%c0_23, %c0_24] : memref<4x32xf32, #tpu.memory_space<vmem>>, vector<4x32xf32>
    tpu.vector_store %arg14[%c0_23, %c0_24], %38 {strides = array<i32>} : memref<4x32xf32, #tpu.memory_space<vmem>>, vector<4x32xf32>,
    %c0_i32_25 = arith.constant 0 : i32
    %40 = arith.cmpi eq, %arg1, %c0_i32_25 : i32
    %41 = arith.extui %40 : i1 to i32
    %c0_i32_26 = arith.constant 0 : i32
    %42 = arith.cmpi ne, %41, %c0_i32_26 : i32
    scf.if %42 {
      %c0_27 = arith.constant 0 : index
      %c0_28 = arith.constant 0 : index
      %43 = vector.load %arg13[%c0_27, %c0_28] : memref<4x32xf32, #tpu.memory_space<vmem>>, vector<4x32xf32>
      %44 = arith.truncf %43 : vector<4x32xf32> to vector<4x32xbf16>
      %c0_29 = arith.constant 0 : index
      %c0_30 = arith.constant 0 : index
      %45 = vector.load %arg7[%c0_29, %c0_30] : memref<32x32xbf16, #tpu.memory_space<vmem>>, vector<32x32xbf16>
      %cst_31 = arith.constant dense<0.000000e+00> : vector<4x32xf32>
      %46 = tpu.matmul %44, %45, %cst_31 {dimension_numbers = #tpu.dot_dimension_numbers<[1], [0], [0], [1], [0, 0, 1, 1], [], []>} : vector<4x32xbf16>, vector<32x32xbf16>, vector<4x32xf32> -> vector<4x32xf32>
      %c0_32 = arith.constant 0 : index
      %c0_33 = arith.constant 0 : index
      %47 = vector.load %arg9[%c0_32, %c0_33] : memref<4x32xf32, #tpu.memory_space<vmem>>, vector<4x32xf32>
      %48 = arith.addf %46, %47 : vector<4x32xf32>
      %49 = arith.truncf %48 : vector<4x32xf32> to vector<4x32xbf16>
      %c0_34 = arith.constant 0 : index
      %c0_35 = arith.constant 0 : index
      %c0_36 = arith.constant 0 : index
      %50 = vector.load %arg11[%c0_34, %c0_35, %c0_36] : memref<1x4x32xbf16, #tpu.memory_space<vmem>>, vector<1x4x32xbf16>
      %51 = vector.shape_cast %50 : vector<1x4x32xbf16> to vector<4x32xbf16>
      %52 = vector.shape_cast %49 : vector<4x32xbf16> to vector<1x4x32xbf16>
      tpu.vector_store %arg11[%c0_34, %c0_35, %c0_36], %52 {strides = array<i32>} : memref<1x4x32xbf16, #tpu.memory_space<vmem>>, vector<1x4x32xbf16>,
      %c0_37 = arith.constant 0 : index
      %c0_38 = arith.constant 0 : index
      %53 = vector.load %arg14[%c0_37, %c0_38] : memref<4x32xf32, #tpu.memory_space<vmem>>, vector<4x32xf32>
      %54 = arith.truncf %53 : vector<4x32xf32> to vector<4x32xbf16>
      %c0_39 = arith.constant 0 : index
      %c0_40 = arith.constant 0 : index
      %55 = vector.load %arg8[%c0_39, %c0_40] : memref<32x32xbf16, #tpu.memory_space<vmem>>, vector<32x32xbf16>
      %cst_41 = arith.constant dense<0.000000e+00> : vector<4x32xf32>
      %56 = tpu.matmul %54, %55, %cst_41 {dimension_numbers = #tpu.dot_dimension_numbers<[1], [0], [0], [1], [0, 0, 1, 1], [], []>} : vector<4x32xbf16>, vector<32x32xbf16>, vector<4x32xf32> -> vector<4x32xf32>
      %c0_42 = arith.constant 0 : index
      %c0_43 = arith.constant 0 : index
      %57 = vector.load %arg10[%c0_42, %c0_43] : memref<4x32xf32, #tpu.memory_space<vmem>>, vector<4x32xf32>
      %58 = arith.addf %56, %57 : vector<4x32xf32>
      %59 = arith.truncf %58 : vector<4x32xf32> to vector<4x32xbf16>
      %c0_44 = arith.constant 0 : index
      %c0_45 = arith.constant 0 : index
      %c0_46 = arith.constant 0 : index
      %60 = vector.load %arg12[%c0_44, %c0_45, %c0_46] : memref<1x4x32xbf16, #tpu.memory_space<vmem>>, vector<1x4x32xbf16>
      %61 = vector.shape_cast %60 : vector<1x4x32xbf16> to vector<4x32xbf16>
      %62 = vector.shape_cast %59 : vector<4x32xbf16> to vector<1x4x32xbf16>
      tpu.vector_store %arg12[%c0_44, %c0_45, %c0_46], %62 {strides = array<i32>} : memref<1x4x32xbf16, #tpu.memory_space<vmem>>, vector<1x4x32xbf16>,
    } else {
    }
    return
  }
  func.func @transform_0(%arg0: i32, %arg1: i32) -> (i32, i32, i32) {
    %c0_i32 = arith.constant 0 : i32
    %c0_i32_0 = arith.constant 0 : i32
    return %arg0, %arg1, %c0_i32 : i32, i32, i32
  }
  func.func @transform_1(%arg0: i32, %arg1: i32) -> (i32, i32) {
    %c0_i32 = arith.constant 0 : i32
    %c0_i32_0 = arith.constant 0 : i32
    %c0_i32_1 = arith.constant 0 : i32
    return %c0_i32, %c0_i32_0 : i32, i32
  }
  func.func @transform_2(%arg0: i32, %arg1: i32) -> (i32, i32) {
    %c0_i32 = arith.constant 0 : i32
    %c0_i32_0 = arith.constant 0 : i32
    %c0_i32_1 = arith.constant 0 : i32
    return %c0_i32, %c0_i32_0 : i32, i32
  }
  func.func @transform_3(%arg0: i32, %arg1: i32) -> (i32, i32) {
    %c0_i32 = arith.constant 0 : i32
    %c0_i32_0 = arith.constant 0 : i32
    return %c0_i32, %arg1 : i32, i32
  }
  func.func @transform_4(%arg0: i32, %arg1: i32) -> (i32, i32) {
    %c0_i32 = arith.constant 0 : i32
    %c0_i32_0 = arith.constant 0 : i32
    return %c0_i32, %arg1 : i32, i32
  }
  func.func @transform_5(%arg0: i32, %arg1: i32) -> (i32, i32) {
    %c0_i32 = arith.constant 0 : i32
    %c0_i32_0 = arith.constant 0 : i32
    %c0_i32_1 = arith.constant 0 : i32
    return %c0_i32, %c0_i32_0 : i32, i32
  }
  func.func @transform_6(%arg0: i32, %arg1: i32) -> (i32, i32) {
    %c0_i32 = arith.constant 0 : i32
    %c0_i32_0 = arith.constant 0 : i32
    %c0_i32_1 = arith.constant 0 : i32
    return %c0_i32, %c0_i32_0 : i32, i32
  }
  func.func @transform_7(%arg0: i32, %arg1: i32) -> (i32, i32) {
    %c0_i32 = arith.constant 0 : i32
    %c0_i32_0 = arith.constant 0 : i32
    %c0_i32_1 = arith.constant 0 : i32
    return %c0_i32, %c0_i32_0 : i32, i32
  }
  func.func @transform_8(%arg0: i32, %arg1: i32) -> (i32, i32) {
    %c0_i32 = arith.constant 0 : i32
    %c0_i32_0 = arith.constant 0 : i32
    %c0_i32_1 = arith.constant 0 : i32
    return %c0_i32, %c0_i32_0 : i32, i32
  }
  func.func @transform_9(%arg0: i32, %arg1: i32) -> (i32, i32, i32) {
    %c0_i32 = arith.constant 0 : i32
    %c0_i32_0 = arith.constant 0 : i32
    %c0_i32_1 = arith.constant 0 : i32
    return %arg0, %c0_i32, %c0_i32_0 : i32, i32, i32
  }
  func.func @transform_10(%arg0: i32, %arg1: i32) -> (i32, i32, i32) {
    %c0_i32 = arith.constant 0 : i32
    %c0_i32_0 = arith.constant 0 : i32
    %c0_i32_1 = arith.constant 0 : i32
    return %arg0, %c0_i32, %c0_i32_0 : i32, i32, i32
  }
}

</mosaic_0001>

<bundles_post_ra>
// kernel: tpu_custom_call.1
= control target key start
LH: loop header
LB: loop body
LE: loop exit
PB: predicated region body
PF: predicated region fallthrough
CT: control target
= control target key end

     0   :  { %s1777_s0 = inlined_call_operand.hbm [shape: f32[2,8,32], index: 0, kind: input, shape index: {}]   ;;  %s1778_s1 = inlined_call_operand.vmem [shape: f32[1,32], index: 1, kind: input, shape index: {}]   ;;  %s1779_s2 = inlined_call_operand.hbm [shape: f32[1,32], index: 2, kind: input, shape index: {}]   ;;  %s1780_s3 = inlined_call_operand.hbm [shape: bf16[4,8], index: 3, kind: input, shape index: {}]   ;;  %s1781_s4 = inlined_call_operand.hbm [shape: bf16[4,8], index: 4, kind: input, shape index: {}]   ;;  %s1782_s5 = inlined_call_operand.hbm [shape: bf16[32,32], index: 5, kind: input, shape index: {}]   ;;  %s1783_s6 = inlined_call_operand.hbm [shape: bf16[32,32], index: 6, kind: input, shape index: {}]   ;;  %s1784_s7 = inlined_call_operand.vmem [shape: f32[4,32], index: 7, kind: input, shape index: {}]   ;;  %s1785_s8 = inlined_call_operand.vmem [shape: f32[4,32], index: 8, kind: input, shape index: {}]   ;;  %s1786_s9 = inlined_call_operand.hbm [shape: bf16[2,4,32], index: 9, kind: output, shape index: {0}]   ;;  %s1787_s10 = inlined_call_operand.hbm [shape: bf16[2,4,32], index: 10, kind: output, shape index: {1}]  }
   0x1   :  { %1794 = sst [smem:[#allocation26_spill]] %s1779_s2 }
   0x2   :  { %1795 = sst [smem:[#allocation27_spill]] %s1780_s3 }
   0x3   :  { %1796 = sst [smem:[#allocation28_spill]] %s1781_s4 }
   0x4   :  { %1797 = sst [smem:[#allocation29_spill]] %s1782_s5 }
   0x5   :  { %1798 = sst [smem:[#allocation30_spill]] %s1783_s6 }
   0x6   :  { %16 = vsyncpa [#allocation5], 0 }
   0x7   :  { %18 = vsyncpa [#allocation5 + $0x1], 0 }
   0x8   :  { %19 = vsyncpa [#allocation8], 0 }
   0x9   :  { %20 = vsyncpa [#allocation11], 0 }
   0xa   :  { %21 = vsyncpa [#allocation14], 0 }
   0xb   :  { %22 = vsyncpa [#allocation6], 0 }
   0xc   :  { %24 = vsyncpa [#allocation6 + $0x1], 0 }
   0xd   :  { %25 = vsyncpa [#allocation17], 0 }
   0xe   :  { %27 = vsyncpa [#allocation17 + $0x1], 0  ;;  %s1501_s13 = smov 0   ;;  %s1503_s14 = smov 0  }
   0xf   :  { %s1505_s15 = smov 0   ;;  %s1507_s16 = smov 0  }
  0x10   :  { %s1509_s17 = smov 0   ;;  %s1511_s18 = smov 0  }
  0x11 LB: > { %1799 = sst [smem:[#allocation24_spill]] %s1428_s17  ;;  %s1791_s19 = sadd.s32 4294967295, %s1432_s18   ;;  %s1432_s18 = sphi %s1511_s18, %s33_s18   ;;  %s1428_s17 = sphi %s1509_s17, %s1821_s17   ;;  %s1424_s16 = sphi %s1507_s16, %s1820_s16   ;;  %s1420_s15 = sphi %s1505_s15, %s1824_s15   ;;  %s1416_s14 = sphi %s1503_s14, %s1823_s14   ;;  %s1412_s13 = sphi %s1501_s13, %s1822_s13  }
  0x12   : > { %p952_p0 = scmp.ge.s32.totalorder %s1432_s18, 1  ;;  %p1535_p1 = scmp.eq.s32.totalorder %s1791_s19, 0 }
  0x13   : > { %p308_p2 = scmp.lt.s32.totalorder %s1432_s18, 3  ;;  %s1434_s22 = smov [#allocation7]  }
  0x14   : > { %s1800_s20 = scalar_select %p1535_p1, 1, 0 }
  0x15   : > { %p1540_p3 = pnand %p952_p0, %p308_p2  ;;  %s324_s23 = sshll.u32 %s1434_s22, 4  ;;  %s325_s23 = int_to_ptr.vmem [resolvable:$true] %s324_s23 }
  0x16   : > { %s1435_s24 = smov [#allocation10]   ;;  %s1436_s27 = smov [#allocation9]  }
  0x17   : > { %s1801_s21 = scalar_select %p1540_p3, 1, 0 }
  0x18   : > { %p1050_p5 = pneg %p1540_p3  ;;  %s350_s25 = sshll.u32 %s1435_s24, 4  ;;  %s351_s25 = int_to_ptr.vmem [resolvable:$true] %s350_s25 }
  0x19   : > { %s337_s28 = sshll.u32 %s1436_s27, 4  ;;  %s1163_s30 = scalar_lea.vmem %s325_s23, 16  ;;  %s1553_s28 = int_to_ptr.vmem [resolvable:$true] %s337_s28 }
  0x1a   : > { %p1549_p6 = pnand %p1050_p5, %p1535_p1  ;;  %p1164_p8 = scmp.ne.s32.totalorder %s325_s23, %s1163_s30 }
  0x1b   : > { %s1170_s11 = scalar_lea.vmem %s325_s23, 32  ;;  %p1171_p11 = scmp.lt.s32.totalorder %s325_s23, %s325_s23 }
  0x1c   : > { %p1557_p7 = pneg %p1549_p6  ;;  %p1172_p12 = scmp.lt.s32.totalorder %s1170_s11, %s1163_s30 }
  0x1e   : > { %p1166_p9 = pnand %p1164_p8, %p1557_p7  ;;  %p1173_p13 = por %p1172_p12, %p1171_p11 }
  0x20   : > { %p1167_p10 = pneg %p1166_p9 }
  0x22   : > { %p1174_p0 = pnand %p1173_p13, %p1167_p10 }
  0x24   : > { %1177 = shalt.err (!%p1174_p0)
}
  0x25   : > { %s1804_s2 = sld [smem:[#allocation26_spill]]  ;;  %s1189_s24 = scalar_lea.vmem %s351_s25, 32 }
  0x26   : > { %p1190_p2 = scmp.ne.s32.totalorder %s351_s25, %s1189_s24  ;;  %p1197_p8 = scmp.lt.s32.totalorder %s351_s25, %s351_s25 }
  0x27   : > { %p1198_p9 = scmp.lt.s32.totalorder %s1189_s24, %s1189_s24 }
  0x28   : > { %p1192_p5 = pnand %p1190_p2, %p1557_p7 }
  0x29   : > { %p1199_p3 = por %p1198_p9, %p1197_p8 }
  0x2a   : > { %p1193_p4 = pneg %p1192_p5 }
  0x2b   : > { %1053 = dma.hbm_to_vmem [thread:$0]  (!%p1549_p6), %s1804_s2, 16, %s325_s23, [#allocation8]  }
  0x2c   : > { %p1200_p1 = pnand %p1199_p3, %p1193_p4 }
  0x2e   : > { %1203 = shalt.err (!%p1200_p1)
}
  0x2f   : > { %s1805_s4 = sld [smem:[#allocation28_spill]]  ;;  %s1215_s23 = scalar_lea.vmem %s1553_s28, 32 }
  0x30   : > { %p1216_p10 = scmp.ne.s32.totalorder %s1553_s28, %s1215_s23  ;;  %p1223_p13 = scmp.lt.s32.totalorder %s1553_s28, %s1553_s28 }
  0x31   : > { %p1224_p0 = scmp.lt.s32.totalorder %s1215_s23, %s1215_s23 }
  0x32   : > { %p1218_p11 = pnand %p1216_p10, %p1557_p7 }
  0x33   : > { %p1225_p3 = por %p1224_p0, %p1223_p13 }
  0x34   : > { %p1219_p12 = pneg %p1218_p11 }
  0x35   : > { %1059 = dma.hbm_to_vmem [thread:$0]  (!%p1549_p6), %s1805_s4, 32, %s351_s25, [#allocation11]  }
  0x36   : > { %p1226_p1 = pnand %p1225_p3, %p1219_p12 }
  0x38   : > { %1229 = shalt.err (!%p1226_p1)
}
  0x39   : > { %s1806_s3 = sld [smem:[#allocation27_spill]]  ;;  %s1437_s25 = smov [#allocation12]  }
  0x3a   : > { %s360_s22 = sshll.u32 %s1437_s25, 4  ;;  %s361_s22 = int_to_ptr.vmem [resolvable:$true] %s360_s22 }
  0x3b   : > { %s1241_s24 = scalar_lea.vmem %s361_s22, 256  ;;  %p1249_p8 = scmp.lt.s32.totalorder %s361_s22, %s361_s22 }
  0x3c   : > { %p1242_p4 = scmp.ne.s32.totalorder %s361_s22, %s1241_s24  ;;  %p1250_p9 = scmp.lt.s32.totalorder %s1241_s24, %s1241_s24 }
  0x3e   : > { %p1244_p2 = pnand %p1242_p4, %p1557_p7  ;;  %p1251_p10 = por %p1250_p9, %p1249_p8 }
  0x3f   : > { %1056 = dma.hbm_to_vmem [thread:$0]  (!%p1549_p6), %s1806_s3, 32, %s1553_s28, [#allocation8]  }
  0x40   : > { %p1245_p5 = pneg %p1244_p2 }
  0x42   : > { %p1252_p11 = pnand %p1251_p10, %p1245_p5 }
  0x44   : > { %1255 = shalt.err (!%p1252_p11)
}
  0x45   : > { %s1438_s27 = smov 64   ;;  %s1439_s30 = smov 4  }
  0x46   : > { %s1807_s5 = sld [smem:[#allocation29_spill]]  ;;  %s1440_s11 = smov [#allocation13]  }
  0x47   : > { %s373_s12 = sshll.u32 %s1440_s11, 4  ;;  %s374_s12 = int_to_ptr.vmem [resolvable:$true] %s373_s12 }
  0x48   : > { %s1267_s25 = scalar_lea.vmem %s374_s12, 256  ;;  %p1275_p3 = scmp.lt.s32.totalorder %s374_s12, %s374_s12 }
  0x49   : > { %p1268_p12 = scmp.ne.s32.totalorder %s374_s12, %s1267_s25  ;;  %p1276_p1 = scmp.lt.s32.totalorder %s1267_s25, %s1267_s25 }
  0x4b   : > { %p1270_p13 = pnand %p1268_p12, %p1557_p7  ;;  %p1277_p4 = por %p1276_p1, %p1275_p3 }
  0x4c   : > { %1062 = dma.hbm_to_vmem [thread:$0]  (!%p1549_p6), %s1807_s5, 256, %s361_s22, [#allocation11], %s1438_s27, %s1438_s27, %s1439_s30  }
  0x4d   : > { %p1271_p0 = pneg %p1270_p13 }
  0x4f   : > { %p1278_p2 = pnand %p1277_p4, %p1271_p0 }
  0x51   : > { %1281 = shalt.err (!%p1278_p2)
}
  0x52   : > { %s1808_s6 = sld [smem:[#allocation30_spill]]  ;;  %s951_s29 = sadd.s32 4294967294, %s1432_s18  }
  0x53   : > { %s45_s22 = sadd.s32 1, %s1428_s17  ;;  %s54_s26 = sadd.s32 1, %s1420_s15 }
  0x54   : > { %p47_p7 = scmp.ge.s32.totalorder %s45_s22, 2  ;;  %p61_p5 = scmp.ne.s32.totalorder %s1420_s15, %s1416_s14 }
  0x55   : > { %p62_p8 = scmp.eq.s32.totalorder %s1432_s18, 0  ;;  %p67_p9 = scmp.ne.s32.totalorder %s1416_s14, %s1412_s13 }
  0x56   : > { %s1826_s22 = smov (%p47_p7, %s45_s22), 0  ;;  %p1811_p11 = scmp.ne.s32.totalorder %s1800_s20, 0 }
  0x57   : > { %1809 = sst [smem:[#allocation25_spill]] %s1826_s22  ;;  %p1611_p10 = por %p62_p8, %p61_p5 }
  0x58   : > { %1065 = dma.hbm_to_vmem [thread:$0]  (!%p1549_p6), %s1808_s6, 256, %s374_s12, [#allocation14], %s1438_s27, %s1438_s27, %s1439_s30  }
  0x59   : > { %p1617_p6 = por %p1811_p11, %p67_p9  ;;  %s49_s30 = ssub.s32 %s1428_s17, %s1826_s22 }
  0x5a   : > { %s1813_s23 = sadd.s32 4294967295, %s1432_s18   ;;  %p52_p13 = scmp.eq.s32.totalorder %s49_s30, 0 }
  0x5b   : > { %p269_p12 = scmp.eq.s32.totalorder %s1813_s23, 1  ;;  %p275_p0 = scmp.eq.s32.totalorder %s951_s29, 1 }
  0x5c   : > { %p1082_p1 = scmp.lt.s32.totalorder %s1432_s18, 2  ;;  %s393_s25 = sand.u32 1, %s1420_s15  }
  0x5d   : > { %p1625_p3 = por %p269_p12, %p61_p5  ;;  %p1633_p4 = por %p275_p0, %p67_p9 }
  0x5e   : > { %s1631_s11 = scalar_select %p52_p13, %s1420_s15, %s54_s26  }
  0x5f   : > { %s959_s24 = sshll.u32 %s393_s25, 3  ;;  %s960_s2 = sshll.u32 %s1428_s17, 7 }
  0x60   : > { %s403_s23 = scalar_lea.hbm %s1777_s0, %s960_s2  ;;  %s397_s30 = scalar_lea.vmem [#allocation4], %s959_s24 }
  0x61   : > { %s405_s29 = sshll.u32 %s397_s30, 4  ;;  %p1644_p2 = pnand %p1082_p1, %p1611_p10  ;;  %s406_s29 = int_to_ptr.vmem [resolvable:$true] %s405_s29 }
  0x62   : > { %s394_s26 = scalar_lea.sflag [#allocation5], %s393_s25  ;;  %s1295_s6 = scalar_lea.vmem %s406_s29, 128 }
  0x63   : > { %p1284_p7 = pneg %p1644_p2  ;;  %p1296_p5 = scmp.ne.s32.totalorder %s406_s29, %s1295_s6 }
  0x64   : > { %s1441_s22 = smov [#allocation4]  }
  0x65   : > { %p1298_p8 = pnand %p1296_p5, %p1284_p7  ;;  %s1300_s17 = sshll.u32 %s1441_s22, 4  ;;  %s1301_s17 = int_to_ptr.vmem [resolvable:$false] %s1300_s17 }
  0x66   : > { %s1302_s2 = scalar_lea.vmem %s1301_s17, 256  ;;  %p1303_p11 = scmp.lt.s32.totalorder %s406_s29, %s1301_s17 }
  0x67   : > { %p1299_p9 = pneg %p1298_p8  ;;  %p1304_p12 = scmp.lt.s32.totalorder %s1302_s2, %s1295_s6 }
  0x69   : > { %p1305_p13 = por %p1304_p12, %p1303_p11 }
  0x6b   : > { %p1306_p0 = pnand %p1305_p13, %p1299_p9 }
  0x6d   : > { %1309 = shalt.err (!%p1306_p0)
}
  0x6e   : > { %1069 = dma.hbm_to_vmem [thread:$0]  (!%p1644_p2), %s403_s23, 128, %s406_s29, %s394_s26  }
  0x6f   : > { %p1817_p10 = scmp.ne.s32.totalorder %s1801_s21, 0 }
  0x70   : > { %s1655_s3 = sand.u32 (!%p1817_p10), 1, %s1416_s14  }
  0x71   : > { %414 = sbr.rel (%p1817_p10) target bundleno = 879 (0x36f), region = 56  ;;  %s962_s4 = sshll.u32 (!%p1817_p10), %s1655_s3, 3 }
  0x72   : > { %s417_s22 = scalar_lea.sflag (!%p1817_p10), [#allocation5], %s1655_s3  ;;  %s420_s19 = scalar_lea.vmem (!%p1817_p10), [#allocation4], %s962_s4 }
  0x76   : > { %1387 = dma.done.wait (%p1617_p6), %s417_s22, 128  }
  0x77   : > { %1389 = vsyncadd (%p1617_p6), %s417_s22, 4294967168  ;;  %p1818_p1 = scmp.ne.s32.totalorder %s1800_s20, 0 }
  0x79   : > { %1391 = dma.done.wait (%p1818_p1), [#allocation8], 48  }
  0x7a   : > { %1393 = vsyncadd (%p1818_p1), [#allocation8], 4294967248 }
  0x7b   : > { %1395 = dma.done.wait (%p1818_p1), [#allocation11], 288  }
  0x7c   : > { %1397 = vsyncadd (%p1818_p1), [#allocation11], 4294967008 }
  0x7d   : > { %1399 = dma.done.wait (%p1818_p1), [#allocation14], 256  }
  0x7e   : > { %1401 = vsyncadd (%p1818_p1), [#allocation14], 4294967040  ;;  %vm493_vm0 = vcmask 261120   ;;  %v490_v0 = vld [vmem:[%s420_s19] sm:$0xff]  ;;  %v1442_v7 = vmov 0.0   ;;  %vm1443_vm1 = vmmov 0  }
  0x7f   : > { %v494_v1 = vsel %vm493_vm0, %v490_v0, 0.0  ;;  %996 = vmatprep.subr.bf16.mxu0 %v1442_v7  ;;  %1002 = vmatprep.subr.bf16.mxu1 %v1442_v7  ;;  %vm487_vm2 = vcmask 257024   ;;  %v970_v12 = vld [vmem:[%s1778_s1] ss:$0 sm:$0xff]  ;;  %v971_v14 = vld [vmem:[#allocation7] ss:$0 sm:$0xff] }
  0x80   : > { %495 = vadd.xlane.f32.xlu0 %v494_v1  ;;  %998 = vmatprep.mubr.msk.bf16.mxu0 %vm1443_vm1, %v1442_v7  ;;  %488 = vst.msk [vmem:[#allocation2] sm:$0xf] %vm487_vm2, %v1442_v7  ;;  %489 = vst.msk [vmem:[#allocation3] sm:$0xf] %vm487_vm2, %v1442_v7  ;;  %vm529_vm3 = vcmask 1043456   ;;  %vm525_vm4 = vcmask 64512  }
  0x81   : > { %1004 = vmatprep.mubr.msk.bf16.mxu1 %vm1443_vm1, %v1442_v7  ;;  %v524_v19 = vld [vmem:[#allocation9] sm:$0x3]  ;;  %v577_v20 = vld [vmem:[#allocation10] sm:$0x3]  ;;  %v1146_v21 = vld [vmem:[#allocation12 + $0x8] sm:$0xff]   ;;  %s968_s17 = sshll.u32 %s1655_s3, 1 }
  0x82   : > { %v1147_v22 = vld [vmem:[#allocation13 + $0x8] sm:$0xff]   ;;  %v1148_v23 = vld [vmem:[#allocation12] sm:$0xff]   ;;  %v1149_v24 = vld [vmem:[#allocation13] sm:$0xff]   ;;  %s982_s24 = sshll.u32 %s1424_s16, 5  ;;  %s474_s23 = scalar_lea.vmem [#allocation15], %s968_s17  ;;  %vm689_vm5 = vcmask 254976  }
  0x83   : > { %v632_v41 = vld [vmem:[%s1784_s7] sm:$0xf]  ;;  %s774_s30 = sshll.u32 %s474_s23, 4  ;;  %s481_s29 = scalar_lea.vmem [#allocation16], %s968_s17  ;;  %s1703_s30 = int_to_ptr.vmem [resolvable:$true] %s774_s30 }
  0x84   : > { %v697_v42 = vld [vmem:[%s1785_s8] sm:$0xf]  ;;  %s787_s26 = sshll.u32 %s481_s29, 4  ;;  %s1701_s22 = scalar_lea.hbm %s1786_s9, %s982_s24  ;;  %s1710_s26 = int_to_ptr.vmem [resolvable:$true] %s787_s26 }
  0x85   : > { %s1708_s5 = scalar_lea.hbm %s1787_s10, %s982_s24  ;;  %s756_s6 = scalar_lea.sflag [#allocation6], %s1655_s3 }
  0x86   : > { %s1310_s17 = scalar_lea.vmem %s1703_s30, 32  ;;  %s1444_s20 = smov [#allocation15]  }
  0x87   : > { %v523_v25 = vld [vmem:[#allocation2] sm:$0xf]  ;;  %v576_v26 = vld [vmem:[#allocation3] sm:$0xf]  ;;  %p1311_p6 = scmp.ne.s32.totalorder %s1703_s30, %s1310_s17  ;;  %s1314_s21 = sshll.u32 %s1444_s20, 4  ;;  %s1315_s21 = int_to_ptr.vmem [resolvable:$false] %s1314_s21 }
  0x88   : > { %s1316_s27 = scalar_lea.vmem %s1315_s21, 64  ;;  %p1317_p5 = scmp.lt.s32.totalorder %s1703_s30, %s1315_s21 }
  0x89   : > { %p1312_p2 = pnand %p1311_p6, %p1625_p3  ;;  %p1318_p8 = scmp.lt.s32.totalorder %s1316_s27, %s1310_s17 }
  0x8b   : > { %p1313_p7 = pneg %p1312_p2  ;;  %p1319_p9 = por %p1318_p8, %p1317_p5 }
  0x8d   : > { %p1320_p11 = pnand %p1319_p9, %p1313_p7 }
 0x109   : > { %v496_v2 = vpop.xlane.xlu0 %495 }
 0x10a   : > { %v498_v3 = vmul.f32 0.03125, %v496_v2 }
 0x10c   : > { %v499_v4 = vsub.f32 %v490_v0, %v498_v3 }
 0x10e   : > { %v500_v5 = vmul.f32 %v499_v4, %v499_v4 }
 0x110   : > { %v501_v6 = vsel %vm493_vm0, %v500_v5, 0.0 }
 0x111   : > { %502 = vadd.xlane.f32.xlu0 %v501_v6 }
 0x19a   : > { %v503_v8 = vpop.xlane.xlu0 %502 }
 0x19b   : > { %v504_v9 = vmul.f32 0.03125, %v503_v8 }
 0x19d   : > { %v505_v10 = vadd.f32 1e-05, %v504_v9 }
 0x19f   : > { %1150 = vrsqrt.f32 %v505_v10 }
 0x1ac   : > { %v1151_v11 = vpop.eup %1150 }
 0x1ad   : > { %v507_v13 = vmul.f32 %v1151_v11, %v499_v4 }
 0x1af   : > { %v514_v15 = vmul.f32 %v970_v12, %v507_v13 }
 0x1b1   : > { %v521_v16 = vadd.f32 %v971_v14, %v514_v15 }
 0x1b3   : > { %v522_v17 = vpack.c.bf16 %v521_v16, %v521_v16 }
 0x1b5   : > { %v531_v18 = vsel %vm529_vm3, %v522_v17, 0 }
 0x1b6   : > { %997 = vmatpush3.bf16.msra.mxu0 %v531_v18  ;;  %1003 = vmatpush3.bf16.msra.mxu1 %v531_v18 }
 0x1b7   : > { %1008 = vmatprep.subr.bf16.mxu0 %v1442_v7  ;;  %1016 = vmatprep.subr.bf16.mxu1 %v1442_v7 }
 0x1b9   : > { %999 = vmatmul.mubr.msk.bf16.vlgmr.msra.gmra.mxu0 %vm525_vm4, %v524_v19  ;;  %1005 = vmatmul.mubr.msk.bf16.vlgmr.msra.gmra.mxu1 %vm525_vm4, %v577_v20 }
 0x1ba   : > { %1012 = vmatprep.mubr.msk.bf16.mxu0 %vm1443_vm1, %v1442_v7  ;;  %1020 = vmatprep.mubr.msk.bf16.mxu1 %vm1443_vm1, %v1442_v7 }
 0x1bb   : > { %1009 = vmatpush3.bf16.msra.mxu0 %v1146_v21  ;;  %1017 = vmatpush3.bf16.msra.mxu1 %v1147_v22 }
 0x1bc   : > { %1010 = vmatprep.subr.bf16.mxu0 %v1442_v7  ;;  %1018 = vmatprep.subr.bf16.mxu1 %v1442_v7 }
 0x1bf   : > { %1011 = vmatpush3.bf16.msra.mxu0 %v1148_v23  ;;  %1019 = vmatpush3.bf16.msra.mxu1 %v1149_v24 }
 0x279   : > { %v567_v27 = vpop.f32.mrf.mxu0  ;;  %v615_v28 = vpop.f32.mrf.mxu1 }
 0x27a   : > { %v573_v29 = vadd.f32 %v567_v27, %v523_v25  ;;  %v621_v30 = vadd.f32 %v615_v28, %v576_v26 }
 0x27b   : > { %v1000_v31 = vpop.f32.mrf.mxu0  ;;  %v1006_v32 = vpop.f32.mrf.mxu1 }
 0x27c   : > { %575 = vst.msk [vmem:[#allocation2] sm:$0xf] %vm487_vm2, %v573_v29  ;;  %622 = vst.msk [vmem:[#allocation3] sm:$0xf] %vm487_vm2, %v621_v30 }
 0x27d   : > { %v570_v33 = vpop.f32.mrf.mxu0  ;;  %v618_v34 = vpop.f32.mrf.mxu1 }
 0x27f   : > { %v1001_v35 = vpop.f32.mrf.mxu0  ;;  %v1007_v36 = vpop.f32.mrf.mxu1 }
 0x283   : > { %v626_v37 = vld [vmem:[#allocation2] sm:$0xf]  ;;  %v691_v38 = vld [vmem:[#allocation3] sm:$0xf] }
 0x284   : > { %v627_v39 = vpack.c.bf16 %v626_v37, %v626_v37  ;;  %v692_v40 = vpack.c.bf16 %v691_v38, %v691_v38 }
 0x286   : > { %1013 = vmatmul.mubr.msk.bf16.vlgmr.msra.gmra.mxu0 %vm493_vm0, %v627_v39  ;;  %1021 = vmatmul.mubr.msk.bf16.vlgmr.msra.gmra.mxu1 %vm493_vm0, %v692_v40 }
 0x346   : > { %v682_v43 = vpop.f32.mrf.mxu0  ;;  %v747_v44 = vpop.f32.mrf.mxu1 }
 0x347   : > { %v683_v45 = vadd.f32 %v682_v43, %v632_v41  ;;  %v748_v46 = vadd.f32 %v747_v44, %v697_v42 }
 0x348   : > { %v1014_v47 = vpop.f32.mrf.mxu0  ;;  %v1022_v48 = vpop.f32.mrf.mxu1 }
 0x349   : > { %v688_v49 = vpack.c.bf16 %v683_v45, %v683_v45  ;;  %v753_v50 = vpack.c.bf16 %v748_v46, %v748_v46 }
 0x34a   : > { %v685_v51 = vpop.f32.mrf.mxu0  ;;  %v750_v52 = vpop.f32.mrf.mxu1 }
 0x34b   : > { %690 = vst.msk [vmem:[%s474_s23] sm:$0x3] %vm689_vm5, %v688_v49  ;;  %754 = vst.msk [vmem:[%s481_s29] sm:$0x3] %vm689_vm5, %v753_v50 }
 0x34c   : > { %v1015_v53 = vpop.f32.mrf.mxu0  ;;  %v1023_v54 = vpop.f32.mrf.mxu1 }
 0x34d   : > { %1323 = shalt.err (!%p1320_p11)
}
 0x34e   : > { %s1324_s25 = scalar_lea.hbm %s1701_s22, 32  ;;  %s1328_s29 = scalar_lea.hbm %s1786_s9, 64 }
 0x34f   : > { %p1325_p12 = scmp.ne.s32.totalorder %s1701_s22, %s1324_s25  ;;  %p1329_p10 = scmp.lt.s32.totalorder %s1701_s22, %s1786_s9 }
 0x350   : > { %p1330_p1 = scmp.lt.s32.totalorder %s1328_s29, %s1324_s25 }
 0x351   : > { %p1326_p13 = pnand %p1325_p12, %p1625_p3 }
 0x352   : > { %p1331_p6 = por %p1330_p1, %p1329_p10 }
 0x353   : > { %p1327_p0 = pneg %p1326_p13 }
 0x355   : > { %p1332_p2 = pnand %p1331_p6, %p1327_p0 }
 0x357   : > { %1335 = shalt.err (!%p1332_p2)
}
 0x358   : > { %1046 = dma.vmem_to_hbm [thread:$0]  (%p1625_p3), %s1703_s30, 32, %s1701_s22, %s756_s6  }
 0x359   : > { %s761_s16 = scalar_lea.sflag [#allocation17], %s1655_s3  ;;  %s1336_s19 = scalar_lea.vmem %s1710_s26, 32 }
 0x35a   : > { %p1337_p7 = scmp.ne.s32.totalorder %s1710_s26, %s1336_s19  ;;  %s1445_s17 = smov [#allocation16]  }
 0x35b   : > { %s1340_s20 = sshll.u32 %s1445_s17, 4  ;;  %s1341_s20 = int_to_ptr.vmem [resolvable:$false] %s1340_s20 }
 0x35c   : > { %p1338_p5 = pnand %p1337_p7, %p1625_p3  ;;  %s1342_s21 = scalar_lea.vmem %s1341_s20, 64 }
 0x35d   : > { %p1343_p9 = scmp.lt.s32.totalorder %s1710_s26, %s1341_s20  ;;  %p1344_p11 = scmp.lt.s32.totalorder %s1342_s21, %s1336_s19 }
 0x35e   : > { %p1339_p8 = pneg %p1338_p5 }
 0x35f   : > { %p1345_p12 = por %p1344_p11, %p1343_p9 }
 0x361   : > { %p1346_p13 = pnand %p1345_p12, %p1339_p8 }
 0x363   : > { %1349 = shalt.err (!%p1346_p13)
}
 0x364   : > { %s1350_s30 = scalar_lea.hbm %s1708_s5, 32  ;;  %s1354_s6 = scalar_lea.hbm %s1787_s10, 64 }
 0x365   : > { %p1351_p0 = scmp.ne.s32.totalorder %s1708_s5, %s1350_s30  ;;  %p1355_p6 = scmp.lt.s32.totalorder %s1708_s5, %s1787_s10 }
 0x366   : > { %p1356_p2 = scmp.lt.s32.totalorder %s1354_s6, %s1350_s30 }
 0x367   : > { %p1352_p10 = pnand %p1351_p0, %p1625_p3 }
 0x368   : > { %p1357_p7 = por %p1356_p2, %p1355_p6 }
 0x369   : > { %p1353_p1 = pneg %p1352_p10 }
 0x36b   : > { %p1358_p5 = pnand %p1357_p7, %p1353_p1 }
 0x36d   : > { %1361 = shalt.err (!%p1358_p5)
}
 0x36e   : > { %1047 = dma.vmem_to_hbm [thread:$0]  (%p1625_p3), %s1710_s26, 32, %s1708_s5, %s761_s16  }
 0x36f PF: > { %s799_s24 = sand.u32 1, %s1412_s13   ;;  %p1819_p8 = scmp.ge.s32.totalorder %s1432_s18, 2 }
 0x370   : > { %s800_s23 = scalar_lea.sflag [#allocation6], %s799_s24 }
 0x371   : > { %p1071_p9 = pnand %p1819_p8, %p1633_p4 }
 0x373   : > { %p1072_p11 = pneg %p1071_p9 }
 0x375   : > { %1403 = dma.done.wait (%p1072_p11), %s800_s23, 32  }
 0x376   : > { %1405 = vsyncadd (%p1072_p11), %s800_s23, 4294967264  ;;  %s809_s29 = scalar_lea.sflag [#allocation17], %s799_s24 }
 0x377   : > { %1407 = dma.done.wait (%p1072_p11), %s809_s29, 32  }
 0x378   : > { %1409 = vsyncadd (%p1072_p11), %s809_s29, 4294967264  ;;  %s33_s18 = sadd.s32 1, %s1432_s18   ;;  %s1820_s16 = sld [smem:[#allocation24_spill]] }
 0x379   : > { %p30_p12 = scmp.ge.s32.totalorder %s33_s18, 4   ;;  %s1821_s17 = sld [smem:[#allocation25_spill]] }
 0x37a   : > { %s1822_s13 = smov %s1416_s14  ;;  %s1823_s14 = smov %s1420_s15 }
 0x37b   : > { %s1824_s15 = smov %s1631_s11  ;;  %32 = sbr.rel (!%p30_p12) target bundleno = 17 (0x11), region = 148 }
 0x380   :  { %814 = vsyncpa [#allocation5], 1 }
 0x381   :  { %816 = vsyncpa [#allocation5 + $0x1], 1 }
 0x382   :  { %817 = vsyncpa [#allocation8], 1 }
 0x383   :  { %818 = vsyncpa [#allocation11], 1 }
 0x384   :  { %819 = vsyncpa [#allocation14], 1 }
 0x385   :  { %820 = vsyncpa [#allocation6], 1 }
 0x386   :  { %822 = vsyncpa [#allocation6 + $0x1], 1 }
 0x387   :  { %823 = vsyncpa [#allocation17], 1 }
 0x388   :  { %825 = vsyncpa [#allocation17 + $0x1], 1 }

// kernel: tpu_custom_call.1
= control target key start
LH: loop header
LB: loop body
LE: loop exit
PB: predicated region body
PF: predicated region fallthrough
CT: control target
= control target key end

     0   :  { %s1777_s0 = inlined_call_operand.hbm [shape: f32[2,8,32], index: 0, kind: input, shape index: {}]   ;;  %s1778_s1 = inlined_call_operand.vmem [shape: f32[1,32], index: 1, kind: input, shape index: {}]   ;;  %s1779_s2 = inlined_call_operand.hbm [shape: f32[1,32], index: 2, kind: input, shape index: {}]   ;;  %s1780_s3 = inlined_call_operand.hbm [shape: bf16[4,8], index: 3, kind: input, shape index: {}]   ;;  %s1781_s4 = inlined_call_operand.hbm [shape: bf16[4,8], index: 4, kind: input, shape index: {}]   ;;  %s1782_s5 = inlined_call_operand.hbm [shape: bf16[32,32], index: 5, kind: input, shape index: {}]   ;;  %s1783_s6 = inlined_call_operand.hbm [shape: bf16[32,32], index: 6, kind: input, shape index: {}]   ;;  %s1784_s7 = inlined_call_operand.vmem [shape: f32[4,32], index: 7, kind: input, shape index: {}]   ;;  %s1785_s8 = inlined_call_operand.vmem [shape: f32[4,32], index: 8, kind: input, shape index: {}]   ;;  %s1786_s9 = inlined_call_operand.hbm [shape: bf16[2,4,32], index: 9, kind: output, shape index: {0}]   ;;  %s1787_s10 = inlined_call_operand.hbm [shape: bf16[2,4,32], index: 10, kind: output, shape index: {1}]  }
   0x1   :  { %1794 = sst [smem:[#allocation26_spill]] %s1779_s2 }
   0x2   :  { %1795 = sst [smem:[#allocation27_spill]] %s1780_s3 }
   0x3   :  { %1796 = sst [smem:[#allocation28_spill]] %s1781_s4 }
   0x4   :  { %1797 = sst [smem:[#allocation29_spill]] %s1782_s5 }
   0x5   :  { %1798 = sst [smem:[#allocation30_spill]] %s1783_s6 }
   0x6   :  { %16 = vsyncpa [#allocation5], 0 }
   0x7   :  { %18 = vsyncpa [#allocation5 + $0x1], 0 }
   0x8   :  { %19 = vsyncpa [#allocation8], 0 }
   0x9   :  { %20 = vsyncpa [#allocation11], 0 }
   0xa   :  { %21 = vsyncpa [#allocation14], 0 }
   0xb   :  { %22 = vsyncpa [#allocation6], 0 }
   0xc   :  { %24 = vsyncpa [#allocation6 + $0x1], 0 }
   0xd   :  { %25 = vsyncpa [#allocation17], 0 }
   0xe   :  { %27 = vsyncpa [#allocation17 + $0x1], 0  ;;  %s1501_s13 = smov 0   ;;  %s1503_s14 = smov 0  }
   0xf   :  { %s1505_s15 = smov 0   ;;  %s1507_s16 = smov 0  }
  0x10   :  { %s1509_s17 = smov 0   ;;  %s1511_s18 = smov 0  }
  0x11 LB: > { %1799 = sst [smem:[#allocation24_spill]] %s1428_s17  ;;  %s1791_s19 = sadd.s32 4294967295, %s1432_s18   ;;  %s1432_s18 = sphi %s1511_s18, %s33_s18   ;;  %s1428_s17 = sphi %s1509_s17, %s1821_s17   ;;  %s1424_s16 = sphi %s1507_s16, %s1820_s16   ;;  %s1420_s15 = sphi %s1505_s15, %s1824_s15   ;;  %s1416_s14 = sphi %s1503_s14, %s1823_s14   ;;  %s1412_s13 = sphi %s1501_s13, %s1822_s13  }
  0x12   : > { %p952_p0 = scmp.ge.s32.totalorder %s1432_s18, 1  ;;  %p1535_p1 = scmp.eq.s32.totalorder %s1791_s19, 0 }
  0x13   : > { %p308_p2 = scmp.lt.s32.totalorder %s1432_s18, 3  ;;  %s1434_s22 = smov [#allocation7]  }
  0x14   : > { %s1800_s20 = scalar_select %p1535_p1, 1, 0 }
  0x15   : > { %p1540_p3 = pnand %p952_p0, %p308_p2  ;;  %s324_s23 = sshll.u32 %s1434_s22, 4  ;;  %s325_s23 = int_to_ptr.vmem [resolvable:$true] %s324_s23 }
  0x16   : > { %s1435_s24 = smov [#allocation10]   ;;  %s1436_s27 = smov [#allocation9]  }
  0x17   : > { %s1801_s21 = scalar_select %p1540_p3, 1, 0 }
  0x18   : > { %p1050_p5 = pneg %p1540_p3  ;;  %s350_s25 = sshll.u32 %s1435_s24, 4  ;;  %s351_s25 = int_to_ptr.vmem [resolvable:$true] %s350_s25 }
  0x19   : > { %s337_s28 = sshll.u32 %s1436_s27, 4  ;;  %s1163_s30 = scalar_lea.vmem %s325_s23, 16  ;;  %s1553_s28 = int_to_ptr.vmem [resolvable:$true] %s337_s28 }
  0x1a   : > { %p1549_p6 = pnand %p1050_p5, %p1535_p1  ;;  %p1164_p8 = scmp.ne.s32.totalorder %s325_s23, %s1163_s30 }
  0x1b   : > { %s1170_s11 = scalar_lea.vmem %s325_s23, 32  ;;  %p1171_p11 = scmp.lt.s32.totalorder %s325_s23, %s325_s23 }
  0x1c   : > { %p1557_p7 = pneg %p1549_p6  ;;  %p1172_p12 = scmp.lt.s32.totalorder %s1170_s11, %s1163_s30 }
  0x1e   : > { %p1166_p9 = pnand %p1164_p8, %p1557_p7  ;;  %p1173_p13 = por %p1172_p12, %p1171_p11 }
  0x20   : > { %p1167_p10 = pneg %p1166_p9 }
  0x22   : > { %p1174_p0 = pnand %p1173_p13, %p1167_p10 }
  0x24   : > { %1177 = shalt.err (!%p1174_p0)
}
  0x25   : > { %s1804_s2 = sld [smem:[#allocation26_spill]]  ;;  %s1189_s24 = scalar_lea.vmem %s351_s25, 32 }
  0x26   : > { %p1190_p2 = scmp.ne.s32.totalorder %s351_s25, %s1189_s24  ;;  %p1197_p8 = scmp.lt.s32.totalorder %s351_s25, %s351_s25 }
  0x27   : > { %p1198_p9 = scmp.lt.s32.totalorder %s1189_s24, %s1189_s24 }
  0x28   : > { %p1192_p5 = pnand %p1190_p2, %p1557_p7 }
  0x29   : > { %p1199_p3 = por %p1198_p9, %p1197_p8 }
  0x2a   : > { %p1193_p4 = pneg %p1192_p5 }
  0x2b   : > { %1053 = dma.hbm_to_vmem [thread:$0]  (!%p1549_p6), %s1804_s2, 16, %s325_s23, [#allocation8]  }
  0x2c   : > { %p1200_p1 = pnand %p1199_p3, %p1193_p4 }
  0x2e   : > { %1203 = shalt.err (!%p1200_p1)
}
  0x2f   : > { %s1805_s4 = sld [smem:[#allocation28_spill]]  ;;  %s1215_s23 = scalar_lea.vmem %s1553_s28, 32 }
  0x30   : > { %p1216_p10 = scmp.ne.s32.totalorder %s1553_s28, %s1215_s23  ;;  %p1223_p13 = scmp.lt.s32.totalorder %s1553_s28, %s1553_s28 }
  0x31   : > { %p1224_p0 = scmp.lt.s32.totalorder %s1215_s23, %s1215_s23 }
  0x32   : > { %p1218_p11 = pnand %p1216_p10, %p1557_p7 }
  0x33   : > { %p1225_p3 = por %p1224_p0, %p1223_p13 }
  0x34   : > { %p1219_p12 = pneg %p1218_p11 }
  0x35   : > { %1059 = dma.hbm_to_vmem [thread:$0]  (!%p1549_p6), %s1805_s4, 32, %s351_s25, [#allocation11]  }
  0x36   : > { %p1226_p1 = pnand %p1225_p3, %p1219_p12 }
  0x38   : > { %1229 = shalt.err (!%p1226_p1)
}
  0x39   : > { %s1806_s3 = sld [smem:[#allocation27_spill]]  ;;  %s1437_s25 = smov [#allocation12]  }
  0x3a   : > { %s360_s22 = sshll.u32 %s1437_s25, 4  ;;  %s361_s22 = int_to_ptr.vmem [resolvable:$true] %s360_s22 }
  0x3b   : > { %s1241_s24 = scalar_lea.vmem %s361_s22, 256  ;;  %p1249_p8 = scmp.lt.s32.totalorder %s361_s22, %s361_s22 }
  0x3c   : > { %p1242_p4 = scmp.ne.s32.totalorder %s361_s22, %s1241_s24  ;;  %p1250_p9 = scmp.lt.s32.totalorder %s1241_s24, %s1241_s24 }
  0x3e   : > { %p1244_p2 = pnand %p1242_p4, %p1557_p7  ;;  %p1251_p10 = por %p1250_p9, %p1249_p8 }
  0x3f   : > { %1056 = dma.hbm_to_vmem [thread:$0]  (!%p1549_p6), %s1806_s3, 32, %s1553_s28, [#allocation8]  }
  0x40   : > { %p1245_p5 = pneg %p1244_p2 }
  0x42   : > { %p1252_p11 = pnand %p1251_p10, %p1245_p5 }
  0x44   : > { %1255 = shalt.err (!%p1252_p11)
}
  0x45   : > { %s1438_s27 = smov 64   ;;  %s1439_s30 = smov 4  }
  0x46   : > { %s1807_s5 = sld [smem:[#allocation29_spill]]  ;;  %s1440_s11 = smov [#allocation13]  }
  0x47   : > { %s373_s12 = sshll.u32 %s1440_s11, 4  ;;  %s374_s12 = int_to_ptr.vmem [resolvable:$true] %s373_s12 }
  0x48   : > { %s1267_s25 = scalar_lea.vmem %s374_s12, 256  ;;  %p1275_p3 = scmp.lt.s32.totalorder %s374_s12, %s374_s12 }
  0x49   : > { %p1268_p12 = scmp.ne.s32.totalorder %s374_s12, %s1267_s25  ;;  %p1276_p1 = scmp.lt.s32.totalorder %s1267_s25, %s1267_s25 }
  0x4b   : > { %p1270_p13 = pnand %p1268_p12, %p1557_p7  ;;  %p1277_p4 = por %p1276_p1, %p1275_p3 }
  0x4c   : > { %1062 = dma.hbm_to_vmem [thread:$0]  (!%p1549_p6), %s1807_s5, 256, %s361_s22, [#allocation11], %s1438_s27, %s1438_s27, %s1439_s30  }
  0x4d   : > { %p1271_p0 = pneg %p1270_p13 }
  0x4f   : > { %p1278_p2 = pnand %p1277_p4, %p1271_p0 }
  0x51   : > { %1281 = shalt.err (!%p1278_p2)
}
  0x52   : > { %s1808_s6 = sld [smem:[#allocation30_spill]]  ;;  %s951_s29 = sadd.s32 4294967294, %s1432_s18  }
  0x53   : > { %s45_s22 = sadd.s32 1, %s1428_s17  ;;  %s54_s26 = sadd.s32 1, %s1420_s15 }
  0x54   : > { %p47_p7 = scmp.ge.s32.totalorder %s45_s22, 2  ;;  %p61_p5 = scmp.ne.s32.totalorder %s1420_s15, %s1416_s14 }
  0x55   : > { %p62_p8 = scmp.eq.s32.totalorder %s1432_s18, 0  ;;  %p67_p9 = scmp.ne.s32.totalorder %s1416_s14, %s1412_s13 }
  0x56   : > { %s1826_s22 = smov (%p47_p7, %s45_s22), 0  ;;  %p1811_p11 = scmp.ne.s32.totalorder %s1800_s20, 0 }
  0x57   : > { %1809 = sst [smem:[#allocation25_spill]] %s1826_s22  ;;  %p1611_p10 = por %p62_p8, %p61_p5 }
  0x58   : > { %1065 = dma.hbm_to_vmem [thread:$0]  (!%p1549_p6), %s1808_s6, 256, %s374_s12, [#allocation14], %s1438_s27, %s1438_s27, %s1439_s30  }
  0x59   : > { %p1617_p6 = por %p1811_p11, %p67_p9  ;;  %s49_s30 = ssub.s32 %s1428_s17, %s1826_s22 }
  0x5a   : > { %s1813_s23 = sadd.s32 4294967295, %s1432_s18   ;;  %p52_p13 = scmp.eq.s32.totalorder %s49_s30, 0 }
  0x5b   : > { %p269_p12 = scmp.eq.s32.totalorder %s1813_s23, 1  ;;  %p275_p0 = scmp.eq.s32.totalorder %s951_s29, 1 }
  0x5c   : > { %p1082_p1 = scmp.lt.s32.totalorder %s1432_s18, 2  ;;  %s393_s25 = sand.u32 1, %s1420_s15  }
  0x5d   : > { %p1625_p3 = por %p269_p12, %p61_p5  ;;  %p1633_p4 = por %p275_p0, %p67_p9 }
  0x5e   : > { %s1631_s11 = scalar_select %p52_p13, %s1420_s15, %s54_s26  }
  0x5f   : > { %s959_s24 = sshll.u32 %s393_s25, 3  ;;  %s960_s2 = sshll.u32 %s1428_s17, 7 }
  0x60   : > { %s403_s23 = scalar_lea.hbm %s1777_s0, %s960_s2  ;;  %s397_s30 = scalar_lea.vmem [#allocation4], %s959_s24 }
  0x61   : > { %s405_s29 = sshll.u32 %s397_s30, 4  ;;  %p1644_p2 = pnand %p1082_p1, %p1611_p10  ;;  %s406_s29 = int_to_ptr.vmem [resolvable:$true] %s405_s29 }
  0x62   : > { %s394_s26 = scalar_lea.sflag [#allocation5], %s393_s25  ;;  %s1295_s6 = scalar_lea.vmem %s406_s29, 128 }
  0x63   : > { %p1284_p7 = pneg %p1644_p2  ;;  %p1296_p5 = scmp.ne.s32.totalorder %s406_s29, %s1295_s6 }
  0x64   : > { %s1441_s22 = smov [#allocation4]  }
  0x65   : > { %p1298_p8 = pnand %p1296_p5, %p1284_p7  ;;  %s1300_s17 = sshll.u32 %s1441_s22, 4  ;;  %s1301_s17 = int_to_ptr.vmem [resolvable:$false] %s1300_s17 }
  0x66   : > { %s1302_s2 = scalar_lea.vmem %s1301_s17, 256  ;;  %p1303_p11 = scmp.lt.s32.totalorder %s406_s29, %s1301_s17 }
  0x67   : > { %p1299_p9 = pneg %p1298_p8  ;;  %p1304_p12 = scmp.lt.s32.totalorder %s1302_s2, %s1295_s6 }
  0x69   : > { %p1305_p13 = por %p1304_p12, %p1303_p11 }
  0x6b   : > { %p1306_p0 = pnand %p1305_p13, %p1299_p9 }
  0x6d   : > { %1309 = shalt.err (!%p1306_p0)
}
  0x6e   : > { %1069 = dma.hbm_to_vmem [thread:$0]  (!%p1644_p2), %s403_s23, 128, %s406_s29, %s394_s26  }
  0x6f   : > { %p1817_p10 = scmp.ne.s32.totalorder %s1801_s21, 0 }
  0x70   : > { %s1655_s3 = sand.u32 (!%p1817_p10), 1, %s1416_s14  }
  0x71   : > { %414 = sbr.rel (%p1817_p10) target bundleno = 879 (0x36f), region = 56  ;;  %s962_s4 = sshll.u32 (!%p1817_p10), %s1655_s3, 3 }
  0x72   : > { %s417_s22 = scalar_lea.sflag (!%p1817_p10), [#allocation5], %s1655_s3  ;;  %s420_s19 = scalar_lea.vmem (!%p1817_p10), [#allocation4], %s962_s4 }
  0x76   : > { %1387 = dma.done.wait (%p1617_p6), %s417_s22, 128  }
  0x77   : > { %1389 = vsyncadd (%p1617_p6), %s417_s22, 4294967168  ;;  %p1818_p1 = scmp.ne.s32.totalorder %s1800_s20, 0 }
  0x79   : > { %1391 = dma.done.wait (%p1818_p1), [#allocation8], 48  }
  0x7a   : > { %1393 = vsyncadd (%p1818_p1), [#allocation8], 4294967248 }
  0x7b   : > { %1395 = dma.done.wait (%p1818_p1), [#allocation11], 288  }
  0x7c   : > { %1397 = vsyncadd (%p1818_p1), [#allocation11], 4294967008 }
  0x7d   : > { %1399 = dma.done.wait (%p1818_p1), [#allocation14], 256  }
  0x7e   : > { %1401 = vsyncadd (%p1818_p1), [#allocation14], 4294967040  ;;  %vm493_vm0 = vcmask 261120   ;;  %v490_v0 = vld [vmem:[%s420_s19] sm:$0xff]  ;;  %v1442_v7 = vmov 0.0   ;;  %vm1443_vm1 = vmmov 0  }
  0x7f   : > { %v494_v1 = vsel %vm493_vm0, %v490_v0, 0.0  ;;  %996 = vmatprep.subr.bf16.mxu0 %v1442_v7  ;;  %1002 = vmatprep.subr.bf16.mxu1 %v1442_v7  ;;  %vm487_vm2 = vcmask 257024   ;;  %v970_v12 = vld [vmem:[%s1778_s1] ss:$0 sm:$0xff]  ;;  %v971_v14 = vld [vmem:[#allocation7] ss:$0 sm:$0xff] }
  0x80   : > { %495 = vadd.xlane.f32.xlu0 %v494_v1  ;;  %998 = vmatprep.mubr.msk.bf16.mxu0 %vm1443_vm1, %v1442_v7  ;;  %488 = vst.msk [vmem:[#allocation2] sm:$0xf] %vm487_vm2, %v1442_v7  ;;  %489 = vst.msk [vmem:[#allocation3] sm:$0xf] %vm487_vm2, %v1442_v7  ;;  %vm529_vm3 = vcmask 1043456   ;;  %vm525_vm4 = vcmask 64512  }
  0x81   : > { %1004 = vmatprep.mubr.msk.bf16.mxu1 %vm1443_vm1, %v1442_v7  ;;  %v524_v19 = vld [vmem:[#allocation9] sm:$0x3]  ;;  %v577_v20 = vld [vmem:[#allocation10] sm:$0x3]  ;;  %v1146_v21 = vld [vmem:[#allocation12 + $0x8] sm:$0xff]   ;;  %s968_s17 = sshll.u32 %s1655_s3, 1 }
  0x82   : > { %v1147_v22 = vld [vmem:[#allocation13 + $0x8] sm:$0xff]   ;;  %v1148_v23 = vld [vmem:[#allocation12] sm:$0xff]   ;;  %v1149_v24 = vld [vmem:[#allocation13] sm:$0xff]   ;;  %s982_s24 = sshll.u32 %s1424_s16, 5  ;;  %s474_s23 = scalar_lea.vmem [#allocation15], %s968_s17  ;;  %vm689_vm5 = vcmask 254976  }
  0x83   : > { %v632_v41 = vld [vmem:[%s1784_s7] sm:$0xf]  ;;  %s774_s30 = sshll.u32 %s474_s23, 4  ;;  %s481_s29 = scalar_lea.vmem [#allocation16], %s968_s17  ;;  %s1703_s30 = int_to_ptr.vmem [resolvable:$true] %s774_s30 }
  0x84   : > { %v697_v42 = vld [vmem:[%s1785_s8] sm:$0xf]  ;;  %s787_s26 = sshll.u32 %s481_s29, 4  ;;  %s1701_s22 = scalar_lea.hbm %s1786_s9, %s982_s24  ;;  %s1710_s26 = int_to_ptr.vmem [resolvable:$true] %s787_s26 }
  0x85   : > { %s1708_s5 = scalar_lea.hbm %s1787_s10, %s982_s24  ;;  %s756_s6 = scalar_lea.sflag [#allocation6], %s1655_s3 }
  0x86   : > { %s1310_s17 = scalar_lea.vmem %s1703_s30, 32  ;;  %s1444_s20 = smov [#allocation15]  }
  0x87   : > { %v523_v25 = vld [vmem:[#allocation2] sm:$0xf]  ;;  %v576_v26 = vld [vmem:[#allocation3] sm:$0xf]  ;;  %p1311_p6 = scmp.ne.s32.totalorder %s1703_s30, %s1310_s17  ;;  %s1314_s21 = sshll.u32 %s1444_s20, 4  ;;  %s1315_s21 = int_to_ptr.vmem [resolvable:$false] %s1314_s21 }
  0x88   : > { %s1316_s27 = scalar_lea.vmem %s1315_s21, 64  ;;  %p1317_p5 = scmp.lt.s32.totalorder %s1703_s30, %s1315_s21 }
  0x89   : > { %p1312_p2 = pnand %p1311_p6, %p1625_p3  ;;  %p1318_p8 = scmp.lt.s32.totalorder %s1316_s27, %s1310_s17 }
  0x8b   : > { %p1313_p7 = pneg %p1312_p2  ;;  %p1319_p9 = por %p1318_p8, %p1317_p5 }
  0x8d   : > { %p1320_p11 = pnand %p1319_p9, %p1313_p7 }
 0x109   : > { %v496_v2 = vpop.xlane.xlu0 %495 }
 0x10a   : > { %v498_v3 = vmul.f32 0.03125, %v496_v2 }
 0x10c   : > { %v499_v4 = vsub.f32 %v490_v0, %v498_v3 }
 0x10e   : > { %v500_v5 = vmul.f32 %v499_v4, %v499_v4 }
 0x110   : > { %v501_v6 = vsel %vm493_vm0, %v500_v5, 0.0 }
 0x111   : > { %502 = vadd.xlane.f32.xlu0 %v501_v6 }
 0x19a   : > { %v503_v8 = vpop.xlane.xlu0 %502 }
 0x19b   : > { %v504_v9 = vmul.f32 0.03125, %v503_v8 }
 0x19d   : > { %v505_v10 = vadd.f32 1e-05, %v504_v9 }
 0x19f   : > { %1150 = vrsqrt.f32 %v505_v10 }
 0x1ac   : > { %v1151_v11 = vpop.eup %1150 }
 0x1ad   : > { %v507_v13 = vmul.f32 %v1151_v11, %v499_v4 }
 0x1af   : > { %v514_v15 = vmul.f32 %v970_v12, %v507_v13 }
 0x1b1   : > { %v521_v16 = vadd.f32 %v971_v14, %v514_v15 }
 0x1b3   : > { %v522_v17 = vpack.c.bf16 %v521_v16, %v521_v16 }
 0x1b5   : > { %v531_v18 = vsel %vm529_vm3, %v522_v17, 0 }
 0x1b6   : > { %997 = vmatpush3.bf16.msra.mxu0 %v531_v18  ;;  %1003 = vmatpush3.bf16.msra.mxu1 %v531_v18 }
 0x1b7   : > { %1008 = vmatprep.subr.bf16.mxu0 %v1442_v7  ;;  %1016 = vmatprep.subr.bf16.mxu1 %v1442_v7 }
 0x1b9   : > { %999 = vmatmul.mubr.msk.bf16.vlgmr.msra.gmra.mxu0 %vm525_vm4, %v524_v19  ;;  %1005 = vmatmul.mubr.msk.bf16.vlgmr.msra.gmra.mxu1 %vm525_vm4, %v577_v20 }
 0x1ba   : > { %1012 = vmatprep.mubr.msk.bf16.mxu0 %vm1443_vm1, %v1442_v7  ;;  %1020 = vmatprep.mubr.msk.bf16.mxu1 %vm1443_vm1, %v1442_v7 }
 0x1bb   : > { %1009 = vmatpush3.bf16.msra.mxu0 %v1146_v21  ;;  %1017 = vmatpush3.bf16.msra.mxu1 %v1147_v22 }
 0x1bc   : > { %1010 = vmatprep.subr.bf16.mxu0 %v1442_v7  ;;  %1018 = vmatprep.subr.bf16.mxu1 %v1442_v7 }
 0x1bf   : > { %1011 = vmatpush3.bf16.msra.mxu0 %v1148_v23  ;;  %1019 = vmatpush3.bf16.msra.mxu1 %v1149_v24 }
 0x279   : > { %v567_v27 = vpop.f32.mrf.mxu0  ;;  %v615_v28 = vpop.f32.mrf.mxu1 }
 0x27a   : > { %v573_v29 = vadd.f32 %v567_v27, %v523_v25  ;;  %v621_v30 = vadd.f32 %v615_v28, %v576_v26 }
 0x27b   : > { %v1000_v31 = vpop.f32.mrf.mxu0  ;;  %v1006_v32 = vpop.f32.mrf.mxu1 }
 0x27c   : > { %575 = vst.msk [vmem:[#allocation2] sm:$0xf] %vm487_vm2, %v573_v29  ;;  %622 = vst.msk [vmem:[#allocation3] sm:$0xf] %vm487_vm2, %v621_v30 }
 0x27d   : > { %v570_v33 = vpop.f32.mrf.mxu0  ;;  %v618_v34 = vpop.f32.mrf.mxu1 }
 0x27f   : > { %v1001_v35 = vpop.f32.mrf.mxu0  ;;  %v1007_v36 = vpop.f32.mrf.mxu1 }
 0x283   : > { %v626_v37 = vld [vmem:[#allocation2] sm:$0xf]  ;;  %v691_v38 = vld [vmem:[#allocation3] sm:$0xf] }
 0x284   : > { %v627_v39 = vpack.c.bf16 %v626_v37, %v626_v37  ;;  %v692_v40 = vpack.c.bf16 %v691_v38, %v691_v38 }
 0x286   : > { %1013 = vmatmul.mubr.msk.bf16.vlgmr.msra.gmra.mxu0 %vm493_vm0, %v627_v39  ;;  %1021 = vmatmul.mubr.msk.bf16.vlgmr.msra.gmra.mxu1 %vm493_vm0, %v692_v40 }
 0x346   : > { %v682_v43 = vpop.f32.mrf.mxu0  ;;  %v747_v44 = vpop.f32.mrf.mxu1 }
 0x347   : > { %v683_v45 = vadd.f32 %v682_v43, %v632_v41  ;;  %v748_v46 = vadd.f32 %v747_v44, %v697_v42 }
 0x348   : > { %v1014_v47 = vpop.f32.mrf.mxu0  ;;  %v1022_v48 = vpop.f32.mrf.mxu1 }
 0x349   : > { %v688_v49 = vpack.c.bf16 %v683_v45, %v683_v45  ;;  %v753_v50 = vpack.c.bf16 %v748_v46, %v748_v46 }
 0x34a   : > { %v685_v51 = vpop.f32.mrf.mxu0  ;;  %v750_v52 = vpop.f32.mrf.mxu1 }
 0x34b   : > { %690 = vst.msk [vmem:[%s474_s23] sm:$0x3] %vm689_vm5, %v688_v49  ;;  %754 = vst.msk [vmem:[%s481_s29] sm:$0x3] %vm689_vm5, %v753_v50 }
 0x34c   : > { %v1015_v53 = vpop.f32.mrf.mxu0  ;;  %v1023_v54 = vpop.f32.mrf.mxu1 }
 0x34d   : > { %1323 = shalt.err (!%p1320_p11)
}
 0x34e   : > { %s1324_s25 = scalar_lea.hbm %s1701_s22, 32  ;;  %s1328_s29 = scalar_lea.hbm %s1786_s9, 64 }
 0x34f   : > { %p1325_p12 = scmp.ne.s32.totalorder %s1701_s22, %s1324_s25  ;;  %p1329_p10 = scmp.lt.s32.totalorder %s1701_s22, %s1786_s9 }
 0x350   : > { %p1330_p1 = scmp.lt.s32.totalorder %s1328_s29, %s1324_s25 }
 0x351   : > { %p1326_p13 = pnand %p1325_p12, %p1625_p3 }
 0x352   : > { %p1331_p6 = por %p1330_p1, %p1329_p10 }
 0x353   : > { %p1327_p0 = pneg %p1326_p13 }
 0x355   : > { %p1332_p2 = pnand %p1331_p6, %p1327_p0 }
 0x357   : > { %1335 = shalt.err (!%p1332_p2)
}
 0x358   : > { %1046 = dma.vmem_to_hbm [thread:$0]  (%p1625_p3), %s1703_s30, 32, %s1701_s22, %s756_s6  }
 0x359   : > { %s761_s16 = scalar_lea.sflag [#allocation17], %s1655_s3  ;;  %s1336_s19 = scalar_lea.vmem %s1710_s26, 32 }
 0x35a   : > { %p1337_p7 = scmp.ne.s32.totalorder %s1710_s26, %s1336_s19  ;;  %s1445_s17 = smov [#allocation16]  }
 0x35b   : > { %s1340_s20 = sshll.u32 %s1445_s17, 4  ;;  %s1341_s20 = int_to_ptr.vmem [resolvable:$false] %s1340_s20 }
 0x35c   : > { %p1338_p5 = pnand %p1337_p7, %p1625_p3  ;;  %s1342_s21 = scalar_lea.vmem %s1341_s20, 64 }
 0x35d   : > { %p1343_p9 = scmp.lt.s32.totalorder %s1710_s26, %s1341_s20  ;;  %p1344_p11 = scmp.lt.s32.totalorder %s1342_s21, %s1336_s19 }
 0x35e   : > { %p1339_p8 = pneg %p1338_p5 }
 0x35f   : > { %p1345_p12 = por %p1344_p11, %p1343_p9 }
 0x361   : > { %p1346_p13 = pnand %p1345_p12, %p1339_p8 }
 0x363   : > { %1349 = shalt.err (!%p1346_p13)
}
 0x364   : > { %s1350_s30 = scalar_lea.hbm %s1708_s5, 32  ;;  %s1354_s6 = scalar_lea.hbm %s1787_s10, 64 }
 0x365   : > { %p1351_p0 = scmp.ne.s32.totalorder %s1708_s5, %s1350_s30  ;;  %p1355_p6 = scmp.lt.s32.totalorder %s1708_s5, %s1787_s10 }
 0x366   : > { %p1356_p2 = scmp.lt.s32.totalorder %s1354_s6, %s1350_s30 }
 0x367   : > { %p1352_p10 = pnand %p1351_p0, %p1625_p3 }
 0x368   : > { %p1357_p7 = por %p1356_p2, %p1355_p6 }
 0x369   : > { %p1353_p1 = pneg %p1352_p10 }
 0x36b   : > { %p1358_p5 = pnand %p1357_p7, %p1353_p1 }
 0x36d   : > { %1361 = shalt.err (!%p1358_p5)
}
 0x36e   : > { %1047 = dma.vmem_to_hbm [thread:$0]  (%p1625_p3), %s1710_s26, 32, %s1708_s5, %s761_s16  }
 0x36f PF: > { %s799_s24 = sand.u32 1, %s1412_s13   ;;  %p1819_p8 = scmp.ge.s32.totalorder %s1432_s18, 2 }
 0x370   : > { %s800_s23 = scalar_lea.sflag [#allocation6], %s799_s24 }
 0x371   : > { %p1071_p9 = pnand %p1819_p8, %p1633_p4 }
 0x373   : > { %p1072_p11 = pneg %p1071_p9 }
 0x375   : > { %1403 = dma.done.wait (%p1072_p11), %s800_s23, 32  }
 0x376   : > { %1405 = vsyncadd (%p1072_p11), %s800_s23, 4294967264  ;;  %s809_s29 = scalar_lea.sflag [#allocation17], %s799_s24 }
 0x377   : > { %1407 = dma.done.wait (%p1072_p11), %s809_s29, 32  }
 0x378   : > { %1409 = vsyncadd (%p1072_p11), %s809_s29, 4294967264  ;;  %s33_s18 = sadd.s32 1, %s1432_s18   ;;  %s1820_s16 = sld [smem:[#allocation24_spill]] }
 0x379   : > { %p30_p12 = scmp.ge.s32.totalorder %s33_s18, 4   ;;  %s1821_s17 = sld [smem:[#allocation25_spill]] }
 0x37a   : > { %s1822_s13 = smov %s1416_s14  ;;  %s1823_s14 = smov %s1420_s15 }
 0x37b   : > { %s1824_s15 = smov %s1631_s11  ;;  %32 = sbr.rel (!%p30_p12) target bundleno = 17 (0x11), region = 148 }
 0x380   :  { %814 = vsyncpa [#allocation5], 1 }
 0x381   :  { %816 = vsyncpa [#allocation5 + $0x1], 1 }
 0x382   :  { %817 = vsyncpa [#allocation8], 1 }
 0x383   :  { %818 = vsyncpa [#allocation11], 1 }
 0x384   :  { %819 = vsyncpa [#allocation14], 1 }
 0x385   :  { %820 = vsyncpa [#allocation6], 1 }
 0x386   :  { %822 = vsyncpa [#allocation6 + $0x1], 1 }
 0x387   :  { %823 = vsyncpa [#allocation17], 1 }
 0x388   :  { %825 = vsyncpa [#allocation17 + $0x1], 1 }

// kernel: tpu_custom_call.1
= control target key start
LH: loop header
LB: loop body
LE: loop exit
PB: predicated region body
PF: predicated region fallthrough
CT: control target
= control target key end

     0   :  { %s1777_s0 = inlined_call_operand.hbm [shape: f32[2,8,32], index: 0, kind: input, shape index: {}]   ;;  %s1778_s1 = inlined_call_operand.vmem [shape: f32[1,32], index: 1, kind: input, shape index: {}]   ;;  %s1779_s2 = inlined_call_operand.hbm [shape: f32[1,32], index: 2, kind: input, shape index: {}]   ;;  %s1780_s3 = inlined_call_operand.hbm [shape: bf16[4,8], index: 3, kind: input, shape index: {}]   ;;  %s1781_s4 = inlined_call_operand.hbm [shape: bf16[4,8], index: 4, kind: input, shape index: {}]   ;;  %s1782_s5 = inlined_call_operand.hbm [shape: bf16[32,32], index: 5, kind: input, shape index: {}]   ;;  %s1783_s6 = inlined_call_operand.hbm [shape: bf16[32,32], index: 6, kind: input, shape index: {}]   ;;  %s1784_s7 = inlined_call_operand.vmem [shape: f32[4,32], index: 7, kind: input, shape index: {}]   ;;  %s1785_s8 = inlined_call_operand.vmem [shape: f32[4,32], index: 8, kind: input, shape index: {}]   ;;  %s1786_s9 = inlined_call_operand.hbm [shape: bf16[2,4,32], index: 9, kind: output, shape index: {0}]   ;;  %s1787_s10 = inlined_call_operand.hbm [shape: bf16[2,4,32], index: 10, kind: output, shape index: {1}]  }
   0x1   :  { %1794 = sst [smem:[#allocation26_spill]] %s1779_s2 }
   0x2   :  { %1795 = sst [smem:[#allocation27_spill]] %s1780_s3 }
   0x3   :  { %1796 = sst [smem:[#allocation28_spill]] %s1781_s4 }
   0x4   :  { %1797 = sst [smem:[#allocation29_spill]] %s1782_s5 }
   0x5   :  { %1798 = sst [smem:[#allocation30_spill]] %s1783_s6 }
   0x6   :  { %16 = vsyncpa [#allocation5], 0 }
   0x7   :  { %18 = vsyncpa [#allocation5 + $0x1], 0 }
   0x8   :  { %19 = vsyncpa [#allocation8], 0 }
   0x9   :  { %20 = vsyncpa [#allocation11], 0 }
   0xa   :  { %21 = vsyncpa [#allocation14], 0 }
   0xb   :  { %22 = vsyncpa [#allocation6], 0 }
   0xc   :  { %24 = vsyncpa [#allocation6 + $0x1], 0 }
   0xd   :  { %25 = vsyncpa [#allocation17], 0 }
   0xe   :  { %27 = vsyncpa [#allocation17 + $0x1], 0  ;;  %s1501_s13 = smov 0   ;;  %s1503_s14 = smov 0  }
   0xf   :  { %s1505_s15 = smov 0   ;;  %s1507_s16 = smov 0  }
  0x10   :  { %s1509_s17 = smov 0   ;;  %s1511_s18 = smov 0  }
  0x11 LB: > { %1799 = sst [smem:[#allocation24_spill]] %s1428_s17  ;;  %s1791_s19 = sadd.s32 4294967295, %s1432_s18   ;;  %s1432_s18 = sphi %s1511_s18, %s33_s18   ;;  %s1428_s17 = sphi %s1509_s17, %s1821_s17   ;;  %s1424_s16 = sphi %s1507_s16, %s1820_s16   ;;  %s1420_s15 = sphi %s1505_s15, %s1824_s15   ;;  %s1416_s14 = sphi %s1503_s14, %s1823_s14   ;;  %s1412_s13 = sphi %s1501_s13, %s1822_s13  }
  0x12   : > { %p952_p0 = scmp.ge.s32.totalorder %s1432_s18, 1  ;;  %p1535_p1 = scmp.eq.s32.totalorder %s1791_s19, 0 }
  0x13   : > { %p308_p2 = scmp.lt.s32.totalorder %s1432_s18, 3  ;;  %s1434_s22 = smov [#allocation7]  }
  0x14   : > { %s1800_s20 = scalar_select %p1535_p1, 1, 0 }
  0x15   : > { %p1540_p3 = pnand %p952_p0, %p308_p2  ;;  %s324_s23 = sshll.u32 %s1434_s22, 4  ;;  %s325_s23 = int_to_ptr.vmem [resolvable:$true] %s324_s23 }
  0x16   : > { %s1435_s24 = smov [#allocation10]   ;;  %s1436_s27 = smov [#allocation9]  }
  0x17   : > { %s1801_s21 = scalar_select %p1540_p3, 1, 0 }
  0x18   : > { %p1050_p5 = pneg %p1540_p3  ;;  %s350_s25 = sshll.u32 %s1435_s24, 4  ;;  %s351_s25 = int_to_ptr.vmem [resolvable:$true] %s350_s25 }
  0x19   : > { %s337_s28 = sshll.u32 %s1436_s27, 4  ;;  %s1163_s30 = scalar_lea.vmem %s325_s23, 16  ;;  %s1553_s28 = int_to_ptr.vmem [resolvable:$true] %s337_s28 }
  0x1a   : > { %p1549_p6 = pnand %p1050_p5, %p1535_p1  ;;  %p1164_p8 = scmp.ne.s32.totalorder %s325_s23, %s1163_s30 }
  0x1b   : > { %s1170_s11 = scalar_lea.vmem %s325_s23, 32  ;;  %p1171_p11 = scmp.lt.s32.totalorder %s325_s23, %s325_s23 }
  0x1c   : > { %p1557_p7 = pneg %p1549_p6  ;;  %p1172_p12 = scmp.lt.s32.totalorder %s1170_s11, %s1163_s30 }
  0x1e   : > { %p1166_p9 = pnand %p1164_p8, %p1557_p7  ;;  %p1173_p13 = por %p1172_p12, %p1171_p11 }
  0x20   : > { %p1167_p10 = pneg %p1166_p9 }
  0x22   : > { %p1174_p0 = pnand %p1173_p13, %p1167_p10 }
  0x24   : > { %1177 = shalt.err (!%p1174_p0)
}
  0x25   : > { %s1804_s2 = sld [smem:[#allocation26_spill]]  ;;  %s1189_s24 = scalar_lea.vmem %s351_s25, 32 }
  0x26   : > { %p1190_p2 = scmp.ne.s32.totalorder %s351_s25, %s1189_s24  ;;  %p1197_p8 = scmp.lt.s32.totalorder %s351_s25, %s351_s25 }
  0x27   : > { %p1198_p9 = scmp.lt.s32.totalorder %s1189_s24, %s1189_s24 }
  0x28   : > { %p1192_p5 = pnand %p1190_p2, %p1557_p7 }
  0x29   : > { %p1199_p3 = por %p1198_p9, %p1197_p8 }
  0x2a   : > { %p1193_p4 = pneg %p1192_p5 }
  0x2b   : > { %1053 = dma.hbm_to_vmem [thread:$0]  (!%p1549_p6), %s1804_s2, 16, %s325_s23, [#allocation8]  }
  0x2c   : > { %p1200_p1 = pnand %p1199_p3, %p1193_p4 }
  0x2e   : > { %1203 = shalt.err (!%p1200_p1)
}
  0x2f   : > { %s1805_s4 = sld [smem:[#allocation28_spill]]  ;;  %s1215_s23 = scalar_lea.vmem %s1553_s28, 32 }
  0x30   : > { %p1216_p10 = scmp.ne.s32.totalorder %s1553_s28, %s1215_s23  ;;  %p1223_p13 = scmp.lt.s32.totalorder %s1553_s28, %s1553_s28 }
  0x31   : > { %p1224_p0 = scmp.lt.s32.totalorder %s1215_s23, %s1215_s23 }
  0x32   : > { %p1218_p11 = pnand %p1216_p10, %p1557_p7 }
  0x33   : > { %p1225_p3 = por %p1224_p0, %p1223_p13 }
  0x34   : > { %p1219_p12 = pneg %p1218_p11 }
  0x35   : > { %1059 = dma.hbm_to_vmem [thread:$0]  (!%p1549_p6), %s1805_s4, 32, %s351_s25, [#allocation11]  }
  0x36   : > { %p1226_p1 = pnand %p1225_p3, %p1219_p12 }
  0x38   : > { %1229 = shalt.err (!%p1226_p1)
}
  0x39   : > { %s1806_s3 = sld [smem:[#allocation27_spill]]  ;;  %s1437_s25 = smov [#allocation12]  }
  0x3a   : > { %s360_s22 = sshll.u32 %s1437_s25, 4  ;;  %s361_s22 = int_to_ptr.vmem [resolvable:$true] %s360_s22 }
  0x3b   : > { %s1241_s24 = scalar_lea.vmem %s361_s22, 256  ;;  %p1249_p8 = scmp.lt.s32.totalorder %s361_s22, %s361_s22 }
  0x3c   : > { %p1242_p4 = scmp.ne.s32.totalorder %s361_s22, %s1241_s24  ;;  %p1250_p9 = scmp.lt.s32.totalorder %s1241_s24, %s1241_s24 }
  0x3e   : > { %p1244_p2 = pnand %p1242_p4, %p1557_p7  ;;  %p1251_p10 = por %p1250_p9, %p1249_p8 }
  0x3f   : > { %1056 = dma.hbm_to_vmem [thread:$0]  (!%p1549_p6), %s1806_s3, 32, %s1553_s28, [#allocation8]  }
  0x40   : > { %p1245_p5 = pneg %p1244_p2 }
  0x42   : > { %p1252_p11 = pnand %p1251_p10, %p1245_p5 }
  0x44   : > { %1255 = shalt.err (!%p1252_p11)
}
  0x45   : > { %s1438_s27 = smov 64   ;;  %s1439_s30 = smov 4  }
  0x46   : > { %s1807_s5 = sld [smem:[#allocation29_spill]]  ;;  %s1440_s11 = smov [#allocation13]  }
  0x47   : > { %s373_s12 = sshll.u32 %s1440_s11, 4  ;;  %s374_s12 = int_to_ptr.vmem [resolvable:$true] %s373_s12 }
  0x48   : > { %s1267_s25 = scalar_lea.vmem %s374_s12, 256  ;;  %p1275_p3 = scmp.lt.s32.totalorder %s374_s12, %s374_s12 }
  0x49   : > { %p1268_p12 = scmp.ne.s32.totalorder %s374_s12, %s1267_s25  ;;  %p1276_p1 = scmp.lt.s32.totalorder %s1267_s25, %s1267_s25 }
  0x4b   : > { %p1270_p13 = pnand %p1268_p12, %p1557_p7  ;;  %p1277_p4 = por %p1276_p1, %p1275_p3 }
  0x4c   : > { %1062 = dma.hbm_to_vmem [thread:$0]  (!%p1549_p6), %s1807_s5, 256, %s361_s22, [#allocation11], %s1438_s27, %s1438_s27, %s1439_s30  }
  0x4d   : > { %p1271_p0 = pneg %p1270_p13 }
  0x4f   : > { %p1278_p2 = pnand %p1277_p4, %p1271_p0 }
  0x51   : > { %1281 = shalt.err (!%p1278_p2)
}
  0x52   : > { %s1808_s6 = sld [smem:[#allocation30_spill]]  ;;  %s951_s29 = sadd.s32 4294967294, %s1432_s18  }
  0x53   : > { %s45_s22 = sadd.s32 1, %s1428_s17  ;;  %s54_s26 = sadd.s32 1, %s1420_s15 }
  0x54   : > { %p47_p7 = scmp.ge.s32.totalorder %s45_s22, 2  ;;  %p61_p5 = scmp.ne.s32.totalorder %s1420_s15, %s1416_s14 }
  0x55   : > { %p62_p8 = scmp.eq.s32.totalorder %s1432_s18, 0  ;;  %p67_p9 = scmp.ne.s32.totalorder %s1416_s14, %s1412_s13 }
  0x56   : > { %s1826_s22 = smov (%p47_p7, %s45_s22), 0  ;;  %p1811_p11 = scmp.ne.s32.totalorder %s1800_s20, 0 }
  0x57   : > { %1809 = sst [smem:[#allocation25_spill]] %s1826_s22  ;;  %p1611_p10 = por %p62_p8, %p61_p5 }
  0x58   : > { %1065 = dma.hbm_to_vmem [thread:$0]  (!%p1549_p6), %s1808_s6, 256, %s374_s12, [#allocation14], %s1438_s27, %s1438_s27, %s1439_s30  }
  0x59   : > { %p1617_p6 = por %p1811_p11, %p67_p9  ;;  %s49_s30 = ssub.s32 %s1428_s17, %s1826_s22 }
  0x5a   : > { %s1813_s23 = sadd.s32 4294967295, %s1432_s18   ;;  %p52_p13 = scmp.eq.s32.totalorder %s49_s30, 0 }
  0x5b   : > { %p269_p12 = scmp.eq.s32.totalorder %s1813_s23, 1  ;;  %p275_p0 = scmp.eq.s32.totalorder %s951_s29, 1 }
  0x5c   : > { %p1082_p1 = scmp.lt.s32.totalorder %s1432_s18, 2  ;;  %s393_s25 = sand.u32 1, %s1420_s15  }
  0x5d   : > { %p1625_p3 = por %p269_p12, %p61_p5  ;;  %p1633_p4 = por %p275_p0, %p67_p9 }
  0x5e   : > { %s1631_s11 = scalar_select %p52_p13, %s1420_s15, %s54_s26  }
  0x5f   : > { %s959_s24 = sshll.u32 %s393_s25, 3  ;;  %s960_s2 = sshll.u32 %s1428_s17, 7 }
  0x60   : > { %s403_s23 = scalar_lea.hbm %s1777_s0, %s960_s2  ;;  %s397_s30 = scalar_lea.vmem [#allocation4], %s959_s24 }
  0x61   : > { %s405_s29 = sshll.u32 %s397_s30, 4  ;;  %p1644_p2 = pnand %p1082_p1, %p1611_p10  ;;  %s406_s29 = int_to_ptr.vmem [resolvable:$true] %s405_s29 }
  0x62   : > { %s394_s26 = scalar_lea.sflag [#allocation5], %s393_s25  ;;  %s1295_s6 = scalar_lea.vmem %s406_s29, 128 }
  0x63   : > { %p1284_p7 = pneg %p1644_p2  ;;  %p1296_p5 = scmp.ne.s32.totalorder %s406_s29, %s1295_s6 }
  0x64   : > { %s1441_s22 = smov [#allocation4]  }
  0x65   : > { %p1298_p8 = pnand %p1296_p5, %p1284_p7  ;;  %s1300_s17 = sshll.u32 %s1441_s22, 4  ;;  %s1301_s17 = int_to_ptr.vmem [resolvable:$false] %s1300_s17 }
  0x66   : > { %s1302_s2 = scalar_lea.vmem %s1301_s17, 256  ;;  %p1303_p11 = scmp.lt.s32.totalorder %s406_s29, %s1301_s17 }
  0x67   : > { %p1299_p9 = pneg %p1298_p8  ;;  %p1304_p12 = scmp.lt.s32.totalorder %s1302_s2, %s1295_s6 }
  0x69   : > { %p1305_p13 = por %p1304_p12, %p1303_p11 }
  0x6b   : > { %p1306_p0 = pnand %p1305_p13, %p1299_p9 }
  0x6d   : > { %1309 = shalt.err (!%p1306_p0)
}
  0x6e   : > { %1069 = dma.hbm_to_vmem [thread:$0]  (!%p1644_p2), %s403_s23, 128, %s406_s29, %s394_s26  }
  0x6f   : > { %p1817_p10 = scmp.ne.s32.totalorder %s1801_s21, 0 }
  0x70   : > { %s1655_s3 = sand.u32 (!%p1817_p10), 1, %s1416_s14  }
  0x71   : > { %414 = sbr.rel (%p1817_p10) target bundleno = 879 (0x36f), region = 56  ;;  %s962_s4 = sshll.u32 (!%p1817_p10), %s1655_s3, 3 }
  0x72   : > { %s417_s22 = scalar_lea.sflag (!%p1817_p10), [#allocation5], %s1655_s3  ;;  %s420_s19 = scalar_lea.vmem (!%p1817_p10), [#allocation4], %s962_s4 }
  0x76   : > { %1387 = dma.done.wait (%p1617_p6), %s417_s22, 128  }
  0x77   : > { %1389 = vsyncadd (%p1617_p6), %s417_s22, 4294967168  ;;  %p1818_p1 = scmp.ne.s32.totalorder %s1800_s20, 0 }
  0x79   : > { %1391 = dma.done.wait (%p1818_p1), [#allocation8], 48  }
  0x7a   : > { %1393 = vsyncadd (%p1818_p1), [#allocation8], 4294967248 }
  0x7b   : > { %1395 = dma.done.wait (%p1818_p1), [#allocation11], 288  }
  0x7c   : > { %1397 = vsyncadd (%p1818_p1), [#allocation11], 4294967008 }
  0x7d   : > { %1399 = dma.done.wait (%p1818_p1), [#allocation14], 256  }
  0x7e   : > { %1401 = vsyncadd (%p1818_p1), [#allocation14], 4294967040  ;;  %vm493_vm0 = vcmask 261120   ;;  %v490_v0 = vld [vmem:[%s420_s19] sm:$0xff]  ;;  %v1442_v7 = vmov 0.0   ;;  %vm1443_vm1 = vmmov 0  }
  0x7f   : > { %v494_v1 = vsel %vm493_vm0, %v490_v0, 0.0  ;;  %996 = vmatprep.subr.bf16.mxu0 %v1442_v7  ;;  %1002 = vmatprep.subr.bf16.mxu1 %v1442_v7  ;;  %vm487_vm2 = vcmask 257024   ;;  %v970_v12 = vld [vmem:[%s1778_s1] ss:$0 sm:$0xff]  ;;  %v971_v14 = vld [vmem:[#allocation7] ss:$0 sm:$0xff] }
  0x80   : > { %495 = vadd.xlane.f32.xlu0 %v494_v1  ;;  %998 = vmatprep.mubr.msk.bf16.mxu0 %vm1443_vm1, %v1442_v7  ;;  %488 = vst.msk [vmem:[#allocation2] sm:$0xf] %vm487_vm2, %v1442_v7  ;;  %489 = vst.msk [vmem:[#allocation3] sm:$0xf] %vm487_vm2, %v1442_v7  ;;  %vm529_vm3 = vcmask 1043456   ;;  %vm525_vm4 = vcmask 64512  }
  0x81   : > { %1004 = vmatprep.mubr.msk.bf16.mxu1 %vm1443_vm1, %v1442_v7  ;;  %v524_v19 = vld [vmem:[#allocation9] sm:$0x3]  ;;  %v577_v20 = vld [vmem:[#allocation10] sm:$0x3]  ;;  %v1146_v21 = vld [vmem:[#allocation12 + $0x8] sm:$0xff]   ;;  %s968_s17 = sshll.u32 %s1655_s3, 1 }
  0x82   : > { %v1147_v22 = vld [vmem:[#allocation13 + $0x8] sm:$0xff]   ;;  %v1148_v23 = vld [vmem:[#allocation12] sm:$0xff]   ;;  %v1149_v24 = vld [vmem:[#allocation13] sm:$0xff]   ;;  %s982_s24 = sshll.u32 %s1424_s16, 5  ;;  %s474_s23 = scalar_lea.vmem [#allocation15], %s968_s17  ;;  %vm689_vm5 = vcmask 254976  }
  0x83   : > { %v632_v41 = vld [vmem:[%s1784_s7] sm:$0xf]  ;;  %s774_s30 = sshll.u32 %s474_s23, 4  ;;  %s481_s29 = scalar_lea.vmem [#allocation16], %s968_s17  ;;  %s1703_s30 = int_to_ptr.vmem [resolvable:$true] %s774_s30 }
  0x84   : > { %v697_v42 = vld [vmem:[%s1785_s8] sm:$0xf]  ;;  %s787_s26 = sshll.u32 %s481_s29, 4  ;;  %s1701_s22 = scalar_lea.hbm %s1786_s9, %s982_s24  ;;  %s1710_s26 = int_to_ptr.vmem [resolvable:$true] %s787_s26 }
  0x85   : > { %s1708_s5 = scalar_lea.hbm %s1787_s10, %s982_s24  ;;  %s756_s6 = scalar_lea.sflag [#allocation6], %s1655_s3 }
  0x86   : > { %s1310_s17 = scalar_lea.vmem %s1703_s30, 32  ;;  %s1444_s20 = smov [#allocation15]  }
  0x87   : > { %v523_v25 = vld [vmem:[#allocation2] sm:$0xf]  ;;  %v576_v26 = vld [vmem:[#allocation3] sm:$0xf]  ;;  %p1311_p6 = scmp.ne.s32.totalorder %s1703_s30, %s1310_s17  ;;  %s1314_s21 = sshll.u32 %s1444_s20, 4  ;;  %s1315_s21 = int_to_ptr.vmem [resolvable:$false] %s1314_s21 }
  0x88   : > { %s1316_s27 = scalar_lea.vmem %s1315_s21, 64  ;;  %p1317_p5 = scmp.lt.s32.totalorder %s1703_s30, %s1315_s21 }
  0x89   : > { %p1312_p2 = pnand %p1311_p6, %p1625_p3  ;;  %p1318_p8 = scmp.lt.s32.totalorder %s1316_s27, %s1310_s17 }
  0x8b   : > { %p1313_p7 = pneg %p1312_p2  ;;  %p1319_p9 = por %p1318_p8, %p1317_p5 }
  0x8d   : > { %p1320_p11 = pnand %p1319_p9, %p1313_p7 }
 0x109   : > { %v496_v2 = vpop.xlane.xlu0 %495 }
 0x10a   : > { %v498_v3 = vmul.f32 0.03125, %v496_v2 }
 0x10c   : > { %v499_v4 = vsub.f32 %v490_v0, %v498_v3 }
 0x10e   : > { %v500_v5 = vmul.f32 %v499_v4, %v499_v4 }
 0x110   : > { %v501_v6 = vsel %vm493_vm0, %v500_v5, 0.0 }
 0x111   : > { %502 = vadd.xlane.f32.xlu0 %v501_v6 }
 0x19a   : > { %v503_v8 = vpop.xlane.xlu0 %502 }
 0x19b   : > { %v504_v9 = vmul.f32 0.03125, %v503_v8 }
 0x19d   : > { %v505_v10 = vadd.f32 1e-05, %v504_v9 }
 0x19f   : > { %1150 = vrsqrt.f32 %v505_v10 }
 0x1ac   : > { %v1151_v11 = vpop.eup %1150 }
 0x1ad   : > { %v507_v13 = vmul.f32 %v1151_v11, %v499_v4 }
 0x1af   : > { %v514_v15 = vmul.f32 %v970_v12, %v507_v13 }
 0x1b1   : > { %v521_v16 = vadd.f32 %v971_v14, %v514_v15 }
 0x1b3   : > { %v522_v17 = vpack.c.bf16 %v521_v16, %v521_v16 }
 0x1b5   : > { %v531_v18 = vsel %vm529_vm3, %v522_v17, 0 }
 0x1b6   : > { %997 = vmatpush3.bf16.msra.mxu0 %v531_v18  ;;  %1003 = vmatpush3.bf16.msra.mxu1 %v531_v18 }
 0x1b7   : > { %1008 = vmatprep.subr.bf16.mxu0 %v1442_v7  ;;  %1016 = vmatprep.subr.bf16.mxu1 %v1442_v7 }
 0x1b9   : > { %999 = vmatmul.mubr.msk.bf16.vlgmr.msra.gmra.mxu0 %vm525_vm4, %v524_v19  ;;  %1005 = vmatmul.mubr.msk.bf16.vlgmr.msra.gmra.mxu1 %vm525_vm4, %v577_v20 }
 0x1ba   : > { %1012 = vmatprep.mubr.msk.bf16.mxu0 %vm1443_vm1, %v1442_v7  ;;  %1020 = vmatprep.mubr.msk.bf16.mxu1 %vm1443_vm1, %v1442_v7 }
 0x1bb   : > { %1009 = vmatpush3.bf16.msra.mxu0 %v1146_v21  ;;  %1017 = vmatpush3.bf16.msra.mxu1 %v1147_v22 }
 0x1bc   : > { %1010 = vmatprep.subr.bf16.mxu0 %v1442_v7  ;;  %1018 = vmatprep.subr.bf16.mxu1 %v1442_v7 }
 0x1bf   : > { %1011 = vmatpush3.bf16.msra.mxu0 %v1148_v23  ;;  %1019 = vmatpush3.bf16.msra.mxu1 %v1149_v24 }
 0x279   : > { %v567_v27 = vpop.f32.mrf.mxu0  ;;  %v615_v28 = vpop.f32.mrf.mxu1 }
 0x27a   : > { %v573_v29 = vadd.f32 %v567_v27, %v523_v25  ;;  %v621_v30 = vadd.f32 %v615_v28, %v576_v26 }
 0x27b   : > { %v1000_v31 = vpop.f32.mrf.mxu0  ;;  %v1006_v32 = vpop.f32.mrf.mxu1 }
 0x27c   : > { %575 = vst.msk [vmem:[#allocation2] sm:$0xf] %vm487_vm2, %v573_v29  ;;  %622 = vst.msk [vmem:[#allocation3] sm:$0xf] %vm487_vm2, %v621_v30 }
 0x27d   : > { %v570_v33 = vpop.f32.mrf.mxu0  ;;  %v618_v34 = vpop.f32.mrf.mxu1 }
 0x27f   : > { %v1001_v35 = vpop.f32.mrf.mxu0  ;;  %v1007_v36 = vpop.f32.mrf.mxu1 }
 0x283   : > { %v626_v37 = vld [vmem:[#allocation2] sm:$0xf]  ;;  %v691_v38 = vld [vmem:[#allocation3] sm:$0xf] }
 0x284   : > { %v627_v39 = vpack.c.bf16 %v626_v37, %v626_v37  ;;  %v692_v40 = vpack.c.bf16 %v691_v38, %v691_v38 }
 0x286   : > { %1013 = vmatmul.mubr.msk.bf16.vlgmr.msra.gmra.mxu0 %vm493_vm0, %v627_v39  ;;  %1021 = vmatmul.mubr.msk.bf16.vlgmr.msra.gmra.mxu1 %vm493_vm0, %v692_v40 }
 0x346   : > { %v682_v43 = vpop.f32.mrf.mxu0  ;;  %v747_v44 = vpop.f32.mrf.mxu1 }
 0x347   : > { %v683_v45 = vadd.f32 %v682_v43, %v632_v41  ;;  %v748_v46 = vadd.f32 %v747_v44, %v697_v42 }
 0x348   : > { %v1014_v47 = vpop.f32.mrf.mxu0  ;;  %v1022_v48 = vpop.f32.mrf.mxu1 }
 0x349   : > { %v688_v49 = vpack.c.bf16 %v683_v45, %v683_v45  ;;  %v753_v50 = vpack.c.bf16 %v748_v46, %v748_v46 }
 0x34a   : > { %v685_v51 = vpop.f32.mrf.mxu0  ;;  %v750_v52 = vpop.f32.mrf.mxu1 }
 0x34b   : > { %690 = vst.msk [vmem:[%s474_s23] sm:$0x3] %vm689_vm5, %v688_v49  ;;  %754 = vst.msk [vmem:[%s481_s29] sm:$0x3] %vm689_vm5, %v753_v50 }
 0x34c   : > { %v1015_v53 = vpop.f32.mrf.mxu0  ;;  %v1023_v54 = vpop.f32.mrf.mxu1 }
 0x34d   : > { %1323 = shalt.err (!%p1320_p11)
}
 0x34e   : > { %s1324_s25 = scalar_lea.hbm %s1701_s22, 32  ;;  %s1328_s29 = scalar_lea.hbm %s1786_s9, 64 }
 0x34f   : > { %p1325_p12 = scmp.ne.s32.totalorder %s1701_s22, %s1324_s25  ;;  %p1329_p10 = scmp.lt.s32.totalorder %s1701_s22, %s1786_s9 }
 0x350   : > { %p1330_p1 = scmp.lt.s32.totalorder %s1328_s29, %s1324_s25 }
 0x351   : > { %p1326_p13 = pnand %p1325_p12, %p1625_p3 }
 0x352   : > { %p1331_p6 = por %p1330_p1, %p1329_p10 }
 0x353   : > { %p1327_p0 = pneg %p1326_p13 }
 0x355   : > { %p1332_p2 = pnand %p1331_p6, %p1327_p0 }
 0x357   : > { %1335 = shalt.err (!%p1332_p2)
}
 0x358   : > { %1046 = dma.vmem_to_hbm [thread:$0]  (%p1625_p3), %s1703_s30, 32, %s1701_s22, %s756_s6  }
 0x359   : > { %s761_s16 = scalar_lea.sflag [#allocation17], %s1655_s3  ;;  %s1336_s19 = scalar_lea.vmem %s1710_s26, 32 }
 0x35a   : > { %p1337_p7 = scmp.ne.s32.totalorder %s1710_s26, %s1336_s19  ;;  %s1445_s17 = smov [#allocation16]  }
 0x35b   : > { %s1340_s20 = sshll.u32 %s1445_s17, 4  ;;  %s1341_s20 = int_to_ptr.vmem [resolvable:$false] %s1340_s20 }
 0x35c   : > { %p1338_p5 = pnand %p1337_p7, %p1625_p3  ;;  %s1342_s21 = scalar_lea.vmem %s1341_s20, 64 }
 0x35d   : > { %p1343_p9 = scmp.lt.s32.totalorder %s1710_s26, %s1341_s20  ;;  %p1344_p11 = scmp.lt.s32.totalorder %s1342_s21, %s1336_s19 }
 0x35e   : > { %p1339_p8 = pneg %p1338_p5 }
 0x35f   : > { %p1345_p12 = por %p1344_p11, %p1343_p9 }
 0x361   : > { %p1346_p13 = pnand %p1345_p12, %p1339_p8 }
 0x363   : > { %1349 = shalt.err (!%p1346_p13)
}
 0x364   : > { %s1350_s30 = scalar_lea.hbm %s1708_s5, 32  ;;  %s1354_s6 = scalar_lea.hbm %s1787_s10, 64 }
 0x365   : > { %p1351_p0 = scmp.ne.s32.totalorder %s1708_s5, %s1350_s30  ;;  %p1355_p6 = scmp.lt.s32.totalorder %s1708_s5, %s1787_s10 }
 0x366   : > { %p1356_p2 = scmp.lt.s32.totalorder %s1354_s6, %s1350_s30 }
 0x367   : > { %p1352_p10 = pnand %p1351_p0, %p1625_p3 }
 0x368   : > { %p1357_p7 = por %p1356_p2, %p1355_p6 }
 0x369   : > { %p1353_p1 = pneg %p1352_p10 }
 0x36b   : > { %p1358_p5 = pnand %p1357_p7, %p1353_p1 }
 0x36d   : > { %1361 = shalt.err (!%p1358_p5)
}
 0x36e   : > { %1047 = dma.vmem_to_hbm [thread:$0]  (%p1625_p3), %s1710_s26, 32, %s1708_s5, %s761_s16  }
 0x36f PF: > { %s799_s24 = sand.u32 1, %s1412_s13   ;;  %p1819_p8 = scmp.ge.s32.totalorder %s1432_s18, 2 }
 0x370   : > { %s800_s23 = scalar_lea.sflag [#allocation6], %s799_s24 }
 0x371   : > { %p1071_p9 = pnand %p1819_p8, %p1633_p4 }
 0x373   : > { %p1072_p11 = pneg %p1071_p9 }
 0x375   : > { %1403 = dma.done.wait (%p1072_p11), %s800_s23, 32  }
 0x376   : > { %1405 = vsyncadd (%p1072_p11), %s800_s23, 4294967264  ;;  %s809_s29 = scalar_lea.sflag [#allocation17], %s799_s24 }
 0x377   : > { %1407 = dma.done.wait (%p1072_p11), %s809_s29, 32  }
 0x378   : > { %1409 = vsyncadd (%p1072_p11), %s809_s29, 4294967264  ;;  %s33_s18 = sadd.s32 1, %s1432_s18   ;;  %s1820_s16 = sld [smem:[#allocation24_spill]] }
 0x379   : > { %p30_p12 = scmp.ge.s32.totalorder %s33_s18, 4   ;;  %s1821_s17 = sld [smem:[#allocation25_spill]] }
 0x37a   : > { %s1822_s13 = smov %s1416_s14  ;;  %s1823_s14 = smov %s1420_s15 }
 0x37b   : > { %s1824_s15 = smov %s1631_s11  ;;  %32 = sbr.rel (!%p30_p12) target bundleno = 17 (0x11), region = 148 }
 0x380   :  { %814 = vsyncpa [#allocation5], 1 }
 0x381   :  { %816 = vsyncpa [#allocation5 + $0x1], 1 }
 0x382   :  { %817 = vsyncpa [#allocation8], 1 }
 0x383   :  { %818 = vsyncpa [#allocation11], 1 }
 0x384   :  { %819 = vsyncpa [#allocation14], 1 }
 0x385   :  { %820 = vsyncpa [#allocation6], 1 }
 0x386   :  { %822 = vsyncpa [#allocation6 + $0x1], 1 }
 0x387   :  { %823 = vsyncpa [#allocation17], 1 }
 0x388   :  { %825 = vsyncpa [#allocation17 + $0x1], 1 }

// kernel: tpu_custom_call.1
= control target key start
LH: loop header
LB: loop body
LE: loop exit
PB: predicated region body
PF: predicated region fallthrough
CT: control target
= control target key end

     0   :  { %s1777_s0 = inlined_call_operand.hbm [shape: f32[2,8,32], index: 0, kind: input, shape index: {}]   ;;  %s1778_s1 = inlined_call_operand.vmem [shape: f32[1,32], index: 1, kind: input, shape index: {}]   ;;  %s1779_s2 = inlined_call_operand.hbm [shape: f32[1,32], index: 2, kind: input, shape index: {}]   ;;  %s1780_s3 = inlined_call_operand.hbm [shape: bf16[4,8], index: 3, kind: input, shape index: {}]   ;;  %s1781_s4 = inlined_call_operand.hbm [shape: bf16[4,8], index: 4, kind: input, shape index: {}]   ;;  %s1782_s5 = inlined_call_operand.hbm [shape: bf16[32,32], index: 5, kind: input, shape index: {}]   ;;  %s1783_s6 = inlined_call_operand.hbm [shape: bf16[32,32], index: 6, kind: input, shape index: {}]   ;;  %s1784_s7 = inlined_call_operand.vmem [shape: f32[4,32], index: 7, kind: input, shape index: {}]   ;;  %s1785_s8 = inlined_call_operand.vmem [shape: f32[4,32], index: 8, kind: input, shape index: {}]   ;;  %s1786_s9 = inlined_call_operand.hbm [shape: bf16[2,4,32], index: 9, kind: output, shape index: {0}]   ;;  %s1787_s10 = inlined_call_operand.hbm [shape: bf16[2,4,32], index: 10, kind: output, shape index: {1}]  }
   0x1   :  { %1794 = sst [smem:[#allocation26_spill]] %s1779_s2 }
   0x2   :  { %1795 = sst [smem:[#allocation27_spill]] %s1780_s3 }
   0x3   :  { %1796 = sst [smem:[#allocation28_spill]] %s1781_s4 }
   0x4   :  { %1797 = sst [smem:[#allocation29_spill]] %s1782_s5 }
   0x5   :  { %1798 = sst [smem:[#allocation30_spill]] %s1783_s6 }
   0x6   :  { %16 = vsyncpa [#allocation5], 0 }
   0x7   :  { %18 = vsyncpa [#allocation5 + $0x1], 0 }
   0x8   :  { %19 = vsyncpa [#allocation8], 0 }
   0x9   :  { %20 = vsyncpa [#allocation11], 0 }
   0xa   :  { %21 = vsyncpa [#allocation14], 0 }
   0xb   :  { %22 = vsyncpa [#allocation6], 0 }
   0xc   :  { %24 = vsyncpa [#allocation6 + $0x1], 0 }
   0xd   :  { %25 = vsyncpa [#allocation17], 0 }
   0xe   :  { %27 = vsyncpa [#allocation17 + $0x1], 0  ;;  %s1501_s13 = smov 0   ;;  %s1503_s14 = smov 0  }
   0xf   :  { %s1505_s15 = smov 0   ;;  %s1507_s16 = smov 0  }
  0x10   :  { %s1509_s17 = smov 0   ;;  %s1511_s18 = smov 0  }
  0x11 LB: > { %1799 = sst [smem:[#allocation24_spill]] %s1428_s17  ;;  %s1791_s19 = sadd.s32 4294967295, %s1432_s18   ;;  %s1432_s18 = sphi %s1511_s18, %s33_s18   ;;  %s1428_s17 = sphi %s1509_s17, %s1821_s17   ;;  %s1424_s16 = sphi %s1507_s16, %s1820_s16   ;;  %s1420_s15 = sphi %s1505_s15, %s1824_s15   ;;  %s1416_s14 = sphi %s1503_s14, %s1823_s14   ;;  %s1412_s13 = sphi %s1501_s13, %s1822_s13  }
  0x12   : > { %p952_p0 = scmp.ge.s32.totalorder %s1432_s18, 1  ;;  %p1535_p1 = scmp.eq.s32.totalorder %s1791_s19, 0 }
  0x13   : > { %p308_p2 = scmp.lt.s32.totalorder %s1432_s18, 3  ;;  %s1434_s22 = smov [#allocation7]  }
  0x14   : > { %s1800_s20 = scalar_select %p1535_p1, 1, 0 }
  0x15   : > { %p1540_p3 = pnand %p952_p0, %p308_p2  ;;  %s324_s23 = sshll.u32 %s1434_s22, 4  ;;  %s325_s23 = int_to_ptr.vmem [resolvable:$true] %s324_s23 }
  0x16   : > { %s1435_s24 = smov [#allocation10]   ;;  %s1436_s27 = smov [#allocation9]  }
  0x17   : > { %s1801_s21 = scalar_select %p1540_p3, 1, 0 }
  0x18   : > { %p1050_p5 = pneg %p1540_p3  ;;  %s350_s25 = sshll.u32 %s1435_s24, 4  ;;  %s351_s25 = int_to_ptr.vmem [resolvable:$true] %s350_s25 }
  0x19   : > { %s337_s28 = sshll.u32 %s1436_s27, 4  ;;  %s1163_s30 = scalar_lea.vmem %s325_s23, 16  ;;  %s1553_s28 = int_to_ptr.vmem [resolvable:$true] %s337_s28 }
  0x1a   : > { %p1549_p6 = pnand %p1050_p5, %p1535_p1  ;;  %p1164_p8 = scmp.ne.s32.totalorder %s325_s23, %s1163_s30 }
  0x1b   : > { %s1170_s11 = scalar_lea.vmem %s325_s23, 32  ;;  %p1171_p11 = scmp.lt.s32.totalorder %s325_s23, %s325_s23 }
  0x1c   : > { %p1557_p7 = pneg %p1549_p6  ;;  %p1172_p12 = scmp.lt.s32.totalorder %s1170_s11, %s1163_s30 }
  0x1e   : > { %p1166_p9 = pnand %p1164_p8, %p1557_p7  ;;  %p1173_p13 = por %p1172_p12, %p1171_p11 }
  0x20   : > { %p1167_p10 = pneg %p1166_p9 }
  0x22   : > { %p1174_p0 = pnand %p1173_p13, %p1167_p10 }
  0x24   : > { %1177 = shalt.err (!%p1174_p0)
}
  0x25   : > { %s1804_s2 = sld [smem:[#allocation26_spill]]  ;;  %s1189_s24 = scalar_lea.vmem %s351_s25, 32 }
  0x26   : > { %p1190_p2 = scmp.ne.s32.totalorder %s351_s25, %s1189_s24  ;;  %p1197_p8 = scmp.lt.s32.totalorder %s351_s25, %s351_s25 }
  0x27   : > { %p1198_p9 = scmp.lt.s32.totalorder %s1189_s24, %s1189_s24 }
  0x28   : > { %p1192_p5 = pnand %p1190_p2, %p1557_p7 }
  0x29   : > { %p1199_p3 = por %p1198_p9, %p1197_p8 }
  0x2a   : > { %p1193_p4 = pneg %p1192_p5 }
  0x2b   : > { %1053 = dma.hbm_to_vmem [thread:$0]  (!%p1549_p6), %s1804_s2, 16, %s325_s23, [#allocation8]  }
  0x2c   : > { %p1200_p1 = pnand %p1199_p3, %p1193_p4 }
  0x2e   : > { %1203 = shalt.err (!%p1200_p1)
}
  0x2f   : > { %s1805_s4 = sld [smem:[#allocation28_spill]]  ;;  %s1215_s23 = scalar_lea.vmem %s1553_s28, 32 }
  0x30   : > { %p1216_p10 = scmp.ne.s32.totalorder %s1553_s28, %s1215_s23  ;;  %p1223_p13 = scmp.lt.s32.totalorder %s1553_s28, %s1553_s28 }
  0x31   : > { %p1224_p0 = scmp.lt.s32.totalorder %s1215_s23, %s1215_s23 }
  0x32   : > { %p1218_p11 = pnand %p1216_p10, %p1557_p7 }
  0x33   : > { %p1225_p3 = por %p1224_p0, %p1223_p13 }
  0x34   : > { %p1219_p12 = pneg %p1218_p11 }
  0x35   : > { %1059 = dma.hbm_to_vmem [thread:$0]  (!%p1549_p6), %s1805_s4, 32, %s351_s25, [#allocation11]  }
  0x36   : > { %p1226_p1 = pnand %p1225_p3, %p1219_p12 }
  0x38   : > { %1229 = shalt.err (!%p1226_p1)
}
  0x39   : > { %s1806_s3 = sld [smem:[#allocation27_spill]]  ;;  %s1437_s25 = smov [#allocation12]  }
  0x3a   : > { %s360_s22 = sshll.u32 %s1437_s25, 4  ;;  %s361_s22 = int_to_ptr.vmem [resolvable:$true] %s360_s22 }
  0x3b   : > { %s1241_s24 = scalar_lea.vmem %s361_s22, 256  ;;  %p1249_p8 = scmp.lt.s32.totalorder %s361_s22, %s361_s22 }
  0x3c   : > { %p1242_p4 = scmp.ne.s32.totalorder %s361_s22, %s1241_s24  ;;  %p1250_p9 = scmp.lt.s32.totalorder %s1241_s24, %s1241_s24 }
  0x3e   : > { %p1244_p2 = pnand %p1242_p4, %p1557_p7  ;;  %p1251_p10 = por %p1250_p9, %p1249_p8 }
  0x3f   : > { %1056 = dma.hbm_to_vmem [thread:$0]  (!%p1549_p6), %s1806_s3, 32, %s1553_s28, [#allocation8]  }
  0x40   : > { %p1245_p5 = pneg %p1244_p2 }
  0x42   : > { %p1252_p11 = pnand %p1251_p10, %p1245_p5 }
  0x44   : > { %1255 = shalt.err (!%p1252_p11)
}
  0x45   : > { %s1438_s27 = smov 64   ;;  %s1439_s30 = smov 4  }
  0x46   : > { %s1807_s5 = sld [smem:[#allocation29_spill]]  ;;  %s1440_s11 = smov [#allocation13]  }
  0x47   : > { %s373_s12 = sshll.u32 %s1440_s11, 4  ;;  %s374_s12 = int_to_ptr.vmem [resolvable:$true] %s373_s12 }
  0x48   : > { %s1267_s25 = scalar_lea.vmem %s374_s12, 256  ;;  %p1275_p3 = scmp.lt.s32.totalorder %s374_s12, %s374_s12 }
  0x49   : > { %p1268_p12 = scmp.ne.s32.totalorder %s374_s12, %s1267_s25  ;;  %p1276_p1 = scmp.lt.s32.totalorder %s1267_s25, %s1267_s25 }
  0x4b   : > { %p1270_p13 = pnand %p1268_p12, %p1557_p7  ;;  %p1277_p4 = por %p1276_p1, %p1275_p3 }
  0x4c   : > { %1062 = dma.hbm_to_vmem [thread:$0]  (!%p1549_p6), %s1807_s5, 256, %s361_s22, [#allocation11], %s1438_s27, %s1438_s27, %s1439_s30  }
  0x4d   : > { %p1271_p0 = pneg %p1270_p13 }
  0x4f   : > { %p1278_p2 = pnand %p1277_p4, %p1271_p0 }
  0x51   : > { %1281 = shalt.err (!%p1278_p2)
}
  0x52   : > { %s1808_s6 = sld [smem:[#allocation30_spill]]  ;;  %s951_s29 = sadd.s32 4294967294, %s1432_s18  }
  0x53   : > { %s45_s22 = sadd.s32 1, %s1428_s17  ;;  %s54_s26 = sadd.s32 1, %s1420_s15 }
  0x54   : > { %p47_p7 = scmp.ge.s32.totalorder %s45_s22, 2  ;;  %p61_p5 = scmp.ne.s32.totalorder %s1420_s15, %s1416_s14 }
  0x55   : > { %p62_p8 = scmp.eq.s32.totalorder %s1432_s18, 0  ;;  %p67_p9 = scmp.ne.s32.totalorder %s1416_s14, %s1412_s13 }
  0x56   : > { %s1826_s22 = smov (%p47_p7, %s45_s22), 0  ;;  %p1811_p11 = scmp.ne.s32.totalorder %s1800_s20, 0 }
  0x57   : > { %1809 = sst [smem:[#allocation25_spill]] %s1826_s22  ;;  %p1611_p10 = por %p62_p8, %p61_p5 }
  0x58   : > { %1065 = dma.hbm_to_vmem [thread:$0]  (!%p1549_p6), %s1808_s6, 256, %s374_s12, [#allocation14], %s1438_s27, %s1438_s27, %s1439_s30  }
  0x59   : > { %p1617_p6 = por %p1811_p11, %p67_p9  ;;  %s49_s30 = ssub.s32 %s1428_s17, %s1826_s22 }
  0x5a   : > { %s1813_s23 = sadd.s32 4294967295, %s1432_s18   ;;  %p52_p13 = scmp.eq.s32.totalorder %s49_s30, 0 }
  0x5b   : > { %p269_p12 = scmp.eq.s32.totalorder %s1813_s23, 1  ;;  %p275_p0 = scmp.eq.s32.totalorder %s951_s29, 1 }
  0x5c   : > { %p1082_p1 = scmp.lt.s32.totalorder %s1432_s18, 2  ;;  %s393_s25 = sand.u32 1, %s1420_s15  }
  0x5d   : > { %p1625_p3 = por %p269_p12, %p61_p5  ;;  %p1633_p4 = por %p275_p0, %p67_p9 }
  0x5e   : > { %s1631_s11 = scalar_select %p52_p13, %s1420_s15, %s54_s26  }
  0x5f   : > { %s959_s24 = sshll.u32 %s393_s25, 3  ;;  %s960_s2 = sshll.u32 %s1428_s17, 7 }
  0x60   : > { %s403_s23 = scalar_lea.hbm %s1777_s0, %s960_s2  ;;  %s397_s30 = scalar_lea.vmem [#allocation4], %s959_s24 }
  0x61   : > { %s405_s29 = sshll.u32 %s397_s30, 4  ;;  %p1644_p2 = pnand %p1082_p1, %p1611_p10  ;;  %s406_s29 = int_to_ptr.vmem [resolvable:$true] %s405_s29 }
  0x62   : > { %s394_s26 = scalar_lea.sflag [#allocation5], %s393_s25  ;;  %s1295_s6 = scalar_lea.vmem %s406_s29, 128 }
  0x63   : > { %p1284_p7 = pneg %p1644_p2  ;;  %p1296_p5 = scmp.ne.s32.totalorder %s406_s29, %s1295_s6 }
  0x64   : > { %s1441_s22 = smov [#allocation4]  }
  0x65   : > { %p1298_p8 = pnand %p1296_p5, %p1284_p7  ;;  %s1300_s17 = sshll.u32 %s1441_s22, 4  ;;  %s1301_s17 = int_to_ptr.vmem [resolvable:$false] %s1300_s17 }
  0x66   : > { %s1302_s2 = scalar_lea.vmem %s1301_s17, 256  ;;  %p1303_p11 = scmp.lt.s32.totalorder %s406_s29, %s1301_s17 }
  0x67   : > { %p1299_p9 = pneg %p1298_p8  ;;  %p1304_p12 = scmp.lt.s32.totalorder %s1302_s2, %s1295_s6 }
  0x69   : > { %p1305_p13 = por %p1304_p12, %p1303_p11 }
  0x6b   : > { %p1306_p0 = pnand %p1305_p13, %p1299_p9 }
  0x6d   : > { %1309 = shalt.err (!%p1306_p0)
}
  0x6e   : > { %1069 = dma.hbm_to_vmem [thread:$0]  (!%p1644_p2), %s403_s23, 128, %s406_s29, %s394_s26  }
  0x6f   : > { %p1817_p10 = scmp.ne.s32.totalorder %s1801_s21, 0 }
  0x70   : > { %s1655_s3 = sand.u32 (!%p1817_p10), 1, %s1416_s14  }
  0x71   : > { %414 = sbr.rel (%p1817_p10) target bundleno = 879 (0x36f), region = 56  ;;  %s962_s4 = sshll.u32 (!%p1817_p10), %s1655_s3, 3 }
  0x72   : > { %s417_s22 = scalar_lea.sflag (!%p1817_p10), [#allocation5], %s1655_s3  ;;  %s420_s19 = scalar_lea.vmem (!%p1817_p10), [#allocation4], %s962_s4 }
  0x76   : > { %1387 = dma.done.wait (%p1617_p6), %s417_s22, 128  }
  0x77   : > { %1389 = vsyncadd (%p1617_p6), %s417_s22, 4294967168  ;;  %p1818_p1 = scmp.ne.s32.totalorder %s1800_s20, 0 }
  0x79   : > { %1391 = dma.done.wait (%p1818_p1), [#allocation8], 48  }
  0x7a   : > { %1393 = vsyncadd (%p1818_p1), [#allocation8], 4294967248 }
  0x7b   : > { %1395 = dma.done.wait (%p1818_p1), [#allocation11], 288  }
  0x7c   : > { %1397 = vsyncadd (%p1818_p1), [#allocation11], 4294967008 }
  0x7d   : > { %1399 = dma.done.wait (%p1818_p1), [#allocation14], 256  }
  0x7e   : > { %1401 = vsyncadd (%p1818_p1), [#allocation14], 4294967040  ;;  %vm493_vm0 = vcmask 261120   ;;  %v490_v0 = vld [vmem:[%s420_s19] sm:$0xff]  ;;  %v1442_v7 = vmov 0.0   ;;  %vm1443_vm1 = vmmov 0  }
  0x7f   : > { %v494_v1 = vsel %vm493_vm0, %v490_v0, 0.0  ;;  %996 = vmatprep.subr.bf16.mxu0 %v1442_v7  ;;  %1002 = vmatprep.subr.bf16.mxu1 %v1442_v7  ;;  %vm487_vm2 = vcmask 257024   ;;  %v970_v12 = vld [vmem:[%s1778_s1] ss:$0 sm:$0xff]  ;;  %v971_v14 = vld [vmem:[#allocation7] ss:$0 sm:$0xff] }
  0x80   : > { %495 = vadd.xlane.f32.xlu0 %v494_v1  ;;  %998 = vmatprep.mubr.msk.bf16.mxu0 %vm1443_vm1, %v1442_v7  ;;  %488 = vst.msk [vmem:[#allocation2] sm:$0xf] %vm487_vm2, %v1442_v7  ;;  %489 = vst.msk [vmem:[#allocation3] sm:$0xf] %vm487_vm2, %v1442_v7  ;;  %vm529_vm3 = vcmask 1043456   ;;  %vm525_vm4 = vcmask 64512  }
  0x81   : > { %1004 = vmatprep.mubr.msk.bf16.mxu1 %vm1443_vm1, %v1442_v7  ;;  %v524_v19 = vld [vmem:[#allocation9] sm:$0x3]  ;;  %v577_v20 = vld [vmem:[#allocation10] sm:$0x3]  ;;  %v1146_v21 = vld [vmem:[#allocation12 + $0x8] sm:$0xff]   ;;  %s968_s17 = sshll.u32 %s1655_s3, 1 }
  0x82   : > { %v1147_v22 = vld [vmem:[#allocation13 + $0x8] sm:$0xff]   ;;  %v1148_v23 = vld [vmem:[#allocation12] sm:$0xff]   ;;  %v1149_v24 = vld [vmem:[#allocation13] sm:$0xff]   ;;  %s982_s24 = sshll.u32 %s1424_s16, 5  ;;  %s474_s23 = scalar_lea.vmem [#allocation15], %s968_s17  ;;  %vm689_vm5 = vcmask 254976  }
  0x83   : > { %v632_v41 = vld [vmem:[%s1784_s7] sm:$0xf]  ;;  %s774_s30 = sshll.u32 %s474_s23, 4  ;;  %s481_s29 = scalar_lea.vmem [#allocation16], %s968_s17  ;;  %s1703_s30 = int_to_ptr.vmem [resolvable:$true] %s774_s30 }
  0x84   : > { %v697_v42 = vld [vmem:[%s1785_s8] sm:$0xf]  ;;  %s787_s26 = sshll.u32 %s481_s29, 4  ;;  %s1701_s22 = scalar_lea.hbm %s1786_s9, %s982_s24  ;;  %s1710_s26 = int_to_ptr.vmem [resolvable:$true] %s787_s26 }
  0x85   : > { %s1708_s5 = scalar_lea.hbm %s1787_s10, %s982_s24  ;;  %s756_s6 = scalar_lea.sflag [#allocation6], %s1655_s3 }
  0x86   : > { %s1310_s17 = scalar_lea.vmem %s1703_s30, 32  ;;  %s1444_s20 = smov [#allocation15]  }
  0x87   : > { %v523_v25 = vld [vmem:[#allocation2] sm:$0xf]  ;;  %v576_v26 = vld [vmem:[#allocation3] sm:$0xf]  ;;  %p1311_p6 = scmp.ne.s32.totalorder %s1703_s30, %s1310_s17  ;;  %s1314_s21 = sshll.u32 %s1444_s20, 4  ;;  %s1315_s21 = int_to_ptr.vmem [resolvable:$false] %s1314_s21 }
  0x88   : > { %s1316_s27 = scalar_lea.vmem %s1315_s21, 64  ;;  %p1317_p5 = scmp.lt.s32.totalorder %s1703_s30, %s1315_s21 }
  0x89   : > { %p1312_p2 = pnand %p1311_p6, %p1625_p3  ;;  %p1318_p8 = scmp.lt.s32.totalorder %s1316_s27, %s1310_s17 }
  0x8b   : > { %p1313_p7 = pneg %p1312_p2  ;;  %p1319_p9 = por %p1318_p8, %p1317_p5 }
  0x8d   : > { %p1320_p11 = pnand %p1319_p9, %p1313_p7 }
 0x109   : > { %v496_v2 = vpop.xlane.xlu0 %495 }
 0x10a   : > { %v498_v3 = vmul.f32 0.03125, %v496_v2 }
 0x10c   : > { %v499_v4 = vsub.f32 %v490_v0, %v498_v3 }
 0x10e   : > { %v500_v5 = vmul.f32 %v499_v4, %v499_v4 }
 0x110   : > { %v501_v6 = vsel %vm493_vm0, %v500_v5, 0.0 }
 0x111   : > { %502 = vadd.xlane.f32.xlu0 %v501_v6 }
 0x19a   : > { %v503_v8 = vpop.xlane.xlu0 %502 }
 0x19b   : > { %v504_v9 = vmul.f32 0.03125, %v503_v8 }
 0x19d   : > { %v505_v10 = vadd.f32 1e-05, %v504_v9 }
 0x19f   : > { %1150 = vrsqrt.f32 %v505_v10 }
 0x1ac   : > { %v1151_v11 = vpop.eup %1150 }
 0x1ad   : > { %v507_v13 = vmul.f32 %v1151_v11, %v499_v4 }
 0x1af   : > { %v514_v15 = vmul.f32 %v970_v12, %v507_v13 }
 0x1b1   : > { %v521_v16 = vadd.f32 %v971_v14, %v514_v15 }
 0x1b3   : > { %v522_v17 = vpack.c.bf16 %v521_v16, %v521_v16 }
 0x1b5   : > { %v531_v18 = vsel %vm529_vm3, %v522_v17, 0 }
 0x1b6   : > { %997 = vmatpush3.bf16.msra.mxu0 %v531_v18  ;;  %1003 = vmatpush3.bf16.msra.mxu1 %v531_v18 }
 0x1b7   : > { %1008 = vmatprep.subr.bf16.mxu0 %v1442_v7  ;;  %1016 = vmatprep.subr.bf16.mxu1 %v1442_v7 }
 0x1b9   : > { %999 = vmatmul.mubr.msk.bf16.vlgmr.msra.gmra.mxu0 %vm525_vm4, %v524_v19  ;;  %1005 = vmatmul.mubr.msk.bf16.vlgmr.msra.gmra.mxu1 %vm525_vm4, %v577_v20 }
 0x1ba   : > { %1012 = vmatprep.mubr.msk.bf16.mxu0 %vm1443_vm1, %v1442_v7  ;;  %1020 = vmatprep.mubr.msk.bf16.mxu1 %vm1443_vm1, %v1442_v7 }
 0x1bb   : > { %1009 = vmatpush3.bf16.msra.mxu0 %v1146_v21  ;;  %1017 = vmatpush3.bf16.msra.mxu1 %v1147_v22 }
 0x1bc   : > { %1010 = vmatprep.subr.bf16.mxu0 %v1442_v7  ;;  %1018 = vmatprep.subr.bf16.mxu1 %v1442_v7 }
 0x1bf   : > { %1011 = vmatpush3.bf16.msra.mxu0 %v1148_v23  ;;  %1019 = vmatpush3.bf16.msra.mxu1 %v1149_v24 }
 0x279   : > { %v567_v27 = vpop.f32.mrf.mxu0  ;;  %v615_v28 = vpop.f32.mrf.mxu1 }
 0x27a   : > { %v573_v29 = vadd.f32 %v567_v27, %v523_v25  ;;  %v621_v30 = vadd.f32 %v615_v28, %v576_v26 }
 0x27b   : > { %v1000_v31 = vpop.f32.mrf.mxu0  ;;  %v1006_v32 = vpop.f32.mrf.mxu1 }
 0x27c   : > { %575 = vst.msk [vmem:[#allocation2] sm:$0xf] %vm487_vm2, %v573_v29  ;;  %622 = vst.msk [vmem:[#allocation3] sm:$0xf] %vm487_vm2, %v621_v30 }
 0x27d   : > { %v570_v33 = vpop.f32.mrf.mxu0  ;;  %v618_v34 = vpop.f32.mrf.mxu1 }
 0x27f   : > { %v1001_v35 = vpop.f32.mrf.mxu0  ;;  %v1007_v36 = vpop.f32.mrf.mxu1 }
 0x283   : > { %v626_v37 = vld [vmem:[#allocation2] sm:$0xf]  ;;  %v691_v38 = vld [vmem:[#allocation3] sm:$0xf] }
 0x284   : > { %v627_v39 = vpack.c.bf16 %v626_v37, %v626_v37  ;;  %v692_v40 = vpack.c.bf16 %v691_v38, %v691_v38 }
 0x286   : > { %1013 = vmatmul.mubr.msk.bf16.vlgmr.msra.gmra.mxu0 %vm493_vm0, %v627_v39  ;;  %1021 = vmatmul.mubr.msk.bf16.vlgmr.msra.gmra.mxu1 %vm493_vm0, %v692_v40 }
 0x346   : > { %v682_v43 = vpop.f32.mrf.mxu0  ;;  %v747_v44 = vpop.f32.mrf.mxu1 }
 0x347   : > { %v683_v45 = vadd.f32 %v682_v43, %v632_v41  ;;  %v748_v46 = vadd.f32 %v747_v44, %v697_v42 }
 0x348   : > { %v1014_v47 = vpop.f32.mrf.mxu0  ;;  %v1022_v48 = vpop.f32.mrf.mxu1 }
 0x349   : > { %v688_v49 = vpack.c.bf16 %v683_v45, %v683_v45  ;;  %v753_v50 = vpack.c.bf16 %v748_v46, %v748_v46 }
 0x34a   : > { %v685_v51 = vpop.f32.mrf.mxu0  ;;  %v750_v52 = vpop.f32.mrf.mxu1 }
 0x34b   : > { %690 = vst.msk [vmem:[%s474_s23] sm:$0x3] %vm689_vm5, %v688_v49  ;;  %754 = vst.msk [vmem:[%s481_s29] sm:$0x3] %vm689_vm5, %v753_v50 }
 0x34c   : > { %v1015_v53 = vpop.f32.mrf.mxu0  ;;  %v1023_v54 = vpop.f32.mrf.mxu1 }
 0x34d   : > { %1323 = shalt.err (!%p1320_p11)
}
 0x34e   : > { %s1324_s25 = scalar_lea.hbm %s1701_s22, 32  ;;  %s1328_s29 = scalar_lea.hbm %s1786_s9, 64 }
 0x34f   : > { %p1325_p12 = scmp.ne.s32.totalorder %s1701_s22, %s1324_s25  ;;  %p1329_p10 = scmp.lt.s32.totalorder %s1701_s22, %s1786_s9 }
 0x350   : > { %p1330_p1 = scmp.lt.s32.totalorder %s1328_s29, %s1324_s25 }
 0x351   : > { %p1326_p13 = pnand %p1325_p12, %p1625_p3 }
 0x352   : > { %p1331_p6 = por %p1330_p1, %p1329_p10 }
 0x353   : > { %p1327_p0 = pneg %p1326_p13 }
 0x355   : > { %p1332_p2 = pnand %p1331_p6, %p1327_p0 }
 0x357   : > { %1335 = shalt.err (!%p1332_p2)
}
 0x358   : > { %1046 = dma.vmem_to_hbm [thread:$0]  (%p1625_p3), %s1703_s30, 32, %s1701_s22, %s756_s6  }
 0x359   : > { %s761_s16 = scalar_lea.sflag [#allocation17], %s1655_s3  ;;  %s1336_s19 = scalar_lea.vmem %s1710_s26, 32 }
 0x35a   : > { %p1337_p7 = scmp.ne.s32.totalorder %s1710_s26, %s1336_s19  ;;  %s1445_s17 = smov [#allocation16]  }
 0x35b   : > { %s1340_s20 = sshll.u32 %s1445_s17, 4  ;;  %s1341_s20 = int_to_ptr.vmem [resolvable:$false] %s1340_s20 }
 0x35c   : > { %p1338_p5 = pnand %p1337_p7, %p1625_p3  ;;  %s1342_s21 = scalar_lea.vmem %s1341_s20, 64 }
 0x35d   : > { %p1343_p9 = scmp.lt.s32.totalorder %s1710_s26, %s1341_s20  ;;  %p1344_p11 = scmp.lt.s32.totalorder %s1342_s21, %s1336_s19 }
 0x35e   : > { %p1339_p8 = pneg %p1338_p5 }
 0x35f   : > { %p1345_p12 = por %p1344_p11, %p1343_p9 }
 0x361   : > { %p1346_p13 = pnand %p1345_p12, %p1339_p8 }
 0x363   : > { %1349 = shalt.err (!%p1346_p13)
}
 0x364   : > { %s1350_s30 = scalar_lea.hbm %s1708_s5, 32  ;;  %s1354_s6 = scalar_lea.hbm %s1787_s10, 64 }
 0x365   : > { %p1351_p0 = scmp.ne.s32.totalorder %s1708_s5, %s1350_s30  ;;  %p1355_p6 = scmp.lt.s32.totalorder %s1708_s5, %s1787_s10 }
 0x366   : > { %p1356_p2 = scmp.lt.s32.totalorder %s1354_s6, %s1350_s30 }
 0x367   : > { %p1352_p10 = pnand %p1351_p0, %p1625_p3 }
 0x368   : > { %p1357_p7 = por %p1356_p2, %p1355_p6 }
 0x369   : > { %p1353_p1 = pneg %p1352_p10 }
 0x36b   : > { %p1358_p5 = pnand %p1357_p7, %p1353_p1 }
 0x36d   : > { %1361 = shalt.err (!%p1358_p5)
}
 0x36e   : > { %1047 = dma.vmem_to_hbm [thread:$0]  (%p1625_p3), %s1710_s26, 32, %s1708_s5, %s761_s16  }
 0x36f PF: > { %s799_s24 = sand.u32 1, %s1412_s13   ;;  %p1819_p8 = scmp.ge.s32.totalorder %s1432_s18, 2 }
 0x370   : > { %s800_s23 = scalar_lea.sflag [#allocation6], %s799_s24 }
 0x371   : > { %p1071_p9 = pnand %p1819_p8, %p1633_p4 }
 0x373   : > { %p1072_p11 = pneg %p1071_p9 }
 0x375   : > { %1403 = dma.done.wait (%p1072_p11), %s800_s23, 32  }
 0x376   : > { %1405 = vsyncadd (%p1072_p11), %s800_s23, 4294967264  ;;  %s809_s29 = scalar_lea.sflag [#allocation17], %s799_s24 }
 0x377   : > { %1407 = dma.done.wait (%p1072_p11), %s809_s29, 32  }
 0x378   : > { %1409 = vsyncadd (%p1072_p11), %s809_s29, 4294967264  ;;  %s33_s18 = sadd.s32 1, %s1432_s18   ;;  %s1820_s16 = sld [smem:[#allocation24_spill]] }
 0x379   : > { %p30_p12 = scmp.ge.s32.totalorder %s33_s18, 4   ;;  %s1821_s17 = sld [smem:[#allocation25_spill]] }
 0x37a   : > { %s1822_s13 = smov %s1416_s14  ;;  %s1823_s14 = smov %s1420_s15 }
 0x37b   : > { %s1824_s15 = smov %s1631_s11  ;;  %32 = sbr.rel (!%p30_p12) target bundleno = 17 (0x11), region = 148 }
 0x380   :  { %814 = vsyncpa [#allocation5], 1 }
 0x381   :  { %816 = vsyncpa [#allocation5 + $0x1], 1 }
 0x382   :  { %817 = vsyncpa [#allocation8], 1 }
 0x383   :  { %818 = vsyncpa [#allocation11], 1 }
 0x384   :  { %819 = vsyncpa [#allocation14], 1 }
 0x385   :  { %820 = vsyncpa [#allocation6], 1 }
 0x386   :  { %822 = vsyncpa [#allocation6 + $0x1], 1 }
 0x387   :  { %823 = vsyncpa [#allocation17], 1 }
 0x388   :  { %825 = vsyncpa [#allocation17 + $0x1], 1 }

</bundles_post_ra>
